<compile_context>
chip_gen: v7x
topology: tpu7x:2x2x1
jax: 0.10.0
libtpu: 0.0.40
codegen_flags: <defaults>
</compile_context>

<pallas_src>
import jax
import jax.numpy as jnp
from jax import lax
from jax.experimental import pallas as pl
from jax.experimental.pallas import tpu as pltpu

N = 2           # batch
L_IN = 256      # input length
C0 = 64         # baseconv out channels
KB = 32         # baseconv kernel size
STRIDE = 2
PAD = 15
L = (L_IN + 2 * PAD - KB) // STRIDE + 1   # = 128 output length (lane-dense)
K5 = 5
EPS = 1e-5      # nn.BatchNorm1d default eps


def _conv5(w_ref, x):
    """Conv1d(k=5, stride=1, pad=2, no bias) on a (C_in, L) tile.

    w_ref: (5, 16, C_in) Ref, tap-major.  Each tap is an MXU matmul against a
    lane-shifted view of the zero-padded input.
    """
    c_in, l = x.shape
    zpad = jnp.zeros((c_in, 2), jnp.float32)
    xp = jnp.concatenate([zpad, x, zpad], axis=1)          # (C_in, L + 4)
    acc = jnp.dot(w_ref[0], xp[:, 0:l], preferred_element_type=jnp.float32)
    for k in range(1, K5):
        acc = acc + jnp.dot(w_ref[k], xp[:, k:k + l],
                            preferred_element_type=jnp.float32)
    return acc                                             # (16, L) f32


def mlmod1_kernel(patches_ref, wb_ref, w1_ref, w2_ref, w3_ref, w4_ref,
                  gamma_ref, beta_ref, o_ref):
    ch_sum = jnp.zeros((C0, 1), jnp.float32)
    ch_sqsum = jnp.zeros((C0, 1), jnp.float32)

    # ---- pass 1: conv stack per batch element (MXU), stash pre-BN result in
    #      the output VMEM block, accumulate per-channel batch statistics.
    for n in range(N):
        # baseconv as an im2col contraction: (64,32) @ (32,L) -> (64,L)
        x0 = jnp.dot(wb_ref[...], patches_ref[n],
                     preferred_element_type=jnp.float32)

        x1 = _conv5(w1_ref, x0[0:16, :])
        x2 = _conv5(w2_ref, jnp.concatenate([x0[16:32, :], x1], axis=0))
        x3 = _conv5(w3_ref, jnp.concatenate([x0[32:48, :], x2], axis=0))
        x4 = _conv5(w4_ref, jnp.concatenate([x0[48:64, :], x3], axis=0))

        x_all = jnp.concatenate([x1, x2, x3, x4], axis=0)   # (64, L)
        o_ref[n] = x_all
        ch_sum = ch_sum + jnp.sum(x_all, axis=1, keepdims=True)
        ch_sqsum = ch_sqsum + jnp.sum(x_all * x_all, axis=1, keepdims=True)

    # ---- BatchNorm1d (training mode: biased batch stats over (N, L)),
    #      affine folded into per-channel scale/shift.
    inv_count = 1.0 / (N * L)
    mu = ch_sum * inv_count                                  # (64, 1)
    var = ch_sqsum * inv_count - mu * mu                     # biased variance
    scale = gamma_ref[...] * lax.rsqrt(var + EPS)            # (64, 1)
    shift = beta_ref[...] - mu * scale                       # (64, 1)

    # ---- pass 2: re-load staged activations, apply scale/shift + ReLU.
    for n in range(N):
        xa = o_ref[n]
        o_ref[n] = jnp.maximum(xa * scale + shift, 0.0)


def mlmod1(x, w_base, w1, w2, w3, w4, gamma, beta):
    n, cin, l_in = x.shape
    assert n == N and cin == 1 and l_in == L_IN

    # im2col for the stride-2 baseconv (layout plumbing only; the contraction
    # itself runs on the MXU inside the kernel): patches[n,k,t] = xpad[n, 2t+k]
    xp = jnp.pad(x[:, 0, :], ((0, 0), (PAD, PAD)))           # (N, L_IN + 30)
    idx = STRIDE * jnp.arange(L)[None, :] + jnp.arange(KB)[:, None]  # (KB, L)
    patches = xp[:, idx]                                      # (N, KB, L)

    wb = w_base.reshape(C0, KB)                               # (64, 32)
    # conv weights tap-major: w[k] is a lane-dense (out, in) MXU operand
    w1t = jnp.transpose(w1, (2, 0, 1))                        # (5, 16, 16)
    w2t = jnp.transpose(w2, (2, 0, 1))                        # (5, 16, 32)
    w3t = jnp.transpose(w3, (2, 0, 1))                        # (5, 16, 32)
    w4t = jnp.transpose(w4, (2, 0, 1))                        # (5, 16, 32)
    g = gamma.reshape(C0, 1).astype(jnp.float32)
    b = beta.reshape(C0, 1).astype(jnp.float32)

    return pl.pallas_call(
        mlmod1_kernel,
        out_shape=jax.ShapeDtypeStruct((N, C0, L), jnp.float32),
        in_specs=[pl.BlockSpec(memory_space=pltpu.MemorySpace.VMEM)] * 8,
        out_specs=pl.BlockSpec(memory_space=pltpu.MemorySpace.VMEM),
    )(patches, wb, w1t, w2t, w3t, w4t, g, b)


if __name__ == "__main__":
    key = jax.random.PRNGKey(0)
    ks = jax.random.split(key, 6)

    # Input (N, 1, L_IN) as required by Conv1d(in_channels=1).
    x = jax.random.normal(ks[0], (N, 1, L_IN), dtype=jnp.float32)

    # Deterministic synthetic parameters (not a checkpoint load).
    w_base = jax.random.normal(ks[1], (C0, 1, KB), dtype=jnp.float32) * (1.0 / KB) ** 0.5
    w1 = jax.random.normal(ks[2], (16, 16, K5), dtype=jnp.float32) * (1.0 / (16 * K5)) ** 0.5
    w2 = jax.random.normal(ks[3], (16, 32, K5), dtype=jnp.float32) * (1.0 / (32 * K5)) ** 0.5
    w3 = jax.random.normal(ks[4], (16, 32, K5), dtype=jnp.float32) * (1.0 / (32 * K5)) ** 0.5
    w4 = jax.random.normal(ks[5], (16, 32, K5), dtype=jnp.float32) * (1.0 / (32 * K5)) ** 0.5
    gamma = jnp.ones((C0,), jnp.float32)    # BatchNorm1d default weight
    beta = jnp.zeros((C0,), jnp.float32)    # BatchNorm1d default bias

    out = jax.jit(mlmod1)(x, w_base, w1, w2, w3, w4, gamma, beta)
    jax.block_until_ready(out)
    assert out.shape == (N, C0, L) and out.dtype == jnp.float32
    print("KERNEL_OK")
</pallas_src>

<mosaic_0001>
module attributes {stable_mosaic.version = 11 : i64} {
  func.func @mlmod1_kernel(%arg0: memref<2x32x128xf32, #tpu.memory_space<vmem>>, %arg1: memref<64x32xf32, #tpu.memory_space<vmem>>, %arg2: memref<5x16x16xf32, #tpu.memory_space<vmem>>, %arg3: memref<5x16x32xf32, #tpu.memory_space<vmem>>, %arg4: memref<5x16x32xf32, #tpu.memory_space<vmem>>, %arg5: memref<5x16x32xf32, #tpu.memory_space<vmem>>, %arg6: memref<64x1xf32, #tpu.memory_space<vmem>>, %arg7: memref<64x1xf32, #tpu.memory_space<vmem>>, %arg8: memref<2x64x128xf32, #tpu.memory_space<vmem>>) attributes {dimension_semantics = [], scalar_prefetch = 0 : i64, scratch_operands = 0 : i64, tpu.core_type = #tpu.core_type<tc>} {
    %cst = arith.constant 0.000000e+00 : f32
    %0 = vector.broadcast %cst : f32 to vector<64x1xf32>
    %cst_0 = arith.constant 0.000000e+00 : f32
    %1 = vector.broadcast %cst_0 : f32 to vector<64x1xf32>
    %c0 = arith.constant 0 : index
    %c0_1 = arith.constant 0 : index
    %2 = vector.load %arg1[%c0, %c0_1] : memref<64x32xf32, #tpu.memory_space<vmem>>, vector<64x32xf32>
    %c0_2 = arith.constant 0 : index
    %c0_3 = arith.constant 0 : index
    %c0_4 = arith.constant 0 : index
    %3 = vector.load %arg0[%c0_2, %c0_3, %c0_4] : memref<2x32x128xf32, #tpu.memory_space<vmem>>, vector<1x32x128xf32>
    %4 = vector.shape_cast %3 : vector<1x32x128xf32> to vector<32x128xf32>
    %cst_5 = arith.constant dense<0.000000e+00> : vector<64x128xf32>
    %5 = tpu.matmul %2, %4, %cst_5 {dimension_numbers = #tpu.dot_dimension_numbers<[1], [0], [0], [1], [0, 0, 1, 1], [], []>} : vector<64x32xf32>, vector<32x128xf32>, vector<64x128xf32> -> vector<64x128xf32>
    %6 = vector.extract_strided_slice %5 {offsets = [0, 0], sizes = [16, 128], strides = [1, 1]} : vector<64x128xf32> to vector<16x128xf32>
    %cst_6 = arith.constant 0.000000e+00 : f32
    %7 = vector.broadcast %cst_6 : f32 to vector<16x2xf32>
    %8 = tpu.concatenate %7, %6, %7 in 1 : vector<16x2xf32>, vector<16x128xf32>, vector<16x2xf32> -> vector<16x132xf32>
    %c0_7 = arith.constant 0 : index
    %c0_8 = arith.constant 0 : index
    %c0_9 = arith.constant 0 : index
    %9 = vector.load %arg2[%c0_7, %c0_8, %c0_9] : memref<5x16x16xf32, #tpu.memory_space<vmem>>, vector<1x16x16xf32>
    %10 = vector.shape_cast %9 : vector<1x16x16xf32> to vector<16x16xf32>
    %11 = vector.extract_strided_slice %8 {offsets = [0, 0], sizes = [16, 128], strides = [1, 1]} : vector<16x132xf32> to vector<16x128xf32>
    %cst_10 = arith.constant dense<0.000000e+00> : vector<16x128xf32>
    %12 = tpu.matmul %10, %11, %cst_10 {dimension_numbers = #tpu.dot_dimension_numbers<[1], [0], [0], [1], [0, 0, 1, 1], [], []>} : vector<16x16xf32>, vector<16x128xf32>, vector<16x128xf32> -> vector<16x128xf32>
    %c1 = arith.constant 1 : index
    %c0_11 = arith.constant 0 : index
    %c0_12 = arith.constant 0 : index
    %13 = vector.load %arg2[%c1, %c0_11, %c0_12] : memref<5x16x16xf32, #tpu.memory_space<vmem>>, vector<1x16x16xf32>
    %14 = vector.shape_cast %13 : vector<1x16x16xf32> to vector<16x16xf32>
    %15 = vector.extract_strided_slice %8 {offsets = [0, 1], sizes = [16, 128], strides = [1, 1]} : vector<16x132xf32> to vector<16x128xf32>
    %cst_13 = arith.constant dense<0.000000e+00> : vector<16x128xf32>
    %16 = tpu.matmul %14, %15, %cst_13 {dimension_numbers = #tpu.dot_dimension_numbers<[1], [0], [0], [1], [0, 0, 1, 1], [], []>} : vector<16x16xf32>, vector<16x128xf32>, vector<16x128xf32> -> vector<16x128xf32>
    %17 = arith.addf %12, %16 : vector<16x128xf32>
    %c2 = arith.constant 2 : index
    %c0_14 = arith.constant 0 : index
    %c0_15 = arith.constant 0 : index
    %18 = vector.load %arg2[%c2, %c0_14, %c0_15] : memref<5x16x16xf32, #tpu.memory_space<vmem>>, vector<1x16x16xf32>
    %19 = vector.shape_cast %18 : vector<1x16x16xf32> to vector<16x16xf32>
    %20 = vector.extract_strided_slice %8 {offsets = [0, 2], sizes = [16, 128], strides = [1, 1]} : vector<16x132xf32> to vector<16x128xf32>
    %cst_16 = arith.constant dense<0.000000e+00> : vector<16x128xf32>
    %21 = tpu.matmul %19, %20, %cst_16 {dimension_numbers = #tpu.dot_dimension_numbers<[1], [0], [0], [1], [0, 0, 1, 1], [], []>} : vector<16x16xf32>, vector<16x128xf32>, vector<16x128xf32> -> vector<16x128xf32>
    %22 = arith.addf %17, %21 : vector<16x128xf32>
    %c3 = arith.constant 3 : index
    %c0_17 = arith.constant 0 : index
    %c0_18 = arith.constant 0 : index
    %23 = vector.load %arg2[%c3, %c0_17, %c0_18] : memref<5x16x16xf32, #tpu.memory_space<vmem>>, vector<1x16x16xf32>
    %24 = vector.shape_cast %23 : vector<1x16x16xf32> to vector<16x16xf32>
    %25 = vector.extract_strided_slice %8 {offsets = [0, 3], sizes = [16, 128], strides = [1, 1]} : vector<16x132xf32> to vector<16x128xf32>
    %cst_19 = arith.constant dense<0.000000e+00> : vector<16x128xf32>
    %26 = tpu.matmul %24, %25, %cst_19 {dimension_numbers = #tpu.dot_dimension_numbers<[1], [0], [0], [1], [0, 0, 1, 1], [], []>} : vector<16x16xf32>, vector<16x128xf32>, vector<16x128xf32> -> vector<16x128xf32>
    %27 = arith.addf %22, %26 : vector<16x128xf32>
    %c4 = arith.constant 4 : index
    %c0_20 = arith.constant 0 : index
    %c0_21 = arith.constant 0 : index
    %28 = vector.load %arg2[%c4, %c0_20, %c0_21] : memref<5x16x16xf32, #tpu.memory_space<vmem>>, vector<1x16x16xf32>
    %29 = vector.shape_cast %28 : vector<1x16x16xf32> to vector<16x16xf32>
    %30 = vector.extract_strided_slice %8 {offsets = [0, 4], sizes = [16, 128], strides = [1, 1]} : vector<16x132xf32> to vector<16x128xf32>
    %cst_22 = arith.constant dense<0.000000e+00> : vector<16x128xf32>
    %31 = tpu.matmul %29, %30, %cst_22 {dimension_numbers = #tpu.dot_dimension_numbers<[1], [0], [0], [1], [0, 0, 1, 1], [], []>} : vector<16x16xf32>, vector<16x128xf32>, vector<16x128xf32> -> vector<16x128xf32>
    %32 = arith.addf %27, %31 : vector<16x128xf32>
    %33 = vector.extract_strided_slice %5 {offsets = [16, 0], sizes = [16, 128], strides = [1, 1]} : vector<64x128xf32> to vector<16x128xf32>
    %34 = tpu.concatenate %33, %32 in 0 : vector<16x128xf32>, vector<16x128xf32> -> vector<32x128xf32>
    %cst_23 = arith.constant 0.000000e+00 : f32
    %35 = vector.broadcast %cst_23 : f32 to vector<32x2xf32>
    %36 = tpu.concatenate %35, %34, %35 in 1 : vector<32x2xf32>, vector<32x128xf32>, vector<32x2xf32> -> vector<32x132xf32>
    %c0_24 = arith.constant 0 : index
    %c0_25 = arith.constant 0 : index
    %c0_26 = arith.constant 0 : index
    %37 = vector.load %arg3[%c0_24, %c0_25, %c0_26] : memref<5x16x32xf32, #tpu.memory_space<vmem>>, vector<1x16x32xf32>
    %38 = vector.shape_cast %37 : vector<1x16x32xf32> to vector<16x32xf32>
    %39 = vector.extract_strided_slice %36 {offsets = [0, 0], sizes = [32, 128], strides = [1, 1]} : vector<32x132xf32> to vector<32x128xf32>
    %cst_27 = arith.constant dense<0.000000e+00> : vector<16x128xf32>
    %40 = tpu.matmul %38, %39, %cst_27 {dimension_numbers = #tpu.dot_dimension_numbers<[1], [0], [0], [1], [0, 0, 1, 1], [], []>} : vector<16x32xf32>, vector<32x128xf32>, vector<16x128xf32> -> vector<16x128xf32>
    %c1_28 = arith.constant 1 : index
    %c0_29 = arith.constant 0 : index
    %c0_30 = arith.constant 0 : index
    %41 = vector.load %arg3[%c1_28, %c0_29, %c0_30] : memref<5x16x32xf32, #tpu.memory_space<vmem>>, vector<1x16x32xf32>
    %42 = vector.shape_cast %41 : vector<1x16x32xf32> to vector<16x32xf32>
    %43 = vector.extract_strided_slice %36 {offsets = [0, 1], sizes = [32, 128], strides = [1, 1]} : vector<32x132xf32> to vector<32x128xf32>
    %cst_31 = arith.constant dense<0.000000e+00> : vector<16x128xf32>
    %44 = tpu.matmul %42, %43, %cst_31 {dimension_numbers = #tpu.dot_dimension_numbers<[1], [0], [0], [1], [0, 0, 1, 1], [], []>} : vector<16x32xf32>, vector<32x128xf32>, vector<16x128xf32> -> vector<16x128xf32>
    %45 = arith.addf %40, %44 : vector<16x128xf32>
    %c2_32 = arith.constant 2 : index
    %c0_33 = arith.constant 0 : index
    %c0_34 = arith.constant 0 : index
    %46 = vector.load %arg3[%c2_32, %c0_33, %c0_34] : memref<5x16x32xf32, #tpu.memory_space<vmem>>, vector<1x16x32xf32>
    %47 = vector.shape_cast %46 : vector<1x16x32xf32> to vector<16x32xf32>
    %48 = vector.extract_strided_slice %36 {offsets = [0, 2], sizes = [32, 128], strides = [1, 1]} : vector<32x132xf32> to vector<32x128xf32>
    %cst_35 = arith.constant dense<0.000000e+00> : vector<16x128xf32>
    %49 = tpu.matmul %47, %48, %cst_35 {dimension_numbers = #tpu.dot_dimension_numbers<[1], [0], [0], [1], [0, 0, 1, 1], [], []>} : vector<16x32xf32>, vector<32x128xf32>, vector<16x128xf32> -> vector<16x128xf32>
    %50 = arith.addf %45, %49 : vector<16x128xf32>
    %c3_36 = arith.constant 3 : index
    %c0_37 = arith.constant 0 : index
    %c0_38 = arith.constant 0 : index
    %51 = vector.load %arg3[%c3_36, %c0_37, %c0_38] : memref<5x16x32xf32, #tpu.memory_space<vmem>>, vector<1x16x32xf32>
    %52 = vector.shape_cast %51 : vector<1x16x32xf32> to vector<16x32xf32>
    %53 = vector.extract_strided_slice %36 {offsets = [0, 3], sizes = [32, 128], strides = [1, 1]} : vector<32x132xf32> to vector<32x128xf32>
    %cst_39 = arith.constant dense<0.000000e+00> : vector<16x128xf32>
    %54 = tpu.matmul %52, %53, %cst_39 {dimension_numbers = #tpu.dot_dimension_numbers<[1], [0], [0], [1], [0, 0, 1, 1], [], []>} : vector<16x32xf32>, vector<32x128xf32>, vector<16x128xf32> -> vector<16x128xf32>
    %55 = arith.addf %50, %54 : vector<16x128xf32>
    %c4_40 = arith.constant 4 : index
    %c0_41 = arith.constant 0 : index
    %c0_42 = arith.constant 0 : index
    %56 = vector.load %arg3[%c4_40, %c0_41, %c0_42] : memref<5x16x32xf32, #tpu.memory_space<vmem>>, vector<1x16x32xf32>
    %57 = vector.shape_cast %56 : vector<1x16x32xf32> to vector<16x32xf32>
    %58 = vector.extract_strided_slice %36 {offsets = [0, 4], sizes = [32, 128], strides = [1, 1]} : vector<32x132xf32> to vector<32x128xf32>
    %cst_43 = arith.constant dense<0.000000e+00> : vector<16x128xf32>
    %59 = tpu.matmul %57, %58, %cst_43 {dimension_numbers = #tpu.dot_dimension_numbers<[1], [0], [0], [1], [0, 0, 1, 1], [], []>} : vector<16x32xf32>, vector<32x128xf32>, vector<16x128xf32> -> vector<16x128xf32>
    %60 = arith.addf %55, %59 : vector<16x128xf32>
    %61 = vector.extract_strided_slice %5 {offsets = [32, 0], sizes = [16, 128], strides = [1, 1]} : vector<64x128xf32> to vector<16x128xf32>
    %62 = tpu.concatenate %61, %60 in 0 : vector<16x128xf32>, vector<16x128xf32> -> vector<32x128xf32>
    %cst_44 = arith.constant 0.000000e+00 : f32
    %63 = vector.broadcast %cst_44 : f32 to vector<32x2xf32>
    %64 = tpu.concatenate %63, %62, %63 in 1 : vector<32x2xf32>, vector<32x128xf32>, vector<32x2xf32> -> vector<32x132xf32>
    %c0_45 = arith.constant 0 : index
    %c0_46 = arith.constant 0 : index
    %c0_47 = arith.constant 0 : index
    %65 = vector.load %arg4[%c0_45, %c0_46, %c0_47] : memref<5x16x32xf32, #tpu.memory_space<vmem>>, vector<1x16x32xf32>
    %66 = vector.shape_cast %65 : vector<1x16x32xf32> to vector<16x32xf32>
    %67 = vector.extract_strided_slice %64 {offsets = [0, 0], sizes = [32, 128], strides = [1, 1]} : vector<32x132xf32> to vector<32x128xf32>
    %cst_48 = arith.constant dense<0.000000e+00> : vector<16x128xf32>
    %68 = tpu.matmul %66, %67, %cst_48 {dimension_numbers = #tpu.dot_dimension_numbers<[1], [0], [0], [1], [0, 0, 1, 1], [], []>} : vector<16x32xf32>, vector<32x128xf32>, vector<16x128xf32> -> vector<16x128xf32>
    %c1_49 = arith.constant 1 : index
    %c0_50 = arith.constant 0 : index
    %c0_51 = arith.constant 0 : index
    %69 = vector.load %arg4[%c1_49, %c0_50, %c0_51] : memref<5x16x32xf32, #tpu.memory_space<vmem>>, vector<1x16x32xf32>
    %70 = vector.shape_cast %69 : vector<1x16x32xf32> to vector<16x32xf32>
    %71 = vector.extract_strided_slice %64 {offsets = [0, 1], sizes = [32, 128], strides = [1, 1]} : vector<32x132xf32> to vector<32x128xf32>
    %cst_52 = arith.constant dense<0.000000e+00> : vector<16x128xf32>
    %72 = tpu.matmul %70, %71, %cst_52 {dimension_numbers = #tpu.dot_dimension_numbers<[1], [0], [0], [1], [0, 0, 1, 1], [], []>} : vector<16x32xf32>, vector<32x128xf32>, vector<16x128xf32> -> vector<16x128xf32>
    %73 = arith.addf %68, %72 : vector<16x128xf32>
    %c2_53 = arith.constant 2 : index
    %c0_54 = arith.constant 0 : index
    %c0_55 = arith.constant 0 : index
    %74 = vector.load %arg4[%c2_53, %c0_54, %c0_55] : memref<5x16x32xf32, #tpu.memory_space<vmem>>, vector<1x16x32xf32>
    %75 = vector.shape_cast %74 : vector<1x16x32xf32> to vector<16x32xf32>
    %76 = vector.extract_strided_slice %64 {offsets = [0, 2], sizes = [32, 128], strides = [1, 1]} : vector<32x132xf32> to vector<32x128xf32>
    %cst_56 = arith.constant dense<0.000000e+00> : vector<16x128xf32>
    %77 = tpu.matmul %75, %76, %cst_56 {dimension_numbers = #tpu.dot_dimension_numbers<[1], [0], [0], [1], [0, 0, 1, 1], [], []>} : vector<16x32xf32>, vector<32x128xf32>, vector<16x128xf32> -> vector<16x128xf32>
    %78 = arith.addf %73, %77 : vector<16x128xf32>
    %c3_57 = arith.constant 3 : index
    %c0_58 = arith.constant 0 : index
    %c0_59 = arith.constant 0 : index
    %79 = vector.load %arg4[%c3_57, %c0_58, %c0_59] : memref<5x16x32xf32, #tpu.memory_space<vmem>>, vector<1x16x32xf32>
    %80 = vector.shape_cast %79 : vector<1x16x32xf32> to vector<16x32xf32>
    %81 = vector.extract_strided_slice %64 {offsets = [0, 3], sizes = [32, 128], strides = [1, 1]} : vector<32x132xf32> to vector<32x128xf32>
    %cst_60 = arith.constant dense<0.000000e+00> : vector<16x128xf32>
    %82 = tpu.matmul %80, %81, %cst_60 {dimension_numbers = #tpu.dot_dimension_numbers<[1], [0], [0], [1], [0, 0, 1, 1], [], []>} : vector<16x32xf32>, vector<32x128xf32>, vector<16x128xf32> -> vector<16x128xf32>
    %83 = arith.addf %78, %82 : vector<16x128xf32>
    %c4_61 = arith.constant 4 : index
    %c0_62 = arith.constant 0 : index
    %c0_63 = arith.constant 0 : index
    %84 = vector.load %arg4[%c4_61, %c0_62, %c0_63] : memref<5x16x32xf32, #tpu.memory_space<vmem>>, vector<1x16x32xf32>
    %85 = vector.shape_cast %84 : vector<1x16x32xf32> to vector<16x32xf32>
    %86 = vector.extract_strided_slice %64 {offsets = [0, 4], sizes = [32, 128], strides = [1, 1]} : vector<32x132xf32> to vector<32x128xf32>
    %cst_64 = arith.constant dense<0.000000e+00> : vector<16x128xf32>
    %87 = tpu.matmul %85, %86, %cst_64 {dimension_numbers = #tpu.dot_dimension_numbers<[1], [0], [0], [1], [0, 0, 1, 1], [], []>} : vector<16x32xf32>, vector<32x128xf32>, vector<16x128xf32> -> vector<16x128xf32>
    %88 = arith.addf %83, %87 : vector<16x128xf32>
    %89 = vector.extract_strided_slice %5 {offsets = [48, 0], sizes = [16, 128], strides = [1, 1]} : vector<64x128xf32> to vector<16x128xf32>
    %90 = tpu.concatenate %89, %88 in 0 : vector<16x128xf32>, vector<16x128xf32> -> vector<32x128xf32>
    %cst_65 = arith.constant 0.000000e+00 : f32
    %91 = vector.broadcast %cst_65 : f32 to vector<32x2xf32>
    %92 = tpu.concatenate %91, %90, %91 in 1 : vector<32x2xf32>, vector<32x128xf32>, vector<32x2xf32> -> vector<32x132xf32>
    %c0_66 = arith.constant 0 : index
    %c0_67 = arith.constant 0 : index
    %c0_68 = arith.constant 0 : index
    %93 = vector.load %arg5[%c0_66, %c0_67, %c0_68] : memref<5x16x32xf32, #tpu.memory_space<vmem>>, vector<1x16x32xf32>
    %94 = vector.shape_cast %93 : vector<1x16x32xf32> to vector<16x32xf32>
    %95 = vector.extract_strided_slice %92 {offsets = [0, 0], sizes = [32, 128], strides = [1, 1]} : vector<32x132xf32> to vector<32x128xf32>
    %cst_69 = arith.constant dense<0.000000e+00> : vector<16x128xf32>
    %96 = tpu.matmul %94, %95, %cst_69 {dimension_numbers = #tpu.dot_dimension_numbers<[1], [0], [0], [1], [0, 0, 1, 1], [], []>} : vector<16x32xf32>, vector<32x128xf32>, vector<16x128xf32> -> vector<16x128xf32>
    %c1_70 = arith.constant 1 : index
    %c0_71 = arith.constant 0 : index
    %c0_72 = arith.constant 0 : index
    %97 = vector.load %arg5[%c1_70, %c0_71, %c0_72] : memref<5x16x32xf32, #tpu.memory_space<vmem>>, vector<1x16x32xf32>
    %98 = vector.shape_cast %97 : vector<1x16x32xf32> to vector<16x32xf32>
    %99 = vector.extract_strided_slice %92 {offsets = [0, 1], sizes = [32, 128], strides = [1, 1]} : vector<32x132xf32> to vector<32x128xf32>
    %cst_73 = arith.constant dense<0.000000e+00> : vector<16x128xf32>
    %100 = tpu.matmul %98, %99, %cst_73 {dimension_numbers = #tpu.dot_dimension_numbers<[1], [0], [0], [1], [0, 0, 1, 1], [], []>} : vector<16x32xf32>, vector<32x128xf32>, vector<16x128xf32> -> vector<16x128xf32>
    %101 = arith.addf %96, %100 : vector<16x128xf32>
    %c2_74 = arith.constant 2 : index
    %c0_75 = arith.constant 0 : index
    %c0_76 = arith.constant 0 : index
    %102 = vector.load %arg5[%c2_74, %c0_75, %c0_76] : memref<5x16x32xf32, #tpu.memory_space<vmem>>, vector<1x16x32xf32>
    %103 = vector.shape_cast %102 : vector<1x16x32xf32> to vector<16x32xf32>
    %104 = vector.extract_strided_slice %92 {offsets = [0, 2], sizes = [32, 128], strides = [1, 1]} : vector<32x132xf32> to vector<32x128xf32>
    %cst_77 = arith.constant dense<0.000000e+00> : vector<16x128xf32>
    %105 = tpu.matmul %103, %104, %cst_77 {dimension_numbers = #tpu.dot_dimension_numbers<[1], [0], [0], [1], [0, 0, 1, 1], [], []>} : vector<16x32xf32>, vector<32x128xf32>, vector<16x128xf32> -> vector<16x128xf32>
    %106 = arith.addf %101, %105 : vector<16x128xf32>
    %c3_78 = arith.constant 3 : index
    %c0_79 = arith.constant 0 : index
    %c0_80 = arith.constant 0 : index
    %107 = vector.load %arg5[%c3_78, %c0_79, %c0_80] : memref<5x16x32xf32, #tpu.memory_space<vmem>>, vector<1x16x32xf32>
    %108 = vector.shape_cast %107 : vector<1x16x32xf32> to vector<16x32xf32>
    %109 = vector.extract_strided_slice %92 {offsets = [0, 3], sizes = [32, 128], strides = [1, 1]} : vector<32x132xf32> to vector<32x128xf32>
    %cst_81 = arith.constant dense<0.000000e+00> : vector<16x128xf32>
    %110 = tpu.matmul %108, %109, %cst_81 {dimension_numbers = #tpu.dot_dimension_numbers<[1], [0], [0], [1], [0, 0, 1, 1], [], []>} : vector<16x32xf32>, vector<32x128xf32>, vector<16x128xf32> -> vector<16x128xf32>
    %111 = arith.addf %106, %110 : vector<16x128xf32>
    %c4_82 = arith.constant 4 : index
    %c0_83 = arith.constant 0 : index
    %c0_84 = arith.constant 0 : index
    %112 = vector.load %arg5[%c4_82, %c0_83, %c0_84] : memref<5x16x32xf32, #tpu.memory_space<vmem>>, vector<1x16x32xf32>
    %113 = vector.shape_cast %112 : vector<1x16x32xf32> to vector<16x32xf32>
    %114 = vector.extract_strided_slice %92 {offsets = [0, 4], sizes = [32, 128], strides = [1, 1]} : vector<32x132xf32> to vector<32x128xf32>
    %cst_85 = arith.constant dense<0.000000e+00> : vector<16x128xf32>
    %115 = tpu.matmul %113, %114, %cst_85 {dimension_numbers = #tpu.dot_dimension_numbers<[1], [0], [0], [1], [0, 0, 1, 1], [], []>} : vector<16x32xf32>, vector<32x128xf32>, vector<16x128xf32> -> vector<16x128xf32>
    %116 = arith.addf %111, %115 : vector<16x128xf32>
    %117 = tpu.concatenate %32, %60, %88, %116 in 0 : vector<16x128xf32>, vector<16x128xf32>, vector<16x128xf32>, vector<16x128xf32> -> vector<64x128xf32>
    %c0_86 = arith.constant 0 : index
    %c0_87 = arith.constant 0 : index
    %c0_88 = arith.constant 0 : index
    %118 = vector.load %arg8[%c0_86, %c0_87, %c0_88] : memref<2x64x128xf32, #tpu.memory_space<vmem>>, vector<1x64x128xf32>
    %119 = vector.shape_cast %118 : vector<1x64x128xf32> to vector<64x128xf32>
    %120 = vector.shape_cast %117 : vector<64x128xf32> to vector<1x64x128xf32>
    tpu.vector_store %arg8[%c0_86, %c0_87, %c0_88], %120 {strides = array<i32>} : memref<2x64x128xf32, #tpu.memory_space<vmem>>, vector<1x64x128xf32>,
    %cst_89 = arith.constant dense<0.000000e+00> : vector<64xf32>
    %121 = vector.multi_reduction <add>, %117, %cst_89 [1] : vector<64x128xf32> to vector<64xf32>
    %122 = vector.shape_cast %121 : vector<64xf32> to vector<64x1xf32>
    %123 = arith.addf %0, %122 : vector<64x1xf32>
    %124 = arith.mulf %117, %117 : vector<64x128xf32>
    %cst_90 = arith.constant dense<0.000000e+00> : vector<64xf32>
    %125 = vector.multi_reduction <add>, %124, %cst_90 [1] : vector<64x128xf32> to vector<64xf32>
    %126 = vector.shape_cast %125 : vector<64xf32> to vector<64x1xf32>
    %127 = arith.addf %1, %126 : vector<64x1xf32>
    %c0_91 = arith.constant 0 : index
    %c0_92 = arith.constant 0 : index
    %128 = vector.load %arg1[%c0_91, %c0_92] : memref<64x32xf32, #tpu.memory_space<vmem>>, vector<64x32xf32>
    %c1_93 = arith.constant 1 : index
    %c0_94 = arith.constant 0 : index
    %c0_95 = arith.constant 0 : index
    %129 = vector.load %arg0[%c1_93, %c0_94, %c0_95] : memref<2x32x128xf32, #tpu.memory_space<vmem>>, vector<1x32x128xf32>
    %130 = vector.shape_cast %129 : vector<1x32x128xf32> to vector<32x128xf32>
    %cst_96 = arith.constant dense<0.000000e+00> : vector<64x128xf32>
    %131 = tpu.matmul %128, %130, %cst_96 {dimension_numbers = #tpu.dot_dimension_numbers<[1], [0], [0], [1], [0, 0, 1, 1], [], []>} : vector<64x32xf32>, vector<32x128xf32>, vector<64x128xf32> -> vector<64x128xf32>
    %132 = vector.extract_strided_slice %131 {offsets = [0, 0], sizes = [16, 128], strides = [1, 1]} : vector<64x128xf32> to vector<16x128xf32>
    %cst_97 = arith.constant 0.000000e+00 : f32
    %133 = vector.broadcast %cst_97 : f32 to vector<16x2xf32>
    %134 = tpu.concatenate %133, %132, %133 in 1 : vector<16x2xf32>, vector<16x128xf32>, vector<16x2xf32> -> vector<16x132xf32>
    %c0_98 = arith.constant 0 : index
    %c0_99 = arith.constant 0 : index
    %c0_100 = arith.constant 0 : index
    %135 = vector.load %arg2[%c0_98, %c0_99, %c0_100] : memref<5x16x16xf32, #tpu.memory_space<vmem>>, vector<1x16x16xf32>
    %136 = vector.shape_cast %135 : vector<1x16x16xf32> to vector<16x16xf32>
    %137 = vector.extract_strided_slice %134 {offsets = [0, 0], sizes = [16, 128], strides = [1, 1]} : vector<16x132xf32> to vector<16x128xf32>
    %cst_101 = arith.constant dense<0.000000e+00> : vector<16x128xf32>
    %138 = tpu.matmul %136, %137, %cst_101 {dimension_numbers = #tpu.dot_dimension_numbers<[1], [0], [0], [1], [0, 0, 1, 1], [], []>} : vector<16x16xf32>, vector<16x128xf32>, vector<16x128xf32> -> vector<16x128xf32>
    %c1_102 = arith.constant 1 : index
    %c0_103 = arith.constant 0 : index
    %c0_104 = arith.constant 0 : index
    %139 = vector.load %arg2[%c1_102, %c0_103, %c0_104] : memref<5x16x16xf32, #tpu.memory_space<vmem>>, vector<1x16x16xf32>
    %140 = vector.shape_cast %139 : vector<1x16x16xf32> to vector<16x16xf32>
    %141 = vector.extract_strided_slice %134 {offsets = [0, 1], sizes = [16, 128], strides = [1, 1]} : vector<16x132xf32> to vector<16x128xf32>
    %cst_105 = arith.constant dense<0.000000e+00> : vector<16x128xf32>
    %142 = tpu.matmul %140, %141, %cst_105 {dimension_numbers = #tpu.dot_dimension_numbers<[1], [0], [0], [1], [0, 0, 1, 1], [], []>} : vector<16x16xf32>, vector<16x128xf32>, vector<16x128xf32> -> vector<16x128xf32>
    %143 = arith.addf %138, %142 : vector<16x128xf32>
    %c2_106 = arith.constant 2 : index
    %c0_107 = arith.constant 0 : index
    %c0_108 = arith.constant 0 : index
    %144 = vector.load %arg2[%c2_106, %c0_107, %c0_108] : memref<5x16x16xf32, #tpu.memory_space<vmem>>, vector<1x16x16xf32>
    %145 = vector.shape_cast %144 : vector<1x16x16xf32> to vector<16x16xf32>
    %146 = vector.extract_strided_slice %134 {offsets = [0, 2], sizes = [16, 128], strides = [1, 1]} : vector<16x132xf32> to vector<16x128xf32>
    %cst_109 = arith.constant dense<0.000000e+00> : vector<16x128xf32>
    %147 = tpu.matmul %145, %146, %cst_109 {dimension_numbers = #tpu.dot_dimension_numbers<[1], [0], [0], [1], [0, 0, 1, 1], [], []>} : vector<16x16xf32>, vector<16x128xf32>, vector<16x128xf32> -> vector<16x128xf32>
    %148 = arith.addf %143, %147 : vector<16x128xf32>
    %c3_110 = arith.constant 3 : index
    %c0_111 = arith.constant 0 : index
    %c0_112 = arith.constant 0 : index
    %149 = vector.load %arg2[%c3_110, %c0_111, %c0_112] : memref<5x16x16xf32, #tpu.memory_space<vmem>>, vector<1x16x16xf32>
    %150 = vector.shape_cast %149 : vector<1x16x16xf32> to vector<16x16xf32>
    %151 = vector.extract_strided_slice %134 {offsets = [0, 3], sizes = [16, 128], strides = [1, 1]} : vector<16x132xf32> to vector<16x128xf32>
    %cst_113 = arith.constant dense<0.000000e+00> : vector<16x128xf32>
    %152 = tpu.matmul %150, %151, %cst_113 {dimension_numbers = #tpu.dot_dimension_numbers<[1], [0], [0], [1], [0, 0, 1, 1], [], []>} : vector<16x16xf32>, vector<16x128xf32>, vector<16x128xf32> -> vector<16x128xf32>
    %153 = arith.addf %148, %152 : vector<16x128xf32>
    %c4_114 = arith.constant 4 : index
    %c0_115 = arith.constant 0 : index
    %c0_116 = arith.constant 0 : index
    %154 = vector.load %arg2[%c4_114, %c0_115, %c0_116] : memref<5x16x16xf32, #tpu.memory_space<vmem>>, vector<1x16x16xf32>
    %155 = vector.shape_cast %154 : vector<1x16x16xf32> to vector<16x16xf32>
    %156 = vector.extract_strided_slice %134 {offsets = [0, 4], sizes = [16, 128], strides = [1, 1]} : vector<16x132xf32> to vector<16x128xf32>
    %cst_117 = arith.constant dense<0.000000e+00> : vector<16x128xf32>
    %157 = tpu.matmul %155, %156, %cst_117 {dimension_numbers = #tpu.dot_dimension_numbers<[1], [0], [0], [1], [0, 0, 1, 1], [], []>} : vector<16x16xf32>, vector<16x128xf32>, vector<16x128xf32> -> vector<16x128xf32>
    %158 = arith.addf %153, %157 : vector<16x128xf32>
    %159 = vector.extract_strided_slice %131 {offsets = [16, 0], sizes = [16, 128], strides = [1, 1]} : vector<64x128xf32> to vector<16x128xf32>
    %160 = tpu.concatenate %159, %158 in 0 : vector<16x128xf32>, vector<16x128xf32> -> vector<32x128xf32>
    %cst_118 = arith.constant 0.000000e+00 : f32
    %161 = vector.broadcast %cst_118 : f32 to vector<32x2xf32>
    %162 = tpu.concatenate %161, %160, %161 in 1 : vector<32x2xf32>, vector<32x128xf32>, vector<32x2xf32> -> vector<32x132xf32>
    %c0_119 = arith.constant 0 : index
    %c0_120 = arith.constant 0 : index
    %c0_121 = arith.constant 0 : index
    %163 = vector.load %arg3[%c0_119, %c0_120, %c0_121] : memref<5x16x32xf32, #tpu.memory_space<vmem>>, vector<1x16x32xf32>
    %164 = vector.shape_cast %163 : vector<1x16x32xf32> to vector<16x32xf32>
    %165 = vector.extract_strided_slice %162 {offsets = [0, 0], sizes = [32, 128], strides = [1, 1]} : vector<32x132xf32> to vector<32x128xf32>
    %cst_122 = arith.constant dense<0.000000e+00> : vector<16x128xf32>
    %166 = tpu.matmul %164, %165, %cst_122 {dimension_numbers = #tpu.dot_dimension_numbers<[1], [0], [0], [1], [0, 0, 1, 1], [], []>} : vector<16x32xf32>, vector<32x128xf32>, vector<16x128xf32> -> vector<16x128xf32>
    %c1_123 = arith.constant 1 : index
    %c0_124 = arith.constant 0 : index
    %c0_125 = arith.constant 0 : index
    %167 = vector.load %arg3[%c1_123, %c0_124, %c0_125] : memref<5x16x32xf32, #tpu.memory_space<vmem>>, vector<1x16x32xf32>
    %168 = vector.shape_cast %167 : vector<1x16x32xf32> to vector<16x32xf32>
    %169 = vector.extract_strided_slice %162 {offsets = [0, 1], sizes = [32, 128], strides = [1, 1]} : vector<32x132xf32> to vector<32x128xf32>
    %cst_126 = arith.constant dense<0.000000e+00> : vector<16x128xf32>
    %170 = tpu.matmul %168, %169, %cst_126 {dimension_numbers = #tpu.dot_dimension_numbers<[1], [0], [0], [1], [0, 0, 1, 1], [], []>} : vector<16x32xf32>, vector<32x128xf32>, vector<16x128xf32> -> vector<16x128xf32>
    %171 = arith.addf %166, %170 : vector<16x128xf32>
    %c2_127 = arith.constant 2 : index
    %c0_128 = arith.constant 0 : index
    %c0_129 = arith.constant 0 : index
    %172 = vector.load %arg3[%c2_127, %c0_128, %c0_129] : memref<5x16x32xf32, #tpu.memory_space<vmem>>, vector<1x16x32xf32>
    %173 = vector.shape_cast %172 : vector<1x16x32xf32> to vector<16x32xf32>
    %174 = vector.extract_strided_slice %162 {offsets = [0, 2], sizes = [32, 128], strides = [1, 1]} : vector<32x132xf32> to vector<32x128xf32>
    %cst_130 = arith.constant dense<0.000000e+00> : vector<16x128xf32>
    %175 = tpu.matmul %173, %174, %cst_130 {dimension_numbers = #tpu.dot_dimension_numbers<[1], [0], [0], [1], [0, 0, 1, 1], [], []>} : vector<16x32xf32>, vector<32x128xf32>, vector<16x128xf32> -> vector<16x128xf32>
    %176 = arith.addf %171, %175 : vector<16x128xf32>
    %c3_131 = arith.constant 3 : index
    %c0_132 = arith.constant 0 : index
    %c0_133 = arith.constant 0 : index
    %177 = vector.load %arg3[%c3_131, %c0_132, %c0_133] : memref<5x16x32xf32, #tpu.memory_space<vmem>>, vector<1x16x32xf32>
    %178 = vector.shape_cast %177 : vector<1x16x32xf32> to vector<16x32xf32>
    %179 = vector.extract_strided_slice %162 {offsets = [0, 3], sizes = [32, 128], strides = [1, 1]} : vector<32x132xf32> to vector<32x128xf32>
    %cst_134 = arith.constant dense<0.000000e+00> : vector<16x128xf32>
    %180 = tpu.matmul %178, %179, %cst_134 {dimension_numbers = #tpu.dot_dimension_numbers<[1], [0], [0], [1], [0, 0, 1, 1], [], []>} : vector<16x32xf32>, vector<32x128xf32>, vector<16x128xf32> -> vector<16x128xf32>
    %181 = arith.addf %176, %180 : vector<16x128xf32>
    %c4_135 = arith.constant 4 : index
    %c0_136 = arith.constant 0 : index
    %c0_137 = arith.constant 0 : index
    %182 = vector.load %arg3[%c4_135, %c0_136, %c0_137] : memref<5x16x32xf32, #tpu.memory_space<vmem>>, vector<1x16x32xf32>
    %183 = vector.shape_cast %182 : vector<1x16x32xf32> to vector<16x32xf32>
    %184 = vector.extract_strided_slice %162 {offsets = [0, 4], sizes = [32, 128], strides = [1, 1]} : vector<32x132xf32> to vector<32x128xf32>
    %cst_138 = arith.constant dense<0.000000e+00> : vector<16x128xf32>
    %185 = tpu.matmul %183, %184, %cst_138 {dimension_numbers = #tpu.dot_dimension_numbers<[1], [0], [0], [1], [0, 0, 1, 1], [], []>} : vector<16x32xf32>, vector<32x128xf32>, vector<16x128xf32> -> vector<16x128xf32>
    %186 = arith.addf %181, %185 : vector<16x128xf32>
    %187 = vector.extract_strided_slice %131 {offsets = [32, 0], sizes = [16, 128], strides = [1, 1]} : vector<64x128xf32> to vector<16x128xf32>
    %188 = tpu.concatenate %187, %186 in 0 : vector<16x128xf32>, vector<16x128xf32> -> vector<32x128xf32>
    %cst_139 = arith.constant 0.000000e+00 : f32
    %189 = vector.broadcast %cst_139 : f32 to vector<32x2xf32>
    %190 = tpu.concatenate %189, %188, %189 in 1 : vector<32x2xf32>, vector<32x128xf32>, vector<32x2xf32> -> vector<32x132xf32>
    %c0_140 = arith.constant 0 : index
    %c0_141 = arith.constant 0 : index
    %c0_142 = arith.constant 0 : index
    %191 = vector.load %arg4[%c0_140, %c0_141, %c0_142] : memref<5x16x32xf32, #tpu.memory_space<vmem>>, vector<1x16x32xf32>
    %192 = vector.shape_cast %191 : vector<1x16x32xf32> to vector<16x32xf32>
    %193 = vector.extract_strided_slice %190 {offsets = [0, 0], sizes = [32, 128], strides = [1, 1]} : vector<32x132xf32> to vector<32x128xf32>
    %cst_143 = arith.constant dense<0.000000e+00> : vector<16x128xf32>
    %194 = tpu.matmul %192, %193, %cst_143 {dimension_numbers = #tpu.dot_dimension_numbers<[1], [0], [0], [1], [0, 0, 1, 1], [], []>} : vector<16x32xf32>, vector<32x128xf32>, vector<16x128xf32> -> vector<16x128xf32>
    %c1_144 = arith.constant 1 : index
    %c0_145 = arith.constant 0 : index
    %c0_146 = arith.constant 0 : index
    %195 = vector.load %arg4[%c1_144, %c0_145, %c0_146] : memref<5x16x32xf32, #tpu.memory_space<vmem>>, vector<1x16x32xf32>
    %196 = vector.shape_cast %195 : vector<1x16x32xf32> to vector<16x32xf32>
    %197 = vector.extract_strided_slice %190 {offsets = [0, 1], sizes = [32, 128], strides = [1, 1]} : vector<32x132xf32> to vector<32x128xf32>
    %cst_147 = arith.constant dense<0.000000e+00> : vector<16x128xf32>
    %198 = tpu.matmul %196, %197, %cst_147 {dimension_numbers = #tpu.dot_dimension_numbers<[1], [0], [0], [1], [0, 0, 1, 1], [], []>} : vector<16x32xf32>, vector<32x128xf32>, vector<16x128xf32> -> vector<16x128xf32>
    %199 = arith.addf %194, %198 : vector<16x128xf32>
    %c2_148 = arith.constant 2 : index
    %c0_149 = arith.constant 0 : index
    %c0_150 = arith.constant 0 : index
    %200 = vector.load %arg4[%c2_148, %c0_149, %c0_150] : memref<5x16x32xf32, #tpu.memory_space<vmem>>, vector<1x16x32xf32>
    %201 = vector.shape_cast %200 : vector<1x16x32xf32> to vector<16x32xf32>
    %202 = vector.extract_strided_slice %190 {offsets = [0, 2], sizes = [32, 128], strides = [1, 1]} : vector<32x132xf32> to vector<32x128xf32>
    %cst_151 = arith.constant dense<0.000000e+00> : vector<16x128xf32>
    %203 = tpu.matmul %201, %202, %cst_151 {dimension_numbers = #tpu.dot_dimension_numbers<[1], [0], [0], [1], [0, 0, 1, 1], [], []>} : vector<16x32xf32>, vector<32x128xf32>, vector<16x128xf32> -> vector<16x128xf32>
    %204 = arith.addf %199, %203 : vector<16x128xf32>
    %c3_152 = arith.constant 3 : index
    %c0_153 = arith.constant 0 : index
    %c0_154 = arith.constant 0 : index
    %205 = vector.load %arg4[%c3_152, %c0_153, %c0_154] : memref<5x16x32xf32, #tpu.memory_space<vmem>>, vector<1x16x32xf32>
    %206 = vector.shape_cast %205 : vector<1x16x32xf32> to vector<16x32xf32>
    %207 = vector.extract_strided_slice %190 {offsets = [0, 3], sizes = [32, 128], strides = [1, 1]} : vector<32x132xf32> to vector<32x128xf32>
    %cst_155 = arith.constant dense<0.000000e+00> : vector<16x128xf32>
    %208 = tpu.matmul %206, %207, %cst_155 {dimension_numbers = #tpu.dot_dimension_numbers<[1], [0], [0], [1], [0, 0, 1, 1], [], []>} : vector<16x32xf32>, vector<32x128xf32>, vector<16x128xf32> -> vector<16x128xf32>
    %209 = arith.addf %204, %208 : vector<16x128xf32>
    %c4_156 = arith.constant 4 : index
    %c0_157 = arith.constant 0 : index
    %c0_158 = arith.constant 0 : index
    %210 = vector.load %arg4[%c4_156, %c0_157, %c0_158] : memref<5x16x32xf32, #tpu.memory_space<vmem>>, vector<1x16x32xf32>
    %211 = vector.shape_cast %210 : vector<1x16x32xf32> to vector<16x32xf32>
    %212 = vector.extract_strided_slice %190 {offsets = [0, 4], sizes = [32, 128], strides = [1, 1]} : vector<32x132xf32> to vector<32x128xf32>
    %cst_159 = arith.constant dense<0.000000e+00> : vector<16x128xf32>
    %213 = tpu.matmul %211, %212, %cst_159 {dimension_numbers = #tpu.dot_dimension_numbers<[1], [0], [0], [1], [0, 0, 1, 1], [], []>} : vector<16x32xf32>, vector<32x128xf32>, vector<16x128xf32> -> vector<16x128xf32>
    %214 = arith.addf %209, %213 : vector<16x128xf32>
    %215 = vector.extract_strided_slice %131 {offsets = [48, 0], sizes = [16, 128], strides = [1, 1]} : vector<64x128xf32> to vector<16x128xf32>
    %216 = tpu.concatenate %215, %214 in 0 : vector<16x128xf32>, vector<16x128xf32> -> vector<32x128xf32>
    %cst_160 = arith.constant 0.000000e+00 : f32
    %217 = vector.broadcast %cst_160 : f32 to vector<32x2xf32>
    %218 = tpu.concatenate %217, %216, %217 in 1 : vector<32x2xf32>, vector<32x128xf32>, vector<32x2xf32> -> vector<32x132xf32>
    %c0_161 = arith.constant 0 : index
    %c0_162 = arith.constant 0 : index
    %c0_163 = arith.constant 0 : index
    %219 = vector.load %arg5[%c0_161, %c0_162, %c0_163] : memref<5x16x32xf32, #tpu.memory_space<vmem>>, vector<1x16x32xf32>
    %220 = vector.shape_cast %219 : vector<1x16x32xf32> to vector<16x32xf32>
    %221 = vector.extract_strided_slice %218 {offsets = [0, 0], sizes = [32, 128], strides = [1, 1]} : vector<32x132xf32> to vector<32x128xf32>
    %cst_164 = arith.constant dense<0.000000e+00> : vector<16x128xf32>
    %222 = tpu.matmul %220, %221, %cst_164 {dimension_numbers = #tpu.dot_dimension_numbers<[1], [0], [0], [1], [0, 0, 1, 1], [], []>} : vector<16x32xf32>, vector<32x128xf32>, vector<16x128xf32> -> vector<16x128xf32>
    %c1_165 = arith.constant 1 : index
    %c0_166 = arith.constant 0 : index
    %c0_167 = arith.constant 0 : index
    %223 = vector.load %arg5[%c1_165, %c0_166, %c0_167] : memref<5x16x32xf32, #tpu.memory_space<vmem>>, vector<1x16x32xf32>
    %224 = vector.shape_cast %223 : vector<1x16x32xf32> to vector<16x32xf32>
    %225 = vector.extract_strided_slice %218 {offsets = [0, 1], sizes = [32, 128], strides = [1, 1]} : vector<32x132xf32> to vector<32x128xf32>
    %cst_168 = arith.constant dense<0.000000e+00> : vector<16x128xf32>
    %226 = tpu.matmul %224, %225, %cst_168 {dimension_numbers = #tpu.dot_dimension_numbers<[1], [0], [0], [1], [0, 0, 1, 1], [], []>} : vector<16x32xf32>, vector<32x128xf32>, vector<16x128xf32> -> vector<16x128xf32>
    %227 = arith.addf %222, %226 : vector<16x128xf32>
    %c2_169 = arith.constant 2 : index
    %c0_170 = arith.constant 0 : index
    %c0_171 = arith.constant 0 : index
    %228 = vector.load %arg5[%c2_169, %c0_170, %c0_171] : memref<5x16x32xf32, #tpu.memory_space<vmem>>, vector<1x16x32xf32>
    %229 = vector.shape_cast %228 : vector<1x16x32xf32> to vector<16x32xf32>
    %230 = vector.extract_strided_slice %218 {offsets = [0, 2], sizes = [32, 128], strides = [1, 1]} : vector<32x132xf32> to vector<32x128xf32>
    %cst_172 = arith.constant dense<0.000000e+00> : vector<16x128xf32>
    %231 = tpu.matmul %229, %230, %cst_172 {dimension_numbers = #tpu.dot_dimension_numbers<[1], [0], [0], [1], [0, 0, 1, 1], [], []>} : vector<16x32xf32>, vector<32x128xf32>, vector<16x128xf32> -> vector<16x128xf32>
    %232 = arith.addf %227, %231 : vector<16x128xf32>
    %c3_173 = arith.constant 3 : index
    %c0_174 = arith.constant 0 : index
    %c0_175 = arith.constant 0 : index
    %233 = vector.load %arg5[%c3_173, %c0_174, %c0_175] : memref<5x16x32xf32, #tpu.memory_space<vmem>>, vector<1x16x32xf32>
    %234 = vector.shape_cast %233 : vector<1x16x32xf32> to vector<16x32xf32>
    %235 = vector.extract_strided_slice %218 {offsets = [0, 3], sizes = [32, 128], strides = [1, 1]} : vector<32x132xf32> to vector<32x128xf32>
    %cst_176 = arith.constant dense<0.000000e+00> : vector<16x128xf32>
    %236 = tpu.matmul %234, %235, %cst_176 {dimension_numbers = #tpu.dot_dimension_numbers<[1], [0], [0], [1], [0, 0, 1, 1], [], []>} : vector<16x32xf32>, vector<32x128xf32>, vector<16x128xf32> -> vector<16x128xf32>
    %237 = arith.addf %232, %236 : vector<16x128xf32>
    %c4_177 = arith.constant 4 : index
    %c0_178 = arith.constant 0 : index
    %c0_179 = arith.constant 0 : index
    %238 = vector.load %arg5[%c4_177, %c0_178, %c0_179] : memref<5x16x32xf32, #tpu.memory_space<vmem>>, vector<1x16x32xf32>
    %239 = vector.shape_cast %238 : vector<1x16x32xf32> to vector<16x32xf32>
    %240 = vector.extract_strided_slice %218 {offsets = [0, 4], sizes = [32, 128], strides = [1, 1]} : vector<32x132xf32> to vector<32x128xf32>
    %cst_180 = arith.constant dense<0.000000e+00> : vector<16x128xf32>
    %241 = tpu.matmul %239, %240, %cst_180 {dimension_numbers = #tpu.dot_dimension_numbers<[1], [0], [0], [1], [0, 0, 1, 1], [], []>} : vector<16x32xf32>, vector<32x128xf32>, vector<16x128xf32> -> vector<16x128xf32>
    %242 = arith.addf %237, %241 : vector<16x128xf32>
    %243 = tpu.concatenate %158, %186, %214, %242 in 0 : vector<16x128xf32>, vector<16x128xf32>, vector<16x128xf32>, vector<16x128xf32> -> vector<64x128xf32>
    %c1_181 = arith.constant 1 : index
    %c0_182 = arith.constant 0 : index
    %c0_183 = arith.constant 0 : index
    %244 = vector.load %arg8[%c1_181, %c0_182, %c0_183] : memref<2x64x128xf32, #tpu.memory_space<vmem>>, vector<1x64x128xf32>
    %245 = vector.shape_cast %244 : vector<1x64x128xf32> to vector<64x128xf32>
    %246 = vector.shape_cast %243 : vector<64x128xf32> to vector<1x64x128xf32>
    tpu.vector_store %arg8[%c1_181, %c0_182, %c0_183], %246 {strides = array<i32>} : memref<2x64x128xf32, #tpu.memory_space<vmem>>, vector<1x64x128xf32>,
    %cst_184 = arith.constant dense<0.000000e+00> : vector<64xf32>
    %247 = vector.multi_reduction <add>, %243, %cst_184 [1] : vector<64x128xf32> to vector<64xf32>
    %248 = vector.shape_cast %247 : vector<64xf32> to vector<64x1xf32>
    %249 = arith.addf %123, %248 : vector<64x1xf32>
    %250 = arith.mulf %243, %243 : vector<64x128xf32>
    %cst_185 = arith.constant dense<0.000000e+00> : vector<64xf32>
    %251 = vector.multi_reduction <add>, %250, %cst_185 [1] : vector<64x128xf32> to vector<64xf32>
    %252 = vector.shape_cast %251 : vector<64xf32> to vector<64x1xf32>
    %253 = arith.addf %127, %252 : vector<64x1xf32>
    %cst_186 = arith.constant 3.906250e-03 : f32
    %254 = vector.broadcast %cst_186 : f32 to vector<64x1xf32>
    %255 = arith.mulf %249, %254 : vector<64x1xf32>
    %cst_187 = arith.constant 3.906250e-03 : f32
    %256 = vector.broadcast %cst_187 : f32 to vector<64x1xf32>
    %257 = arith.mulf %253, %256 : vector<64x1xf32>
    %258 = arith.mulf %255, %255 : vector<64x1xf32>
    %259 = arith.subf %257, %258 : vector<64x1xf32>
    %c0_188 = arith.constant 0 : index
    %c0_189 = arith.constant 0 : index
    %260 = vector.load %arg6[%c0_188, %c0_189] : memref<64x1xf32, #tpu.memory_space<vmem>>, vector<64x1xf32>
    %cst_190 = arith.constant 9.99999974E-6 : f32
    %261 = vector.broadcast %cst_190 : f32 to vector<64x1xf32>
    %262 = arith.addf %259, %261 : vector<64x1xf32>
    %263 = math.rsqrt %262 : vector<64x1xf32>
    %264 = arith.mulf %260, %263 : vector<64x1xf32>
    %c0_191 = arith.constant 0 : index
    %c0_192 = arith.constant 0 : index
    %265 = vector.load %arg7[%c0_191, %c0_192] : memref<64x1xf32, #tpu.memory_space<vmem>>, vector<64x1xf32>
    %266 = arith.mulf %255, %264 : vector<64x1xf32>
    %267 = arith.subf %265, %266 : vector<64x1xf32>
    %c0_193 = arith.constant 0 : index
    %c0_194 = arith.constant 0 : index
    %c0_195 = arith.constant 0 : index
    %268 = vector.load %arg8[%c0_193, %c0_194, %c0_195] : memref<2x64x128xf32, #tpu.memory_space<vmem>>, vector<1x64x128xf32>
    %269 = vector.shape_cast %268 : vector<1x64x128xf32> to vector<64x128xf32>
    %270 = vector.broadcast %264 : vector<64x1xf32> to vector<64x128xf32>
    %271 = arith.mulf %269, %270 : vector<64x128xf32>
    %272 = vector.broadcast %267 : vector<64x1xf32> to vector<64x128xf32>
    %273 = arith.addf %271, %272 : vector<64x128xf32>
    %cst_196 = arith.constant 0.000000e+00 : f32
    %274 = vector.broadcast %cst_196 : f32 to vector<64x128xf32>
    %275 = arith.maximumf %273, %274 : vector<64x128xf32>
    %c0_197 = arith.constant 0 : index
    %c0_198 = arith.constant 0 : index
    %c0_199 = arith.constant 0 : index
    %276 = vector.load %arg8[%c0_197, %c0_198, %c0_199] : memref<2x64x128xf32, #tpu.memory_space<vmem>>, vector<1x64x128xf32>
    %277 = vector.shape_cast %276 : vector<1x64x128xf32> to vector<64x128xf32>
    %278 = vector.shape_cast %275 : vector<64x128xf32> to vector<1x64x128xf32>
    tpu.vector_store %arg8[%c0_197, %c0_198, %c0_199], %278 {strides = array<i32>} : memref<2x64x128xf32, #tpu.memory_space<vmem>>, vector<1x64x128xf32>,
    %c1_200 = arith.constant 1 : index
    %c0_201 = arith.constant 0 : index
    %c0_202 = arith.constant 0 : index
    %279 = vector.load %arg8[%c1_200, %c0_201, %c0_202] : memref<2x64x128xf32, #tpu.memory_space<vmem>>, vector<1x64x128xf32>
    %280 = vector.shape_cast %279 : vector<1x64x128xf32> to vector<64x128xf32>
    %281 = vector.broadcast %264 : vector<64x1xf32> to vector<64x128xf32>
    %282 = arith.mulf %280, %281 : vector<64x128xf32>
    %283 = vector.broadcast %267 : vector<64x1xf32> to vector<64x128xf32>
    %284 = arith.addf %282, %283 : vector<64x128xf32>
    %cst_203 = arith.constant 0.000000e+00 : f32
    %285 = vector.broadcast %cst_203 : f32 to vector<64x128xf32>
    %286 = arith.maximumf %284, %285 : vector<64x128xf32>
    %c1_204 = arith.constant 1 : index
    %c0_205 = arith.constant 0 : index
    %c0_206 = arith.constant 0 : index
    %287 = vector.load %arg8[%c1_204, %c0_205, %c0_206] : memref<2x64x128xf32, #tpu.memory_space<vmem>>, vector<1x64x128xf32>
    %288 = vector.shape_cast %287 : vector<1x64x128xf32> to vector<64x128xf32>
    %289 = vector.shape_cast %286 : vector<64x128xf32> to vector<1x64x128xf32>
    tpu.vector_store %arg8[%c1_204, %c0_205, %c0_206], %289 {strides = array<i32>} : memref<2x64x128xf32, #tpu.memory_space<vmem>>, vector<1x64x128xf32>,
    return
  }
}

</mosaic_0001>

<bundles_post_ra>
// kernel: mlmod1.1
= control target key start
LH: loop header
LB: loop body
LE: loop exit
PB: predicated region body
PF: predicated region fallthrough
CT: control target
= control target key end

     0   :  { %vm42_vm0 = vcmask 261120   ;;  %s8059_s0 = inlined_call_operand.vmem [shape: f32[2,32,128], index: 0, kind: input, shape index: {}]   ;;  %s8060_s1 = inlined_call_operand.vmem [shape: f32[64,32], index: 1, kind: input, shape index: {}]   ;;  %s8061_s2 = inlined_call_operand.vmem [shape: f32[5,16,16], index: 2, kind: input, shape index: {}]   ;;  %s8062_s3 = inlined_call_operand.vmem [shape: f32[5,16,32], index: 3, kind: input, shape index: {}]   ;;  %s8063_s4 = inlined_call_operand.vmem [shape: f32[5,16,32], index: 4, kind: input, shape index: {}]   ;;  %s8064_s5 = inlined_call_operand.vmem [shape: f32[5,16,32], index: 5, kind: input, shape index: {}]   ;;  %s8065_s6 = inlined_call_operand.vmem [shape: f32[64,1], index: 6, kind: input, shape index: {}]   ;;  %s8066_s7 = inlined_call_operand.vmem [shape: f32[64,1], index: 7, kind: input, shape index: {}]   ;;  %s8067_s8 = inlined_call_operand.hbm [shape: f32[2,64,128], index: 8, kind: output, shape index: {}]  }
   0x1   :  { %v38_v0 = vld [vmem:[%s8059_s0] sm:$0xff]  ;;  %v39_v1 = vld [vmem:[%s8059_s0 + $0x8] sm:$0xff]  ;;  %v40_v2 = vld [vmem:[%s8059_s0 + $0x10] sm:$0xff] }
   0x2   :  { %v5897_v3 = vpack.c.bf16 %v39_v1, %v38_v0  ;;  %v41_v4 = vld [vmem:[%s8059_s0 + $0x18] sm:$0xff]  ;;  %v7043_v5 = vld [vmem:[%s8060_s1] sm:$0xff] }
   0x3   :  { %v5901_v6 = vpack.c.bf16 %v41_v4, %v40_v2  ;;  %5465 = vmatprep.mubr.msk.f32.mxu1 %vm42_vm0, %v7043_v5 }
   0x4   :  { %13 = vsyncpa [#allocation3], 0  ;;  %5898 = vmatprep.subr.bf16.mxu1 %v5897_v3  ;;  %v7050_v7 = vld [vmem:[%s8060_s1 + $0x8] sm:$0xff]  ;;  %s6974_s17 = smov 2   ;;  %v7058_v11 = vld [vmem:[%s8060_s1 + $0x10] sm:$0xff]  ;;  %vm180_vm1 = vcmask 15360  }
   0x5   :  { %5900 = vmatpush3.bf16.msra.mxu1 %v5897_v3  ;;  %v7063_v12 = vld [vmem:[%s8060_s1 + $0x18] sm:$0xff]  ;;  %v7068_v13 = vld [vmem:[%s8060_s1 + $0x20] sm:$0xff]  ;;  %v7079_v14 = vld [vmem:[%s8060_s1 + $0x28] sm:$0xff]  ;;  %vm207_vm2 = vcmask 130048   ;;  %s6976_s10 = smov 126   ;;  %s6977_s11 = smov 125  }
   0x6   :  { %5902 = vmatprep.subr.bf16.mxu1 %v5901_v6  ;;  %v7084_v15 = vld [vmem:[%s8060_s1 + $0x30] sm:$0xff]  ;;  %v7093_v16 = vld [vmem:[%s8060_s1 + $0x38] sm:$0xff]  ;;  %s6975_s1 = smov 127   ;;  %s6978_s12 = smov 124   ;;  %vm202_vm3 = vcmask 1039360   ;;  %vm5005_vm4 = vmneg %vm180_vm1  ;;  %vm381_vm5 = vcmask 1031168  }
   0x7   :  { %v7100_v20 = vld [vmem:[%s8061_s2 + $0x10] sm:$0xff]  ;;  %vm7120_vm6 = vmpackc.low %vm5005_vm4, %vm5005_vm4  ;;  %v7127_v47 = vld [vmem:[%s8061_s2 + $0x18] sm:$0xff]  ;;  %vm480_vm7 = vcmask 1022976   ;;  %vm579_vm8 = vcmask 1014784  }
   0x8   :  { %v7136_v52 = vld [vmem:[%s8061_s2] sm:$0xff]  ;;  %v7147_v58 = vld [vmem:[%s8061_s2 + $0x8] sm:$0xff] }
   0x9   :  { %5904 = vmatpush3.bf16.msra.mxu1 %v5901_v6  ;;  %v7154_v63 = vld [vmem:[%s8061_s2 + $0x20] sm:$0xff]  ;;  %v7163_v6 = vld [vmem:[%s8061_s2 + $0x28] sm:$0xff] }
   0xc   :  { %5466 = vmatmul.mubr.msk.f32.vlgmr.msra.gmra.mrb[0].mxu1 %vm42_vm0, %v7050_v7 }
   0xd   :  { %5468 = vmatprep.mubr.msk.f32.mxu1 %vm42_vm0, %v7058_v11 }
  0x10   :  { %5469 = vmatmul.mubr.msk.f32.gmra.mrb[2].mxu1 %vm42_vm0, %v7063_v12 }
  0x11   :  { %5471 = vmatprep.mubr.msk.f32.mxu1 %vm42_vm0, %v7068_v13 }
  0x14   :  { %5472 = vmatmul.mubr.msk.f32.gmra.mrb[4].mxu1 %vm42_vm0, %v7079_v14 }
  0x15   :  { %5474 = vmatprep.mubr.msk.f32.mxu1 %vm42_vm0, %v7084_v15 }
  0x18   :  { %5475 = vmatmul.mubr.msk.f32.gmra.mrb[6].mxu1 %vm42_vm0, %v7093_v16 }
  0x19   :  { %5481 = vmatprep.mubr.msk.f32.mxu1 %vm207_vm2, %v7100_v20 }
  0xdf   :  { %v5467_v8 = vpop.f32.mrb[0].mxu1 }
  0xe0   :  { %v133_v9 = vpop.f32.mrb[1].mxu1 }
  0xe1   :  { %v6294_v10 = vpack.i.bf16 %v5467_v8, %v133_v9 }
  0xe3   :  { %6295 = vrot.lane.b32.xlu0 %v6294_v10, %s6974_s17  ;;  %v5470_v28 = vpop.f32.mrb[2].mxu1  ;;  %v7170_v10 = vld [vmem:[%s8061_s2 + $0x30] sm:$0xff] }
  0xe4   :  { %v143_v29 = vpop.f32.mrb[3].mxu1 }
  0xe5   :  { %v6339_v30 = vpack.i.bf16 %v5470_v28, %v143_v29 }
 0x155   :  { %v6296_v17 = vpop.permute.xlu0 %6295 }
 0x156   :  { %v6298_v18 = vunpack.i.h.bf16 %v6296_v17  ;;  %v6297_v19 = vunpack.i.l.bf16 %v6296_v17 }
 0x158   :  { %v182_v21 = vsel %vm180_vm1, 0.0, %v6298_v18  ;;  %v184_v22 = vsel %vm180_vm1, %v6298_v18, 0.0  ;;  %v181_v23 = vsel %vm180_vm1, 0.0, %v6297_v19  ;;  %v183_v24 = vsel %vm180_vm1, %v6297_v19, 0.0 }
 0x159   :  { %v6304_v25 = vpack.i.bf16 %v184_v22, %v182_v21  ;;  %v6299_v26 = vpack.i.bf16 %v183_v24, %v181_v23  ;;  %v5909_v27 = vpack.c.bf16 %v6298_v18, %v6297_v19  ;;  %v7179_v18 = vld [vmem:[%s8061_s2 + $0x38] sm:$0xff]  ;;  %v7184_v19 = vld [vmem:[%s8061_s2 + $0x40] sm:$0xff]  ;;  %v7193_v21 = vld [vmem:[%s8061_s2 + $0x48] sm:$0xff]  ;;  %v5473_v22 = vpop.f32.mrb[4].mxu1 }
 0x15a   :  { %v153_v23 = vpop.f32.mrb[5].mxu1 }
 0x15b   :  { %6305 = vrot.lane.b32.xlu1 %v6304_v25, %s6975_s1  ;;  %6300 = vrot.lane.b32.xlu0 %v6299_v26, %s6975_s1  ;;  %v6429_v24 = vpack.i.bf16 %v5473_v22, %v153_v23 }
 0x15f   :  { %6310 = vrot.lane.b32.xlu1 %v6299_v26, %s6976_s10  ;;  %6315 = vrot.lane.b32.xlu0 %v6304_v25, %s6976_s10 }
 0x163   :  { %6320 = vrot.lane.b32.xlu1 %v6299_v26, %s6977_s11  ;;  %6325 = vrot.lane.b32.xlu0 %v6304_v25, %s6977_s11 }
 0x167   :  { %6330 = vrot.lane.b32.xlu1 %v6299_v26, %s6978_s12  ;;  %6335 = vrot.lane.b32.xlu0 %v6304_v25, %s6978_s12  ;;  %v7197_v25 = vpop.f32.mrb[6].mxu1 }
 0x168   :  { %v7199_v26 = vpop.f32.mrb[7].mxu1 }
 0x16b   :  { %6340 = vrot.lane.b32.xlu1 %v6339_v30, %s6974_s17 }
 0x1cd   :  { %v6306_v31 = vpop.permute.xlu1 %6305  ;;  %v6301_v32 = vpop.permute.xlu0 %6300 }
 0x1ce   :  { %v6308_v33 = vunpack.i.h.bf16 %v6306_v31  ;;  %v6307_v34 = vunpack.i.l.bf16 %v6306_v31  ;;  %v6303_v35 = vunpack.i.h.bf16 %v6301_v32  ;;  %v6302_v36 = vunpack.i.l.bf16 %v6301_v32 }
 0x1d0   :  { %v203_v37 = vsel %vm202_vm3, %v6302_v36, %v6303_v35  ;;  %v204_v38 = vsel %vm202_vm3, %v6307_v34, %v6308_v33 }
 0x1d1   :  { %v6311_v39 = vpop.permute.xlu1 %6310  ;;  %v6316_v40 = vpop.permute.xlu0 %6315  ;;  %v5905_v41 = vpack.c.bf16 %v204_v38, %v203_v37 }
 0x1d2   :  { %v6313_v42 = vunpack.i.h.bf16 %v6311_v39  ;;  %v6312_v43 = vunpack.i.l.bf16 %v6311_v39  ;;  %v6318_v44 = vunpack.i.h.bf16 %v6316_v40  ;;  %v6317_v45 = vunpack.i.l.bf16 %v6316_v40 }
 0x1d3   :  { %5906 = vmatprep.subr.bf16.mxu1 %v5905_v41 }
 0x1d4   :  { %5908 = vmatpush3.bf16.msra.mxu1 %v5905_v41  ;;  %v382_v48 = vsel %vm381_vm5, %v6312_v43, %v6313_v42  ;;  %v383_v49 = vsel %vm381_vm5, %v6317_v45, %v6318_v44  ;;  %v5023_v44 = vld [vmem:[%s8062_s3 + $0x10] sm:$0xff] }
 0x1d5   :  { %v6321_v50 = vpop.permute.xlu1 %6320  ;;  %v6326_v51 = vpop.permute.xlu0 %6325  ;;  %5911 = vmatprep.subr.msk.bf16.mxu1 %vm7120_vm6, %v5909_v27  ;;  %v5915_v53 = vpack.c.bf16 %v383_v49, %v382_v48  ;;  %5520 = vmatprep.mubr.msk.f32.mxu0 %vm42_vm0, %v5023_v44 }
 0x1d6   :  { %v6323_v54 = vunpack.i.h.bf16 %v6321_v50  ;;  %v6322_v55 = vunpack.i.l.bf16 %v6321_v50  ;;  %v6328_v56 = vunpack.i.h.bf16 %v6326_v51  ;;  %v6327_v57 = vunpack.i.l.bf16 %v6326_v51 }
 0x1d7   :  { %5482 = vmatmul.mubr.msk.f32.vlgmr.msra.gmra.mrb[8].mxu1 %vm207_vm2, %v7127_v47 }
 0x1d8   :  { %5914 = vmatpush3.bf16.msk.msra.mxu1 %vm7120_vm6, %v5909_v27  ;;  %5488 = vmatprep.mubr.msk.f32.mxu1 %vm207_vm2, %v7136_v52  ;;  %v481_v59 = vsel %vm480_vm7, %v6322_v55, %v6323_v54  ;;  %v482_v60 = vsel %vm480_vm7, %v6327_v57, %v6328_v56  ;;  %v6564_v27 = vpack.i.bf16 %v7197_v25, %v7199_v26 }
 0x1d9   :  { %5916 = vmatprep.subr.bf16.mxu1 %v5915_v53  ;;  %v6331_v61 = vpop.permute.xlu1 %6330  ;;  %v6336_v62 = vpop.permute.xlu0 %6335  ;;  %v5919_v0 = vpack.c.bf16 %v482_v60, %v481_v59 }
 0x1da   :  { %v6333_v1 = vunpack.i.h.bf16 %v6331_v61  ;;  %v6332_v2 = vunpack.i.l.bf16 %v6331_v61  ;;  %v6338_v3 = vunpack.i.h.bf16 %v6336_v62  ;;  %v6337_v4 = vunpack.i.l.bf16 %v6336_v62 }
 0x1dc   :  { %v580_v8 = vsel %vm579_vm8, %v6332_v2, %v6333_v1  ;;  %v581_v9 = vsel %vm579_vm8, %v6337_v4, %v6338_v3 }
 0x1dd   :  { %v5923_v17 = vpack.c.bf16 %v581_v9, %v580_v8  ;;  %v6341_v28 = vpop.permute.xlu1 %6340 }
 0x1de   :  { %v7203_v29 = vunpack.i.l.bf16 %v6341_v28  ;;  %v6343_v33 = vunpack.i.h.bf16 %v6341_v28 }
 0x1df   :  { %5489 = vmatmul.mubr.msk.f32.vlgmr.msra.gmra.mrb[8].mxu1 %vm207_vm2, %v7147_v58 }
 0x1e0   :  { %5918 = vmatpush3.bf16.msra.mxu1 %v5915_v53  ;;  %5495 = vmatprep.mubr.msk.f32.mxu1 %vm207_vm2, %v7154_v63  ;;  %v683_v30 = vsel %vm180_vm1, 0.0, %v7203_v29  ;;  %v687_v31 = vsel %vm180_vm1, %v7203_v29, 0.0  ;;  %v684_v36 = vsel %vm180_vm1, 0.0, %v6343_v33  ;;  %v688_v37 = vsel %vm180_vm1, %v6343_v33, 0.0 }
 0x1e1   :  { %5920 = vmatprep.subr.bf16.mxu1 %v5919_v0  ;;  %v6349_v32 = vpack.i.bf16 %v687_v31, %v683_v30  ;;  %v6354_v39 = vpack.i.bf16 %v688_v37, %v684_v36  ;;  %v5935_v31 = vpack.c.bf16 %v6343_v33, %v7203_v29  ;;  %v5024_v36 = vld [vmem:[%s8062_s3 + $0x18] sm:$0xff] }
 0x1e3   :  { %6350 = vrot.lane.b32.xlu1 %v6349_v32, %s6975_s1 }
 0x1e7   :  { %5496 = vmatmul.mubr.msk.f32.vlgmr.msra.gmra.mrb[8].mxu1 %vm207_vm2, %v7163_v6 }
 0x1e8   :  { %5922 = vmatpush3.bf16.msra.mxu1 %v5919_v0  ;;  %5502 = vmatprep.mubr.msk.f32.mxu1 %vm207_vm2, %v7170_v10 }
 0x1e9   :  { %5924 = vmatprep.subr.bf16.mxu1 %v5923_v17 }
 0x1ef   :  { %5503 = vmatmul.mubr.msk.f32.vlgmr.msra.gmra.mrb[8].mxu1 %vm207_vm2, %v7179_v18 }
 0x1f0   :  { %5926 = vmatpush3.bf16.msra.mxu1 %v5923_v17  ;;  %5509 = vmatprep.mubr.msk.f32.mxu1 %vm207_vm2, %v7184_v19 }
 0x1f7   :  { %5510 = vmatmul.mubr.msk.f32.vlgmr.msra.gmra.mrb[8].mxu1 %vm207_vm2, %v7193_v21 }
 0x255   :  { %v6351_v40 = vpop.permute.xlu1 %6350 }
 0x256   :  { %v6353_v45 = vunpack.i.h.bf16 %v6351_v40  ;;  %v6352_v48 = vunpack.i.l.bf16 %v6351_v40 }
 0x258   :  { %v720_v60 = vsel %vm202_vm3, %v6352_v48, %v6353_v45 }
 0x2ca   :  { %v5511_v34 = vpop.f32.mrb[8].mxu1 }
 0x2cb   :  { %2327 = vst [vmem:[#allocation2 + $0x8] sm:$0xff] %v5511_v34  ;;  %v656_v35 = vpop.f32.mrb[9].mxu1 }
 0x2cc   :  { %2326 = vst [vmem:[#allocation2] sm:$0xff] %v656_v35  ;;  %v6344_v38 = vpack.i.bf16 %v5511_v34, %v656_v35 }
 0x2ce   :  { %6345 = vrot.lane.b32.xlu0 %v6344_v38, %s6974_s17 }
 0x2d2   :  { %6355 = vrot.lane.b32.xlu0 %v6354_v39, %s6975_s1 }
 0x340   :  { %v6346_v41 = vpop.permute.xlu0 %6345 }
 0x341   :  { %v6348_v42 = vunpack.i.h.bf16 %v6346_v41  ;;  %v6347_v43 = vunpack.i.l.bf16 %v6346_v41 }
 0x343   :  { %v686_v49 = vsel %vm180_vm1, 0.0, %v6348_v42  ;;  %v690_v50 = vsel %vm180_vm1, %v6348_v42, 0.0  ;;  %v685_v51 = vsel %vm180_vm1, 0.0, %v6347_v43  ;;  %v689_v53 = vsel %vm180_vm1, %v6347_v43, 0.0 }
 0x344   :  { %v6364_v54 = vpack.i.bf16 %v690_v50, %v686_v49  ;;  %v6359_v55 = vpack.i.bf16 %v689_v53, %v685_v51  ;;  %v6356_v56 = vpop.permute.xlu0 %6355  ;;  %v5941_v61 = vpack.c.bf16 %v6348_v42, %v6347_v43 }
 0x345   :  { %v6358_v57 = vunpack.i.h.bf16 %v6356_v56  ;;  %v6357_v59 = vunpack.i.l.bf16 %v6356_v56  ;;  %v692_v56 = vld [vmem:[%s8062_s3 + $0x8] sm:$0xff] }
 0x346   :  { %6365 = vrot.lane.b32.xlu0 %v6364_v54, %s6975_s1  ;;  %6360 = vrot.lane.b32.xlu1 %v6359_v55, %s6975_s1 }
 0x347   :  { %v721_v62 = vsel %vm202_vm3, %v6357_v59, %v6358_v57 }
 0x348   :  { %v5927_v0 = vpack.c.bf16 %v721_v62, %v720_v60  ;;  %v5037_v60 = vld [vmem:[%s8062_s3 + $0x20] sm:$0xff] }
 0x34a   :  { %6375 = vrot.lane.b32.xlu0 %v6354_v39, %s6976_s10  ;;  %6370 = vrot.lane.b32.xlu1 %v6349_v32, %s6976_s10 }
 0x34b   :  { %5928 = vmatprep.subr.bf16.mxu0 %v5927_v0 }
 0x34c   :  { %5930 = vmatpush3.bf16.msra.mxu0 %v5927_v0 }
 0x34e   :  { %6380 = vrot.lane.b32.xlu0 %v6364_v54, %s6976_s10  ;;  %6385 = vrot.lane.b32.xlu1 %v6359_v55, %s6976_s10 }
 0x352   :  { %6395 = vrot.lane.b32.xlu0 %v6354_v39, %s6977_s11  ;;  %6390 = vrot.lane.b32.xlu1 %v6349_v32, %s6977_s11 }
 0x356   :  { %6400 = vrot.lane.b32.xlu0 %v6364_v54, %s6977_s11  ;;  %6405 = vrot.lane.b32.xlu1 %v6359_v55, %s6977_s11 }
 0x35a   :  { %6415 = vrot.lane.b32.xlu0 %v6354_v39, %s6978_s12  ;;  %6410 = vrot.lane.b32.xlu1 %v6349_v32, %s6978_s12  ;;  %v691_v39 = vld [vmem:[%s8062_s3] sm:$0xff] }
 0x35e   :  { %6425 = vrot.lane.b32.xlu0 %v6364_v54, %s6978_s12  ;;  %6420 = vrot.lane.b32.xlu1 %v6359_v55, %s6978_s12 }
 0x362   :  { %6430 = vrot.lane.b32.xlu1 %v6429_v24, %s6974_s17 }
 0x3b8   :  { %v6366_v1 = vpop.permute.xlu0 %6365  ;;  %v6361_v2 = vpop.permute.xlu1 %6360 }
 0x3b9   :  { %v6368_v3 = vunpack.i.h.bf16 %v6366_v1  ;;  %v6367_v4 = vunpack.i.l.bf16 %v6366_v1  ;;  %v6363_v8 = vunpack.i.h.bf16 %v6361_v2  ;;  %v6362_v9 = vunpack.i.l.bf16 %v6361_v2 }
 0x3bb   :  { %v722_v17 = vsel %vm202_vm3, %v6362_v9, %v6363_v8  ;;  %v723_v22 = vsel %vm202_vm3, %v6367_v4, %v6368_v3 }
 0x3bc   :  { %v6376_v23 = vpop.permute.xlu0 %6375  ;;  %v6371_v28 = vpop.permute.xlu1 %6370  ;;  %v5931_v30 = vpack.c.bf16 %v723_v22, %v722_v17 }
 0x3bd   :  { %v6378_v32 = vunpack.i.h.bf16 %v6376_v23  ;;  %v6377_v34 = vunpack.i.l.bf16 %v6376_v23  ;;  %v6373_v35 = vunpack.i.h.bf16 %v6371_v28  ;;  %v6372_v24 = vunpack.i.l.bf16 %v6371_v28 }
 0x3be   :  { %5932 = vmatprep.subr.bf16.mxu0 %v5931_v30 }
 0x3bf   :  { %5934 = vmatpush3.bf16.msra.mxu0 %v5931_v30  ;;  %v909_v42 = vsel %vm381_vm5, %v6372_v24, %v6373_v35  ;;  %v910_v43 = vsel %vm381_vm5, %v6377_v34, %v6378_v32  ;;  %v5038_v34 = vld [vmem:[%s8062_s3 + $0x28] sm:$0xff] }
 0x3c0   :  { %v6381_v37 = vpop.permute.xlu0 %6380  ;;  %v6386_v38 = vpop.permute.xlu1 %6385  ;;  %5937 = vmatprep.subr.msk.bf16.mxu0 %vm7120_vm6, %v5935_v31  ;;  %v5947_v48 = vpack.c.bf16 %v910_v43, %v909_v42 }
 0x3c1   :  { %v6383_v40 = vunpack.i.h.bf16 %v6381_v37  ;;  %v6382_v29 = vunpack.i.l.bf16 %v6381_v37  ;;  %v6388_v33 = vunpack.i.h.bf16 %v6386_v38  ;;  %v6387_v41 = vunpack.i.l.bf16 %v6386_v38 }
 0x3c2   :  { %5521 = vmatmul.mubr.msk.f32.vlgmr.msra.gmra.mrb[0].mxu0 %vm42_vm0, %v5024_v36  ;;  %v5041_v36 = vld [vmem:[%s8062_s3 + $0x30] sm:$0xff] }
 0x3c3   :  { %5940 = vmatpush3.bf16.msk.msra.mxu0 %vm7120_vm6, %v5935_v31  ;;  %5531 = vmatprep.mubr.msk.f32.mxu0 %vm42_vm0, %v691_v39  ;;  %v911_v49 = vsel %vm381_vm5, %v6387_v41, %v6388_v33  ;;  %v912_v50 = vsel %vm381_vm5, %v6382_v29, %v6383_v40 }
 0x3c4   :  { %v6396_v44 = vpop.permute.xlu0 %6395  ;;  %v6391_v45 = vpop.permute.xlu1 %6390  ;;  %5943 = vmatprep.subr.msk.bf16.mxu0 %vm7120_vm6, %v5941_v61  ;;  %v5951_v62 = vpack.c.bf16 %v912_v50, %v911_v49 }
 0x3c5   :  { %v6398_v51 = vunpack.i.h.bf16 %v6396_v44  ;;  %v6397_v53 = vunpack.i.l.bf16 %v6396_v44  ;;  %v6393_v54 = vunpack.i.h.bf16 %v6391_v45  ;;  %v6392_v55 = vunpack.i.l.bf16 %v6391_v45 }
 0x3c7   :  { %5946 = vmatpush3.bf16.msk.msra.mxu0 %vm7120_vm6, %v5941_v61  ;;  %v1019_v61 = vsel %vm480_vm7, %v6392_v55, %v6393_v54  ;;  %v1020_v4 = vsel %vm480_vm7, %v6397_v53, %v6398_v51  ;;  %v5042_v53 = vld [vmem:[%s8062_s3 + $0x38] sm:$0xff] }
 0x3c8   :  { %v6401_v57 = vpop.permute.xlu0 %6400  ;;  %v6406_v59 = vpop.permute.xlu1 %6405  ;;  %5948 = vmatprep.subr.bf16.mxu0 %v5947_v48  ;;  %v5955_v17 = vpack.c.bf16 %v1020_v4, %v1019_v61 }
 0x3c9   :  { %v6403_v0 = vunpack.i.h.bf16 %v6401_v57  ;;  %v6402_v1 = vunpack.i.l.bf16 %v6401_v57  ;;  %v6408_v2 = vunpack.i.h.bf16 %v6406_v59  ;;  %v6407_v3 = vunpack.i.l.bf16 %v6406_v59  ;;  %v5045_v57 = vld [vmem:[%s8062_s3 + $0x40] sm:$0xff] }
 0x3ca   :  { %5532 = vmatmul.mubr.msk.f32.vlgmr.msra.gmra.mrb[0].mxu0 %vm42_vm0, %v692_v56 }
 0x3cb   :  { %5950 = vmatpush3.bf16.msra.mxu0 %v5947_v48  ;;  %5542 = vmatprep.mubr.msk.f32.mxu0 %vm42_vm0, %v5037_v60  ;;  %v1021_v22 = vsel %vm480_vm7, %v6407_v3, %v6408_v2  ;;  %v1022_v23 = vsel %vm480_vm7, %v6402_v1, %v6403_v0  ;;  %v5046_v0 = vld [vmem:[%s8062_s3 + $0x48] sm:$0xff] }
 0x3cc   :  { %v6416_v8 = vpop.permute.xlu0 %6415  ;;  %v6411_v9 = vpop.permute.xlu1 %6410  ;;  %5952 = vmatprep.subr.bf16.mxu0 %v5951_v62  ;;  %v5959_v37 = vpack.c.bf16 %v1022_v23, %v1021_v22  ;;  %v5049_v23 = vld [vmem:[%s8063_s4 + $0x10] sm:$0xff] }
 0x3cd   :  { %v6418_v28 = vunpack.i.h.bf16 %v6416_v8  ;;  %v6417_v30 = vunpack.i.l.bf16 %v6416_v8  ;;  %v6413_v31 = vunpack.i.h.bf16 %v6411_v9  ;;  %v6412_v32 = vunpack.i.l.bf16 %v6411_v9  ;;  %5575 = vmatprep.mubr.msk.f32.mxu1 %vm42_vm0, %v5049_v23 }
 0x3cf   :  { %5954 = vmatpush3.bf16.msra.mxu0 %v5951_v62  ;;  %v1129_v33 = vsel %vm579_vm8, %v6412_v32, %v6413_v31  ;;  %v1130_v41 = vsel %vm579_vm8, %v6417_v30, %v6418_v28 }
 0x3d0   :  { %v6426_v35 = vpop.permute.xlu0 %6425  ;;  %v6421_v24 = vpop.permute.xlu1 %6420  ;;  %5956 = vmatprep.subr.bf16.mxu0 %v5955_v17  ;;  %v5963_v45 = vpack.c.bf16 %v1130_v41, %v1129_v33 }
 0x3d1   :  { %v6428_v38 = vunpack.i.h.bf16 %v6426_v35  ;;  %v6427_v39 = vunpack.i.l.bf16 %v6426_v35  ;;  %v6423_v40 = vunpack.i.h.bf16 %v6421_v24  ;;  %v6422_v29 = vunpack.i.l.bf16 %v6421_v24 }
 0x3d2   :  { %5543 = vmatmul.mubr.msk.f32.vlgmr.msra.gmra.mrb[0].mxu0 %vm42_vm0, %v5038_v34 }
 0x3d3   :  { %5958 = vmatpush3.bf16.msra.mxu0 %v5955_v17  ;;  %5553 = vmatprep.mubr.msk.f32.mxu0 %vm42_vm0, %v5041_v36  ;;  %v1131_v48 = vsel %vm579_vm8, %v6422_v29, %v6423_v40  ;;  %v1132_v49 = vsel %vm579_vm8, %v6427_v39, %v6428_v38 }
 0x3d4   :  { %v6431_v42 = vpop.permute.xlu1 %6430  ;;  %5960 = vmatprep.subr.bf16.mxu0 %v5959_v37  ;;  %v5967_v60 = vpack.c.bf16 %v1132_v49, %v1131_v48 }
 0x3d5   :  { %v6433_v43 = vunpack.i.h.bf16 %v6431_v42  ;;  %v6432_v44 = vunpack.i.l.bf16 %v6431_v42 }
 0x3d7   :  { %5962 = vmatpush3.bf16.msra.mxu0 %v5959_v37  ;;  %v1236_v50 = vsel %vm180_vm1, 0.0, %v6432_v44  ;;  %v1240_v51 = vsel %vm180_vm1, %v6432_v44, 0.0  ;;  %v1237_v54 = vsel %vm180_vm1, 0.0, %v6433_v43  ;;  %v1241_v55 = vsel %vm180_vm1, %v6433_v43, 0.0 }
 0x3d8   :  { %5964 = vmatprep.subr.bf16.mxu0 %v5963_v45  ;;  %v6439_v56 = vpack.i.bf16 %v1240_v51, %v1236_v50  ;;  %v6464_v59 = vpack.i.bf16 %v1241_v55, %v1237_v54  ;;  %v7298_v62 = vpack.c.bf16 %v6433_v43, %v6432_v44 }
 0x3da   :  { %6440 = vrot.lane.b32.xlu1 %v6439_v56, %s6975_s1  ;;  %5554 = vmatmul.mubr.msk.f32.vlgmr.msra.gmra.mrb[0].mxu0 %vm42_vm0, %v5042_v53 }
 0x3db   :  { %5966 = vmatpush3.bf16.msra.mxu0 %v5963_v45  ;;  %5564 = vmatprep.mubr.msk.f32.mxu0 %vm42_vm0, %v5045_v57 }
 0x3dc   :  { %5968 = vmatprep.subr.bf16.mxu0 %v5967_v60 }
 0x3df   :  { %5970 = vmatpush3.bf16.msra.mxu0 %v5967_v60 }
 0x3e2   :  { %5565 = vmatmul.mubr.msk.f32.vlgmr.msra.gmra.mrb[0].mxu0 %vm42_vm0, %v5046_v0  ;;  %v1244_v0 = vld [vmem:[%s8063_s4] sm:$0xff] }
 0x44c   :  { %v6441_v61 = vpop.permute.xlu1 %6440 }
 0x44d   :  { %v6443_v17 = vunpack.i.h.bf16 %v6441_v61  ;;  %v6442_v22 = vunpack.i.l.bf16 %v6441_v61 }
 0x44f   :  { %v1273_v39 = vsel %vm202_vm3, %v6442_v22, %v6443_v17 }
 0x4b5   :  { %v5566_v1 = vpop.f32.mrb[0].mxu0 }
 0x4b6   :  { %2329 = vst [vmem:[#allocation2 + $0x18] sm:$0xff] %v5566_v1  ;;  %v1209_v2 = vpop.f32.mrb[1].mxu0 }
 0x4b7   :  { %2328 = vst [vmem:[#allocation2 + $0x10] sm:$0xff] %v1209_v2  ;;  %v6434_v3 = vpack.i.bf16 %v5566_v1, %v1209_v2 }
 0x4b9   :  { %6435 = vrot.lane.b32.xlu0 %v6434_v3, %s6974_s17 }
 0x4bd   :  { %6445 = vrot.lane.b32.xlu0 %v6464_v59, %s6975_s1 }
 0x52b   :  { %v6436_v4 = vpop.permute.xlu0 %6435 }
 0x52c   :  { %v6438_v8 = vunpack.i.h.bf16 %v6436_v4  ;;  %v6437_v9 = vunpack.i.l.bf16 %v6436_v4 }
 0x52e   :  { %v1239_v28 = vsel %vm180_vm1, 0.0, %v6438_v8  ;;  %v1243_v30 = vsel %vm180_vm1, %v6438_v8, 0.0  ;;  %v1238_v31 = vsel %vm180_vm1, 0.0, %v6437_v9  ;;  %v1242_v32 = vsel %vm180_vm1, %v6437_v9, 0.0 }
 0x52f   :  { %v6446_v34 = vpop.permute.xlu0 %6445  ;;  %v6454_v35 = vpack.i.bf16 %v1243_v30, %v1239_v28  ;;  %v6449_v24 = vpack.i.bf16 %v1242_v32, %v1238_v31  ;;  %v5985_v38 = vpack.c.bf16 %v6438_v8, %v6437_v9 }
 0x530   :  { %v6448_v36 = vunpack.i.h.bf16 %v6446_v34  ;;  %v6447_v37 = vunpack.i.l.bf16 %v6446_v34  ;;  %v1245_v34 = vld [vmem:[%s8063_s4 + $0x8] sm:$0xff] }
 0x531   :  { %6455 = vrot.lane.b32.xlu0 %v6454_v35, %s6975_s1  ;;  %6450 = vrot.lane.b32.xlu1 %v6449_v24, %s6975_s1 }
 0x532   :  { %v1274_v40 = vsel %vm202_vm3, %v6447_v37, %v6448_v36  ;;  %v5063_v36 = vld [vmem:[%s8063_s4 + $0x20] sm:$0xff] }
 0x533   :  { %v5971_v29 = vpack.c.bf16 %v1274_v40, %v1273_v39 }
 0x535   :  { %5972 = vmatprep.subr.bf16.mxu1 %v5971_v29  ;;  %6465 = vrot.lane.b32.xlu0 %v6464_v59, %s6976_s10 }
 0x536   :  { %6460 = vrot.lane.b32.xlu1 %v6439_v56, %s6976_s10  ;;  %5974 = vmatpush3.bf16.msra.mxu1 %v5971_v29 }
 0x539   :  { %6470 = vrot.lane.b32.xlu0 %v6454_v35, %s6976_s10 }
 0x53a   :  { %6475 = vrot.lane.b32.xlu1 %v6449_v24, %s6976_s10 }
 0x53d   :  { %6485 = vrot.lane.b32.xlu0 %v6464_v59, %s6977_s11 }
 0x53e   :  { %6480 = vrot.lane.b32.xlu1 %v6439_v56, %s6977_s11 }
 0x541   :  { %6490 = vrot.lane.b32.xlu0 %v6454_v35, %s6977_s11 }
 0x542   :  { %6495 = vrot.lane.b32.xlu1 %v6449_v24, %s6977_s11 }
 0x545   :  { %6505 = vrot.lane.b32.xlu0 %v6464_v59, %s6978_s12  ;;  %v5050_v59 = vld [vmem:[%s8063_s4 + $0x18] sm:$0xff] }
 0x546   :  { %6500 = vrot.lane.b32.xlu1 %v6439_v56, %s6978_s12 }
 0x549   :  { %6515 = vrot.lane.b32.xlu0 %v6454_v35, %s6978_s12 }
 0x54a   :  { %6510 = vrot.lane.b32.xlu1 %v6449_v24, %s6978_s12 }
 0x5a3   :  { %v6456_v33 = vpop.permute.xlu0 %6455  ;;  %v6451_v41 = vpop.permute.xlu1 %6450 }
 0x5a4   :  { %v6458_v42 = vunpack.i.h.bf16 %v6456_v33  ;;  %v6457_v43 = vunpack.i.l.bf16 %v6456_v33  ;;  %v6453_v44 = vunpack.i.h.bf16 %v6451_v41  ;;  %v6452_v45 = vunpack.i.l.bf16 %v6451_v41 }
 0x5a6   :  { %v1275_v48 = vsel %vm202_vm3, %v6452_v45, %v6453_v44  ;;  %v1276_v49 = vsel %vm202_vm3, %v6457_v43, %v6458_v42 }
 0x5a7   :  { %v6466_v50 = vpop.permute.xlu0 %6465  ;;  %v5975_v51 = vpack.c.bf16 %v1276_v49, %v1275_v48 }
 0x5a8   :  { %v6461_v53 = vpop.permute.xlu1 %6460  ;;  %v6468_v54 = vunpack.i.h.bf16 %v6466_v50  ;;  %v6467_v55 = vunpack.i.l.bf16 %v6466_v50 }
 0x5a9   :  { %v6463_v56 = vunpack.i.h.bf16 %v6461_v53  ;;  %v6462_v57 = vunpack.i.l.bf16 %v6461_v53  ;;  %5976 = vmatprep.subr.bf16.mxu1 %v5975_v51  ;;  %v5064_v53 = vld [vmem:[%s8063_s4 + $0x28] sm:$0xff] }
 0x5aa   :  { %5978 = vmatpush3.bf16.msra.mxu1 %v5975_v51  ;;  %v1463_v3 = vsel %vm381_vm5, %v6467_v55, %v6468_v54 }
 0x5ab   :  { %v6471_v60 = vpop.permute.xlu0 %6470  ;;  %5981 = vmatprep.subr.msk.bf16.mxu1 %vm7120_vm6, %v7298_v62  ;;  %v1462_v2 = vsel %vm381_vm5, %v6462_v57, %v6463_v56  ;;  %v5067_v57 = vld [vmem:[%s8063_s4 + $0x30] sm:$0xff] }
 0x5ac   :  { %v6476_v1 = vpop.permute.xlu1 %6475  ;;  %v6473_v61 = vunpack.i.h.bf16 %v6471_v60  ;;  %v6472_v4 = vunpack.i.l.bf16 %v6471_v60  ;;  %v5991_v23 = vpack.c.bf16 %v1463_v3, %v1462_v2 }
 0x5ad   :  { %5576 = vmatmul.mubr.msk.f32.vlgmr.msra.gmra.mrb[10].mxu1 %vm42_vm0, %v5050_v59  ;;  %v6478_v8 = vunpack.i.h.bf16 %v6476_v1  ;;  %v6477_v9 = vunpack.i.l.bf16 %v6476_v1 }
 0x5ae   :  { %5984 = vmatpush3.bf16.msk.msra.mxu1 %vm7120_vm6, %v7298_v62  ;;  %5586 = vmatprep.mubr.msk.f32.mxu1 %vm42_vm0, %v1244_v0  ;;  %v1465_v35 = vsel %vm381_vm5, %v6472_v4, %v6473_v61 }
 0x5af   :  { %v6486_v17 = vpop.permute.xlu0 %6485  ;;  %5987 = vmatprep.subr.msk.bf16.mxu1 %vm7120_vm6, %v5985_v38  ;;  %v1464_v62 = vsel %vm381_vm5, %v6477_v9, %v6478_v8  ;;  %v5068_v9 = vld [vmem:[%s8063_s4 + $0x38] sm:$0xff] }
 0x5b0   :  { %v6481_v22 = vpop.permute.xlu1 %6480  ;;  %v6488_v28 = vunpack.i.h.bf16 %v6486_v17  ;;  %v6487_v30 = vunpack.i.l.bf16 %v6486_v17  ;;  %v5995_v39 = vpack.c.bf16 %v1465_v35, %v1464_v62  ;;  %v5104_v62 = vld [vmem:[%s8059_s0 + $0x38] sm:$0xff]  ;;  %v5072_v35 = vld [vmem:[%s8063_s4 + $0x48] sm:$0xff] }
 0x5b1   :  { %v6483_v31 = vunpack.i.h.bf16 %v6481_v22  ;;  %v6482_v32 = vunpack.i.l.bf16 %v6481_v22 }
 0x5b2   :  { %5990 = vmatpush3.bf16.msk.msra.mxu1 %vm7120_vm6, %v5985_v38  ;;  %v1573_v40 = vsel %vm480_vm7, %v6487_v30, %v6488_v28  ;;  %v5101_v28 = vld [vmem:[%s8059_s0 + $0x20] sm:$0xff]  ;;  %v5102_v30 = vld [vmem:[%s8059_s0 + $0x28] sm:$0xff] }
 0x5b3   :  { %v6491_v24 = vpop.permute.xlu0 %6490  ;;  %5992 = vmatprep.subr.bf16.mxu1 %v5991_v23  ;;  %v1572_v38 = vsel %vm480_vm7, %v6482_v32, %v6483_v31  ;;  %v6059_v32 = vpack.c.bf16 %v5102_v30, %v5101_v28 }
 0x5b4   :  { %v6496_v37 = vpop.permute.xlu1 %6495  ;;  %v6493_v29 = vunpack.i.h.bf16 %v6491_v24  ;;  %v6492_v33 = vunpack.i.l.bf16 %v6491_v24  ;;  %v5999_v45 = vpack.c.bf16 %v1573_v40, %v1572_v38 }
 0x5b5   :  { %5587 = vmatmul.mubr.msk.f32.vlgmr.msra.gmra.mrb[10].mxu1 %vm42_vm0, %v1245_v34  ;;  %v6498_v41 = vunpack.i.h.bf16 %v6496_v37  ;;  %v6497_v42 = vunpack.i.l.bf16 %v6496_v37  ;;  %v5103_v34 = vld [vmem:[%s8059_s0 + $0x30] sm:$0xff] }
 0x5b6   :  { %5994 = vmatpush3.bf16.msra.mxu1 %v5991_v23  ;;  %5597 = vmatprep.mubr.msk.f32.mxu1 %vm42_vm0, %v5063_v36  ;;  %v1575_v55 = vsel %vm480_vm7, %v6492_v33, %v6493_v29  ;;  %v5071_v23 = vld [vmem:[%s8063_s4 + $0x40] sm:$0xff]  ;;  %v6063_v24 = vpack.c.bf16 %v5104_v62, %v5103_v34 }
 0x5b7   :  { %v6506_v43 = vpop.permute.xlu0 %6505  ;;  %5996 = vmatprep.subr.bf16.mxu1 %v5995_v39  ;;  %v1574_v54 = vsel %vm480_vm7, %v6497_v42, %v6498_v41 }
 0x5b8   :  { %v6501_v44 = vpop.permute.xlu1 %6500  ;;  %v6508_v48 = vunpack.i.h.bf16 %v6506_v43  ;;  %v6507_v49 = vunpack.i.l.bf16 %v6506_v43  ;;  %v6003_v60 = vpack.c.bf16 %v1575_v55, %v1574_v54 }
 0x5b9   :  { %v6503_v50 = vunpack.i.h.bf16 %v6501_v44  ;;  %v6502_v51 = vunpack.i.l.bf16 %v6501_v44 }
 0x5ba   :  { %5998 = vmatpush3.bf16.msra.mxu1 %v5995_v39  ;;  %v1683_v1 = vsel %vm579_vm8, %v6507_v49, %v6508_v48 }
 0x5bb   :  { %v6516_v56 = vpop.permute.xlu0 %6515  ;;  %6000 = vmatprep.subr.bf16.mxu1 %v5999_v45  ;;  %v1682_v0 = vsel %vm579_vm8, %v6502_v51, %v6503_v50 }
 0x5bc   :  { %v6511_v59 = vpop.permute.xlu1 %6510  ;;  %v6518_v2 = vunpack.i.h.bf16 %v6516_v56  ;;  %v6517_v3 = vunpack.i.l.bf16 %v6516_v56  ;;  %v6007_v8 = vpack.c.bf16 %v1683_v1, %v1682_v0 }
 0x5bd   :  { %5598 = vmatmul.mubr.msk.f32.vlgmr.msra.gmra.mrb[10].mxu1 %vm42_vm0, %v5064_v53  ;;  %v6513_v61 = vunpack.i.h.bf16 %v6511_v59  ;;  %v6512_v4 = vunpack.i.l.bf16 %v6511_v59 }
 0x5be   :  { %6002 = vmatpush3.bf16.msra.mxu1 %v5999_v45  ;;  %5608 = vmatprep.mubr.msk.f32.mxu1 %vm42_vm0, %v5067_v57  ;;  %v1685_v22 = vsel %vm579_vm8, %v6517_v3, %v6518_v2 }
 0x5bf   :  { %6004 = vmatprep.subr.bf16.mxu1 %v6003_v60  ;;  %v1684_v17 = vsel %vm579_vm8, %v6512_v4, %v6513_v61 }
 0x5c0   :  { %v6011_v31 = vpack.c.bf16 %v1685_v22, %v1684_v17 }
 0x5c2   :  { %6006 = vmatpush3.bf16.msra.mxu1 %v6003_v60 }
 0x5c3   :  { %6008 = vmatprep.subr.bf16.mxu1 %v6007_v8 }
 0x5c5   :  { %5609 = vmatmul.mubr.msk.f32.vlgmr.msra.gmra.mrb[10].mxu1 %vm42_vm0, %v5068_v9 }
 0x5c6   :  { %6010 = vmatpush3.bf16.msra.mxu1 %v6007_v8  ;;  %5619 = vmatprep.mubr.msk.f32.mxu1 %vm42_vm0, %v5071_v23 }
 0x5c7   :  { %6012 = vmatprep.subr.bf16.mxu1 %v6011_v31 }
 0x5ca   :  { %6014 = vmatpush3.bf16.msra.mxu1 %v6011_v31 }
 0x5cb   :  { %6060 = vmatprep.subr.bf16.mxu1 %v6059_v32 }
 0x5cd   :  { %5620 = vmatmul.mubr.msk.f32.vlgmr.msra.gmra.mrb[10].mxu1 %vm42_vm0, %v5072_v35 }
 0x5ce   :  { %6062 = vmatpush3.bf16.msra.mxu1 %v6059_v32  ;;  %5685 = vmatprep.mubr.msk.f32.mxu1 %vm42_vm0, %v7043_v5 }
 0x5cf   :  { %6064 = vmatprep.subr.bf16.mxu1 %v6063_v24 }
 0x5d2   :  { %6066 = vmatpush3.bf16.msra.mxu1 %v6063_v24 }
 0x5d5   :  { %5686 = vmatmul.mubr.msk.f32.vlgmr.msra.gmra.mrb[12].mxu1 %vm42_vm0, %v7050_v7 }
 0x5d6   :  { %5688 = vmatprep.mubr.msk.f32.mxu1 %vm42_vm0, %v7058_v11 }
 0x5d9   :  { %5689 = vmatmul.mubr.msk.f32.gmra.mrb[14].mxu1 %vm42_vm0, %v7063_v12 }
 0x5da   :  { %5691 = vmatprep.mubr.msk.f32.mxu1 %vm42_vm0, %v7068_v13 }
 0x5dd   :  { %5692 = vmatmul.mubr.msk.f32.gmra.mrb[16].mxu1 %vm42_vm0, %v7079_v14 }
 0x5de   :  { %5694 = vmatprep.mubr.msk.f32.mxu1 %vm42_vm0, %v7084_v15 }
 0x5e1   :  { %5695 = vmatmul.mubr.msk.f32.gmra.mrb[18].mxu1 %vm42_vm0, %v7093_v16 }
 0x5e2   :  { %5701 = vmatprep.mubr.msk.f32.mxu1 %vm207_vm2, %v7100_v20 }
 0x6a0   :  { %v5621_v5 = vpop.f32.mrb[10].mxu1 }
 0x6a1   :  { %2331 = vst [vmem:[#allocation2 + $0x28] sm:$0xff] %v5621_v5  ;;  %v1762_v7 = vpop.f32.mrb[11].mxu1 }
 0x6a2   :  { %2330 = vst [vmem:[#allocation2 + $0x20] sm:$0xff] %v1762_v7  ;;  %v6569_v11 = vpack.i.bf16 %v5621_v5, %v1762_v7 }
 0x6a8   :  { %v5687_v12 = vpop.f32.mrb[12].mxu1 }
 0x6a9   :  { %v2493_v36 = vpop.f32.mrb[13].mxu1 }
 0x6aa   :  { %v6519_v13 = vpack.i.bf16 %v5687_v12, %v2493_v36 }
 0x6ac   :  { %6520 = vrot.lane.b32.xlu1 %v6519_v13, %s6974_s17  ;;  %v5690_v33 = vpop.f32.mrb[14].mxu1 }
 0x6ad   :  { %v2503_v42 = vpop.f32.mrb[15].mxu1 }
 0x6ae   :  { %v6574_v43 = vpack.i.bf16 %v5690_v33, %v2503_v42 }
 0x71e   :  { %v6521_v14 = vpop.permute.xlu1 %6520 }
 0x71f   :  { %v6523_v37 = vunpack.i.h.bf16 %v6521_v14  ;;  %v6522_v39 = vunpack.i.l.bf16 %v6521_v14 }
 0x721   :  { %v2541_v15 = vsel %vm180_vm1, 0.0, %v6523_v37  ;;  %v2543_v16 = vsel %vm180_vm1, %v6523_v37, 0.0  ;;  %v2540_v38 = vsel %vm180_vm1, 0.0, %v6522_v39  ;;  %v2542_v20 = vsel %vm180_vm1, %v6522_v39, 0.0 }
 0x722   :  { %v6529_v40 = vpack.i.bf16 %v2543_v16, %v2541_v15  ;;  %v6524_v29 = vpack.i.bf16 %v2542_v20, %v2540_v38  ;;  %v6071_v41 = vpack.c.bf16 %v6523_v37, %v6522_v39 }
 0x724   :  { %6530 = vrot.lane.b32.xlu1 %v6529_v40, %s6975_s1  ;;  %6525 = vrot.lane.b32.xlu0 %v6524_v29, %s6975_s1 }
 0x728   :  { %6540 = vrot.lane.b32.xlu1 %v6529_v40, %s6976_s10  ;;  %6535 = vrot.lane.b32.xlu0 %v6524_v29, %s6976_s10 }
 0x72c   :  { %6550 = vrot.lane.b32.xlu1 %v6529_v40, %s6977_s11  ;;  %6545 = vrot.lane.b32.xlu0 %v6524_v29, %s6977_s11 }
 0x730   :  { %6560 = vrot.lane.b32.xlu1 %v6529_v40, %s6978_s12  ;;  %6555 = vrot.lane.b32.xlu0 %v6524_v29, %s6978_s12 }
 0x734   :  { %6570 = vrot.lane.b32.xlu1 %v6569_v11, %s6974_s17  ;;  %6565 = vrot.lane.b32.xlu0 %v6564_v27, %s6974_s17 }
 0x738   :  { %6575 = vrot.lane.b32.xlu0 %v6574_v43, %s6974_s17 }
 0x796   :  { %v6531_v44 = vpop.permute.xlu1 %6530  ;;  %v6526_v45 = vpop.permute.xlu0 %6525 }
 0x797   :  { %v6533_v48 = vunpack.i.h.bf16 %v6531_v44  ;;  %v6532_v49 = vunpack.i.l.bf16 %v6531_v44  ;;  %v6528_v50 = vunpack.i.h.bf16 %v6526_v45  ;;  %v6527_v51 = vunpack.i.l.bf16 %v6526_v45 }
 0x799   :  { %v2560_v53 = vsel %vm202_vm3, %v6527_v51, %v6528_v50  ;;  %v2561_v54 = vsel %vm202_vm3, %v6532_v49, %v6533_v48 }
 0x79a   :  { %v6541_v55 = vpop.permute.xlu1 %6540  ;;  %v6536_v56 = vpop.permute.xlu0 %6535  ;;  %v6067_v57 = vpack.c.bf16 %v2561_v54, %v2560_v53 }
 0x79b   :  { %v6543_v59 = vunpack.i.h.bf16 %v6541_v55  ;;  %v6542_v60 = vunpack.i.l.bf16 %v6541_v55  ;;  %v6538_v0 = vunpack.i.h.bf16 %v6536_v56  ;;  %v6537_v25 = vunpack.i.l.bf16 %v6536_v56 }
 0x79c   :  { %6068 = vmatprep.subr.bf16.mxu1 %v6067_v57 }
 0x79d   :  { %6070 = vmatpush3.bf16.msra.mxu1 %v6067_v57  ;;  %v2736_v26 = vsel %vm381_vm5, %v6537_v25, %v6538_v0  ;;  %v2737_v27 = vsel %vm381_vm5, %v6542_v60, %v6543_v59  ;;  %v7518_v59 = vld [vmem:[%s8064_s5 + $0x10] sm:$0xff] }
 0x79e   :  { %v6551_v1 = vpop.permute.xlu1 %6550  ;;  %v6546_v2 = vpop.permute.xlu0 %6545  ;;  %6073 = vmatprep.subr.msk.bf16.mxu1 %vm7120_vm6, %v6071_v41  ;;  %v6077_v3 = vpack.c.bf16 %v2737_v27, %v2736_v26  ;;  %5630 = vmatprep.mubr.msk.f32.mxu0 %vm42_vm0, %v7518_v59 }
 0x79f   :  { %v6553_v61 = vunpack.i.h.bf16 %v6551_v1  ;;  %v6552_v4 = vunpack.i.l.bf16 %v6551_v1  ;;  %v6548_v8 = vunpack.i.h.bf16 %v6546_v2  ;;  %v6547_v9 = vunpack.i.l.bf16 %v6546_v2 }
 0x7a0   :  { %5702 = vmatmul.mubr.msk.f32.vlgmr.msra.gmra.mrb[20].mxu1 %vm207_vm2, %v7127_v47 }
 0x7a1   :  { %6076 = vmatpush3.bf16.msk.msra.mxu1 %vm7120_vm6, %v6071_v41  ;;  %5708 = vmatprep.mubr.msk.f32.mxu1 %vm207_vm2, %v7136_v52  ;;  %v2833_v23 = vsel %vm480_vm7, %v6547_v9, %v6548_v8  ;;  %v2834_v28 = vsel %vm480_vm7, %v6552_v4, %v6553_v61 }
 0x7a2   :  { %v6561_v17 = vpop.permute.xlu1 %6560  ;;  %v6556_v22 = vpop.permute.xlu0 %6555  ;;  %6078 = vmatprep.subr.bf16.mxu1 %v6077_v3  ;;  %v6081_v35 = vpack.c.bf16 %v2834_v28, %v2833_v23 }
 0x7a3   :  { %v6563_v34 = vunpack.i.h.bf16 %v6561_v17  ;;  %v6562_v62 = vunpack.i.l.bf16 %v6561_v17  ;;  %v6558_v24 = vunpack.i.h.bf16 %v6556_v22  ;;  %v6557_v5 = vunpack.i.l.bf16 %v6556_v22 }
 0x7a5   :  { %v2931_v37 = vsel %vm579_vm8, %v6562_v62, %v6563_v34 }
 0x7a6   :  { %v6571_v30 = vpop.permute.xlu1 %6570  ;;  %v6566_v47 = vpop.permute.xlu0 %6565 }
 0x7a7   :  { %v6572_v31 = vunpack.i.l.bf16 %v6571_v30  ;;  %v6567_v32 = vunpack.i.l.bf16 %v6566_v47  ;;  %v6573_v12 = vunpack.i.h.bf16 %v6571_v30  ;;  %v6568_v36 = vunpack.i.h.bf16 %v6566_v47 }
 0x7a8   :  { %5709 = vmatmul.mubr.msk.f32.vlgmr.msra.gmra.mrb[20].mxu1 %vm207_vm2, %v7147_v58  ;;  %v2930_v58 = vsel %vm579_vm8, %v6557_v5, %v6558_v24 }
 0x7a9   :  { %6080 = vmatpush3.bf16.msra.mxu1 %v6077_v3  ;;  %v1789_v52 = vsel %vm180_vm1, 0.0, %v6567_v32  ;;  %v1793_v7 = vsel %vm180_vm1, %v6567_v32, 0.0  ;;  %5715 = vmatprep.mubr.msk.f32.mxu1 %vm207_vm2, %v7154_v63  ;;  %v1791_v13 = vsel %vm180_vm1, 0.0, %v6572_v31  ;;  %v1795_v14 = vsel %vm180_vm1, %v6572_v31, 0.0 }
 0x7aa   :  { %6082 = vmatprep.subr.bf16.mxu1 %v6081_v35  ;;  %v6584_v11 = vpack.i.bf16 %v1793_v7, %v1789_v52  ;;  %v6594_v39 = vpack.i.bf16 %v1795_v14, %v1791_v13  ;;  %v7465_v15 = vpack.c.bf16 %v6568_v36, %v6567_v32  ;;  %v7467_v16 = vpack.c.bf16 %v6573_v12, %v6572_v31 }
 0x7ab   :  { %v6085_v63 = vpack.c.bf16 %v2931_v37, %v2930_v58  ;;  %v1790_v53 = vsel %vm180_vm1, 0.0, %v6568_v36  ;;  %v1794_v54 = vsel %vm180_vm1, %v6568_v36, 0.0  ;;  %v1792_v56 = vsel %vm180_vm1, 0.0, %v6573_v12 }
 0x7ac   :  { %6585 = vrot.lane.b32.xlu0 %v6584_v11, %s6975_s1  ;;  %v6589_v55 = vpack.i.bf16 %v1794_v54, %v1790_v53  ;;  %v1796_v57 = vsel %vm180_vm1, %v6573_v12, 0.0 }
 0x7ad   :  { %v6599_v60 = vpack.i.bf16 %v1796_v57, %v1792_v56  ;;  %v7601_v57 = vld [vmem:[%s8064_s5 + $0x8] sm:$0xff] }
 0x7b0   :  { %5716 = vmatmul.mubr.msk.f32.vlgmr.msra.gmra.mrb[20].mxu1 %vm207_vm2, %v7163_v6  ;;  %6595 = vrot.lane.b32.xlu0 %v6594_v39, %s6975_s1  ;;  %v7480_v6 = vpop.f32.mrb[16].mxu1 }
 0x7b1   :  { %6084 = vmatpush3.bf16.msra.mxu1 %v6081_v35  ;;  %5722 = vmatprep.mubr.msk.f32.mxu1 %vm207_vm2, %v7170_v10  ;;  %v7483_v38 = vpop.f32.mrb[17].mxu1 }
 0x7b2   :  { %6086 = vmatprep.subr.bf16.mxu1 %v6085_v63  ;;  %v6744_v10 = vpack.i.bf16 %v7480_v6, %v7483_v38  ;;  %v7487_v20 = vpop.f32.mrb[18].mxu1  ;;  %v7649_v6 = vld [vmem:[%s8064_s5 + $0x38] sm:$0xff] }
 0x7b3   :  { %v7489_v40 = vpop.f32.mrb[19].mxu1 }
 0x7b4   :  { %6605 = vrot.lane.b32.xlu0 %v6584_v11, %s6976_s10 }
 0x7b8   :  { %5723 = vmatmul.mubr.msk.f32.vlgmr.msra.gmra.mrb[20].mxu1 %vm207_vm2, %v7179_v18  ;;  %6615 = vrot.lane.b32.xlu0 %v6594_v39, %s6976_s10  ;;  %v6834_v18 = vpack.i.bf16 %v7487_v20, %v7489_v40  ;;  %v5162_v20 = vld [vmem:[%s8063_s4 + $0x18] sm:$0xff] }
 0x7b9   :  { %6088 = vmatpush3.bf16.msra.mxu1 %v6085_v63  ;;  %5729 = vmatprep.mubr.msk.f32.mxu1 %vm207_vm2, %v7184_v19  ;;  %v6576_v19 = vpop.permute.xlu0 %6575  ;;  %v7563_v63 = vld [vmem:[%s8064_s5 + $0x18] sm:$0xff] }
 0x7ba   :  { %v6577_v29 = vunpack.i.l.bf16 %v6576_v19  ;;  %v6578_v43 = vunpack.i.h.bf16 %v6576_v19 }
 0x7bc   :  { %6625 = vrot.lane.b32.xlu0 %v6584_v11, %s6977_s11  ;;  %v3033_v33 = vsel %vm180_vm1, 0.0, %v6577_v29  ;;  %v3037_v41 = vsel %vm180_vm1, %v6577_v29, 0.0  ;;  %v3038_v44 = vsel %vm180_vm1, %v6578_v43, 0.0  ;;  %v7508_v48 = vpack.c.bf16 %v6578_v43, %v6577_v29 }
 0x7bd   :  { %v7500_v42 = vpack.i.bf16 %v3037_v41, %v3033_v33  ;;  %v7573_v41 = vld [vmem:[%s8064_s5] sm:$0xff] }
 0x7c0   :  { %5730 = vmatmul.mubr.msk.f32.vlgmr.msra.gmra.mrb[20].mxu1 %vm207_vm2, %v7193_v21  ;;  %6635 = vrot.lane.b32.xlu0 %v6594_v39, %s6977_s11  ;;  %v3034_v21 = vsel %vm180_vm1, 0.0, %v6578_v43 }
 0x7c1   :  { %v7506_v45 = vpack.i.bf16 %v3038_v44, %v3034_v21 }
 0x7c4   :  { %6645 = vrot.lane.b32.xlu0 %v6584_v11, %s6978_s12 }
 0x7c8   :  { %6655 = vrot.lane.b32.xlu0 %v6594_v39, %s6978_s12 }
 0x7cc   :  { %6665 = vrot.lane.b32.xlu0 %v7500_v42, %s6975_s1 }
 0x81e   :  { %v6586_v0 = vpop.permute.xlu0 %6585 }
 0x81f   :  { %v6588_v3 = vunpack.i.h.bf16 %v6586_v0  ;;  %v6587_v61 = vunpack.i.l.bf16 %v6586_v0 }
 0x821   :  { %v1826_v35 = vsel %vm202_vm3, %v6587_v61, %v6588_v3 }
 0x822   :  { %v6596_v25 = vpop.permute.xlu0 %6595 }
 0x823   :  { %v6598_v34 = vunpack.i.h.bf16 %v6596_v25  ;;  %v6597_v62 = vunpack.i.l.bf16 %v6596_v25 }
 0x825   :  { %v1828_v12 = vsel %vm202_vm3, %v6597_v62, %v6598_v34 }
 0x826   :  { %v7532_v26 = vpop.permute.xlu0 %6605 }
 0x827   :  { %v6608_v29 = vunpack.i.h.bf16 %v7532_v26  ;;  %v6607_v33 = vunpack.i.l.bf16 %v7532_v26 }
 0x829   :  { %v2015_v54 = vsel %vm381_vm5, %v6607_v33, %v6608_v29 }
 0x82a   :  { %v6616_v31 = vpop.permute.xlu0 %6615 }
 0x82b   :  { %v6617_v53 = vunpack.i.l.bf16 %v6616_v31 }
 0x82e   :  { %v6626_v13 = vpop.permute.xlu0 %6625 }
 0x82f   :  { %v6628_v26 = vunpack.i.h.bf16 %v6626_v13 }
 0x832   :  { %v6636_v43 = vpop.permute.xlu0 %6635 }
 0x836   :  { %v6646_v0 = vpop.permute.xlu0 %6645 }
 0x837   :  { %v6648_v62 = vunpack.i.h.bf16 %v6646_v0 }
 0x893   :  { %v5731_v49 = vpop.f32.mrb[20].mxu1 }
 0x894   :  { %4666 = vst [vmem:[#allocation2 + $0x48] sm:$0xff] %v5731_v49  ;;  %v3006_v50 = vpop.f32.mrb[21].mxu1 }
 0x895   :  { %4665 = vst [vmem:[#allocation2 + $0x40] sm:$0xff] %v3006_v50  ;;  %v6579_v51 = vpack.i.bf16 %v5731_v49, %v3006_v50 }
 0x897   :  { %6580 = vrot.lane.b32.xlu1 %v6579_v51, %s6974_s17  ;;  %v6618_v51 = vunpack.i.h.bf16 %v6616_v31 }
 0x89b   :  { %6590 = vrot.lane.b32.xlu1 %v6589_v55, %s6975_s1 }
 0x89f   :  { %6600 = vrot.lane.b32.xlu1 %v6599_v60, %s6975_s1 }
 0x8a3   :  { %6610 = vrot.lane.b32.xlu1 %v6589_v55, %s6976_s10 }
 0x8a7   :  { %6620 = vrot.lane.b32.xlu1 %v6599_v60, %s6976_s10 }
 0x8ab   :  { %6630 = vrot.lane.b32.xlu1 %v6589_v55, %s6977_s11 }
 0x8af   :  { %6640 = vrot.lane.b32.xlu1 %v6599_v60, %s6977_s11 }
 0x8b3   :  { %6650 = vrot.lane.b32.xlu1 %v6589_v55, %s6978_s12 }
 0x8b7   :  { %6660 = vrot.lane.b32.xlu1 %v6599_v60, %s6978_s12 }
 0x8bb   :  { %6670 = vrot.lane.b32.xlu1 %v7506_v45, %s6975_s1 }
 0x909   :  { %v6581_v27 = vpop.permute.xlu1 %6580 }
 0x90a   :  { %v6583_v1 = vunpack.i.h.bf16 %v6581_v27  ;;  %v6582_v2 = vunpack.i.l.bf16 %v6581_v27  ;;  %v6627_v27 = vunpack.i.l.bf16 %v6626_v13 }
 0x90c   :  { %v3036_v4 = vsel %vm180_vm1, 0.0, %v6583_v1  ;;  %v3040_v8 = vsel %vm180_vm1, %v6583_v1, 0.0  ;;  %v3035_v9 = vsel %vm180_vm1, 0.0, %v6582_v2  ;;  %v3039_v17 = vsel %vm180_vm1, %v6582_v2, 0.0 }
 0x90d   :  { %v6591_v22 = vpop.permute.xlu1 %6590  ;;  %v7538_v23 = vpack.i.bf16 %v3040_v8, %v3036_v4  ;;  %v7540_v28 = vpack.i.bf16 %v3039_v17, %v3035_v9  ;;  %v7546_v32 = vpack.c.bf16 %v6583_v1, %v6582_v2  ;;  %v2017_v1 = vsel %vm381_vm5, %v6617_v53, %v6618_v51  ;;  %v7608_v2 = vld [vmem:[%s8064_s5 + $0x20] sm:$0xff]  ;;  %v7667_v51 = vld [vmem:[%s8064_s5 + $0x48] sm:$0xff]  ;;  %v5135_v53 = vld [vmem:[%s8062_s3 + $0x10] sm:$0xff] }
 0x90e   :  { %v6593_v30 = vunpack.i.h.bf16 %v6591_v22  ;;  %v6592_v47 = vunpack.i.l.bf16 %v6591_v22  ;;  %v6638_v9 = vunpack.i.h.bf16 %v6636_v43  ;;  %v6637_v17 = vunpack.i.l.bf16 %v6636_v43  ;;  %v6656_v22 = vpop.permute.xlu0 %6655 }
 0x90f   :  { %6680 = vrot.lane.b32.xlu1 %v7538_v23, %s6975_s1  ;;  %6675 = vrot.lane.b32.xlu0 %v7540_v28, %s6975_s1  ;;  %v6657_v13 = vunpack.i.l.bf16 %v6656_v22 }
 0x910   :  { %v1827_v24 = vsel %vm202_vm3, %v6592_v47, %v6593_v30 }
 0x911   :  { %v6601_v5 = vpop.permute.xlu1 %6600  ;;  %v6015_v52 = vpack.c.bf16 %v1827_v24, %v1826_v35  ;;  %v6647_v35 = vunpack.i.l.bf16 %v6646_v0 }
 0x912   :  { %v6603_v7 = vunpack.i.h.bf16 %v6601_v5  ;;  %v6602_v11 = vunpack.i.l.bf16 %v6601_v5  ;;  %v7634_v5 = vld [vmem:[%s8064_s5 + $0x30] sm:$0xff] }
 0x913   :  { %6016 = vmatprep.subr.bf16.mxu0 %v6015_v52  ;;  %6690 = vrot.lane.b32.xlu1 %v7506_v45, %s6976_s10 }
 0x914   :  { %6685 = vrot.lane.b32.xlu0 %v7500_v42, %s6976_s10  ;;  %6018 = vmatpush3.bf16.msra.mxu0 %v6015_v52  ;;  %v1829_v36 = vsel %vm202_vm3, %v6602_v11, %v6603_v7  ;;  %v6666_v52 = vpop.permute.xlu0 %6665 }
 0x915   :  { %v6611_v14 = vpop.permute.xlu1 %6610  ;;  %v6019_v58 = vpack.c.bf16 %v1829_v36, %v1828_v12  ;;  %v6658_v36 = vunpack.i.h.bf16 %v6656_v22 }
 0x916   :  { %v6613_v37 = vunpack.i.h.bf16 %v6611_v14  ;;  %v6612_v39 = vunpack.i.l.bf16 %v6611_v14  ;;  %v2235_v14 = vsel %vm579_vm8, %v6647_v35, %v6648_v62 }
 0x917   :  { %6020 = vmatprep.subr.bf16.mxu0 %v6019_v58  ;;  %6695 = vrot.lane.b32.xlu1 %v7538_v23, %s6976_s10  ;;  %v2237_v43 = vsel %vm579_vm8, %v6657_v13, %v6658_v36 }
 0x918   :  { %6700 = vrot.lane.b32.xlu0 %v7540_v28, %s6976_s10  ;;  %6022 = vmatpush3.bf16.msra.mxu0 %v6019_v58  ;;  %v2016_v49 = vsel %vm381_vm5, %v6612_v39, %v6613_v37  ;;  %v6668_v37 = vunpack.i.h.bf16 %v6666_v52  ;;  %v6667_v39 = vunpack.i.l.bf16 %v6666_v52 }
 0x919   :  { %v6621_v19 = vpop.permute.xlu1 %6620  ;;  %6025 = vmatprep.subr.msk.bf16.mxu0 %vm7120_vm6, %v7465_v15  ;;  %v6035_v55 = vpack.c.bf16 %v2016_v49, %v2015_v54 }
 0x91a   :  { %v6623_v21 = vunpack.i.h.bf16 %v6621_v19  ;;  %v6622_v44 = vunpack.i.l.bf16 %v6621_v19 }
 0x91b   :  { %6710 = vrot.lane.b32.xlu1 %v7506_v45, %s6977_s11  ;;  %5631 = vmatmul.mubr.msk.f32.vlgmr.msra.gmra.mrb[2].mxu0 %vm42_vm0, %v7563_v63 }
 0x91c   :  { %6705 = vrot.lane.b32.xlu0 %v7500_v42, %s6977_s11  ;;  %6028 = vmatpush3.bf16.msk.msra.mxu0 %vm7120_vm6, %v7465_v15  ;;  %v2018_v60 = vsel %vm381_vm5, %v6622_v44, %v6623_v21  ;;  %v3069_v21 = vsel %vm202_vm3, %v6667_v39, %v6668_v37 }
 0x91d   :  { %v6631_v50 = vpop.permute.xlu1 %6630  ;;  %6031 = vmatprep.subr.msk.bf16.mxu0 %vm7120_vm6, %v7467_v16  ;;  %5641 = vmatprep.mubr.msk.f32.mxu0 %vm42_vm0, %v7573_v41 }
 0x91e   :  { %v6633_v56 = vunpack.i.h.bf16 %v6631_v50  ;;  %v6632_v15 = vunpack.i.l.bf16 %v6631_v50 }
 0x91f   :  { %6715 = vrot.lane.b32.xlu1 %v7538_v23, %s6977_s11 }
 0x920   :  { %6720 = vrot.lane.b32.xlu0 %v7540_v28, %s6977_s11  ;;  %6034 = vmatpush3.bf16.msk.msra.mxu0 %vm7120_vm6, %v7467_v16  ;;  %v6039_v16 = vpack.c.bf16 %v2018_v60, %v2017_v1  ;;  %v2126_v4 = vsel %vm480_vm7, %v6632_v15, %v6633_v56 }
 0x921   :  { %v6641_v25 = vpop.permute.xlu1 %6640  ;;  %6036 = vmatprep.subr.bf16.mxu0 %v6035_v55 }
 0x922   :  { %v6643_v3 = vunpack.i.h.bf16 %v6641_v25  ;;  %v6642_v61 = vunpack.i.l.bf16 %v6641_v25 }
 0x923   :  { %6730 = vrot.lane.b32.xlu1 %v7506_v45, %s6978_s12  ;;  %5642 = vmatmul.mubr.msk.f32.vlgmr.msra.gmra.mrb[2].mxu0 %vm42_vm0, %v7601_v57  ;;  %v2125_v45 = vsel %vm480_vm7, %v6627_v27, %v6628_v26 }
 0x924   :  { %6725 = vrot.lane.b32.xlu0 %v7500_v42, %s6978_s12  ;;  %6038 = vmatpush3.bf16.msra.mxu0 %v6035_v55  ;;  %v6043_v30 = vpack.c.bf16 %v2126_v4, %v2125_v45  ;;  %v7627_v42 = vld [vmem:[%s8064_s5 + $0x28] sm:$0xff]  ;;  %v2128_v34 = vsel %vm480_vm7, %v6642_v61, %v6643_v3  ;;  %v3041_v45 = vld [vmem:[%s8062_s3] sm:$0xff] }
 0x925   :  { %v6651_v8 = vpop.permute.xlu1 %6650  ;;  %6040 = vmatprep.subr.bf16.mxu0 %v6039_v16  ;;  %5652 = vmatprep.mubr.msk.f32.mxu0 %vm42_vm0, %v7608_v2 }
 0x926   :  { %v6653_v47 = vunpack.i.h.bf16 %v6651_v8  ;;  %v6652_v31 = vunpack.i.l.bf16 %v6651_v8 }
 0x927   :  { %6740 = vrot.lane.b32.xlu1 %v7538_v23, %s6978_s12  ;;  %v2127_v23 = vsel %vm480_vm7, %v6637_v17, %v6638_v9  ;;  %v5136_v9 = vld [vmem:[%s8062_s3 + $0x18] sm:$0xff] }
 0x928   :  { %6735 = vrot.lane.b32.xlu0 %v7540_v28, %s6978_s12  ;;  %6042 = vmatpush3.bf16.msra.mxu0 %v6039_v16  ;;  %v6047_v28 = vpack.c.bf16 %v2128_v34, %v2127_v23  ;;  %v2236_v12 = vsel %vm579_vm8, %v6652_v31, %v6653_v47 }
 0x929   :  { %v6661_v24 = vpop.permute.xlu1 %6660  ;;  %6044 = vmatprep.subr.bf16.mxu0 %v6043_v30  ;;  %v6051_v33 = vpack.c.bf16 %v2236_v12, %v2235_v14 }
 0x92a   :  { %v6663_v7 = vunpack.i.h.bf16 %v6661_v24  ;;  %v6662_v11 = vunpack.i.l.bf16 %v6661_v24 }
 0x92b   :  { %5653 = vmatmul.mubr.msk.f32.vlgmr.msra.gmra.mrb[2].mxu0 %vm42_vm0, %v7627_v42 }
 0x92c   :  { %6745 = vrot.lane.b32.xlu0 %v6744_v10, %s6974_s17  ;;  %6046 = vmatpush3.bf16.msra.mxu0 %v6043_v30  ;;  %v2238_v38 = vsel %vm579_vm8, %v6662_v11, %v6663_v7  ;;  %v7655_v10 = vld [vmem:[%s8064_s5 + $0x40] sm:$0xff] }
 0x92d   :  { %6048 = vmatprep.subr.bf16.mxu0 %v6047_v28  ;;  %5663 = vmatprep.mubr.msk.f32.mxu0 %vm42_vm0, %v7634_v5  ;;  %v6671_v58 = vpop.permute.xlu1 %6670  ;;  %v6055_v49 = vpack.c.bf16 %v2238_v38, %v2237_v43 }
 0x92e   :  { %v6673_v19 = vunpack.i.h.bf16 %v6671_v58  ;;  %v6672_v29 = vunpack.i.l.bf16 %v6671_v58  ;;  %v5149_v58 = vld [vmem:[%s8062_s3 + $0x20] sm:$0xff] }
 0x930   :  { %6050 = vmatpush3.bf16.msra.mxu0 %v6047_v28  ;;  %v3070_v44 = vsel %vm202_vm3, %v6672_v29, %v6673_v19 }
 0x931   :  { %6052 = vmatprep.subr.bf16.mxu0 %v6051_v33  ;;  %v6089_v50 = vpack.c.bf16 %v3070_v44, %v3069_v21 }
 0x933   :  { %5664 = vmatmul.mubr.msk.f32.vlgmr.msra.gmra.mrb[2].mxu0 %vm42_vm0, %v7649_v6 }
 0x934   :  { %6054 = vmatpush3.bf16.msra.mxu0 %v6051_v33  ;;  %5674 = vmatprep.mubr.msk.f32.mxu0 %vm42_vm0, %v7655_v10 }
 0x935   :  { %6056 = vmatprep.subr.bf16.mxu0 %v6055_v49 }
 0x938   :  { %6058 = vmatpush3.bf16.msra.mxu0 %v6055_v49 }
 0x939   :  { %6090 = vmatprep.subr.bf16.mxu0 %v6089_v50 }
 0x93b   :  { %5675 = vmatmul.mubr.msk.f32.vlgmr.msra.gmra.mrb[2].mxu0 %vm42_vm0, %v7667_v51 }
 0x93c   :  { %6092 = vmatpush3.bf16.msra.mxu0 %v6089_v50  ;;  %5740 = vmatprep.mubr.msk.f32.mxu0 %vm42_vm0, %v5135_v53 }
 0x981   :  { %v6681_v54 = vpop.permute.xlu1 %6680  ;;  %v6676_v55 = vpop.permute.xlu0 %6675 }
 0x982   :  { %v6683_v56 = vunpack.i.h.bf16 %v6681_v54  ;;  %v6682_v15 = vunpack.i.l.bf16 %v6681_v54  ;;  %v6678_v60 = vunpack.i.h.bf16 %v6676_v55  ;;  %v6677_v0 = vunpack.i.l.bf16 %v6676_v55 }
 0x984   :  { %v3071_v25 = vsel %vm202_vm3, %v6677_v0, %v6678_v60  ;;  %v3072_v26 = vsel %vm202_vm3, %v6682_v15, %v6683_v56  ;;  %v5150_v60 = vld [vmem:[%s8062_s3 + $0x28] sm:$0xff] }
 0x985   :  { %v6691_v27 = vpop.permute.xlu1 %6690  ;;  %v6093_v1 = vpack.c.bf16 %v3072_v26, %v3071_v25  ;;  %v5153_v25 = vld [vmem:[%s8062_s3 + $0x30] sm:$0xff] }
 0x986   :  { %v6693_v16 = vunpack.i.h.bf16 %v6691_v27  ;;  %v6692_v3 = vunpack.i.l.bf16 %v6691_v27  ;;  %v6686_v61 = vpop.permute.xlu0 %6685 }
 0x987   :  { %v6688_v4 = vunpack.i.h.bf16 %v6686_v61  ;;  %v6687_v8 = vunpack.i.l.bf16 %v6686_v61  ;;  %6094 = vmatprep.subr.bf16.mxu0 %v6093_v1 }
 0x988   :  { %6096 = vmatpush3.bf16.msra.mxu0 %v6093_v1  ;;  %v3258_v47 = vsel %vm381_vm5, %v6692_v3, %v6693_v16 }
 0x989   :  { %v6696_v17 = vpop.permute.xlu1 %6695  ;;  %6099 = vmatprep.subr.msk.bf16.mxu0 %vm7120_vm6, %v7508_v48  ;;  %v3257_v30 = vsel %vm381_vm5, %v6687_v8, %v6688_v4 }
 0x98a   :  { %v6701_v22 = vpop.permute.xlu0 %6700  ;;  %v6698_v31 = vunpack.i.h.bf16 %v6696_v17  ;;  %v6697_v34 = vunpack.i.l.bf16 %v6696_v17  ;;  %v6109_v7 = vpack.c.bf16 %v3258_v47, %v3257_v30 }
 0x98b   :  { %v6703_v62 = vunpack.i.h.bf16 %v6701_v22  ;;  %v6702_v35 = vunpack.i.l.bf16 %v6701_v22  ;;  %5741 = vmatmul.mubr.msk.f32.vlgmr.msra.gmra.mrb[4].mxu0 %vm42_vm0, %v5136_v9 }
 0x98c   :  { %6102 = vmatpush3.bf16.msk.msra.mxu0 %vm7120_vm6, %v7508_v48  ;;  %5751 = vmatprep.mubr.msk.f32.mxu0 %vm42_vm0, %v3041_v45  ;;  %v3260_v13 = vsel %vm381_vm5, %v6697_v34, %v6698_v31  ;;  %v3042_v48 = vld [vmem:[%s8062_s3 + $0x8] sm:$0xff]  ;;  %v5154_v31 = vld [vmem:[%s8062_s3 + $0x38] sm:$0xff] }
 0x98d   :  { %v6711_v24 = vpop.permute.xlu1 %6710  ;;  %6105 = vmatprep.subr.msk.bf16.mxu0 %vm7120_vm6, %v7546_v32  ;;  %v3259_v36 = vsel %vm381_vm5, %v6702_v35, %v6703_v62 }
 0x98e   :  { %v6713_v23 = vunpack.i.h.bf16 %v6711_v24  ;;  %v6712_v28 = vunpack.i.l.bf16 %v6711_v24  ;;  %v6706_v52 = vpop.permute.xlu0 %6705  ;;  %v6113_v39 = vpack.c.bf16 %v3260_v13, %v3259_v36 }
 0x98f   :  { %v6708_v11 = vunpack.i.h.bf16 %v6706_v52  ;;  %v6707_v12 = vunpack.i.l.bf16 %v6706_v52 }
 0x990   :  { %6108 = vmatpush3.bf16.msk.msra.mxu0 %vm7120_vm6, %v7546_v32  ;;  %v3367_v29 = vsel %vm480_vm7, %v6712_v28, %v6713_v23 }
 0x991   :  { %v6716_v14 = vpop.permute.xlu1 %6715  ;;  %6110 = vmatprep.subr.bf16.mxu0 %v6109_v7  ;;  %v3366_v19 = vsel %vm480_vm7, %v6707_v12, %v6708_v11  ;;  %v5158_v12 = vld [vmem:[%s8062_s3 + $0x48] sm:$0xff] }
 0x992   :  { %v6721_v37 = vpop.permute.xlu0 %6720  ;;  %v6718_v33 = vunpack.i.h.bf16 %v6716_v14  ;;  %v6717_v38 = vunpack.i.l.bf16 %v6716_v14  ;;  %v6117_v53 = vpack.c.bf16 %v3367_v29, %v3366_v19 }
 0x993   :  { %v6723_v43 = vunpack.i.h.bf16 %v6721_v37  ;;  %v6722_v32 = vunpack.i.l.bf16 %v6721_v37  ;;  %5752 = vmatmul.mubr.msk.f32.vlgmr.msra.gmra.mrb[4].mxu0 %vm42_vm0, %v3042_v48 }
 0x994   :  { %6112 = vmatpush3.bf16.msra.mxu0 %v6109_v7  ;;  %5762 = vmatprep.mubr.msk.f32.mxu0 %vm42_vm0, %v5149_v58  ;;  %v3369_v15 = vsel %vm480_vm7, %v6717_v38, %v6718_v33  ;;  %v5157_v7 = vld [vmem:[%s8062_s3 + $0x40] sm:$0xff]  ;;  %v5161_v38 = vld [vmem:[%s8063_s4 + $0x10] sm:$0xff] }
 0x995   :  { %v6731_v21 = vpop.permute.xlu1 %6730  ;;  %6114 = vmatprep.subr.bf16.mxu0 %v6113_v39  ;;  %v3368_v56 = vsel %vm480_vm7, %v6722_v32, %v6723_v43  ;;  %5795 = vmatprep.mubr.msk.f32.mxu1 %vm42_vm0, %v5161_v38  ;;  %v5175_v38 = vld [vmem:[%s8063_s4 + $0x20] sm:$0xff] }
 0x996   :  { %v6733_v44 = vunpack.i.h.bf16 %v6731_v21  ;;  %v6732_v49 = vunpack.i.l.bf16 %v6731_v21  ;;  %v6726_v50 = vpop.permute.xlu0 %6725  ;;  %v6121_v27 = vpack.c.bf16 %v3369_v15, %v3368_v56 }
 0x997   :  { %v6728_v54 = vunpack.i.h.bf16 %v6726_v50  ;;  %v6727_v55 = vunpack.i.l.bf16 %v6726_v50 }
 0x998   :  { %6116 = vmatpush3.bf16.msra.mxu0 %v6113_v39  ;;  %v3476_v16 = vsel %vm579_vm8, %v6732_v49, %v6733_v44 }
 0x999   :  { %v6741_v0 = vpop.permute.xlu1 %6740  ;;  %6118 = vmatprep.subr.bf16.mxu0 %v6117_v53  ;;  %v3475_v1 = vsel %vm579_vm8, %v6727_v55, %v6728_v54 }
 0x99a   :  { %v6736_v26 = vpop.permute.xlu0 %6735  ;;  %v6743_v3 = vunpack.i.h.bf16 %v6741_v0  ;;  %v6742_v61 = vunpack.i.l.bf16 %v6741_v0  ;;  %v6125_v17 = vpack.c.bf16 %v3476_v16, %v3475_v1 }
 0x99b   :  { %v6738_v4 = vunpack.i.h.bf16 %v6736_v26  ;;  %v6737_v8 = vunpack.i.l.bf16 %v6736_v26  ;;  %5763 = vmatmul.mubr.msk.f32.vlgmr.msra.gmra.mrb[4].mxu0 %vm42_vm0, %v5150_v60 }
 0x99c   :  { %6120 = vmatpush3.bf16.msra.mxu0 %v6117_v53  ;;  %5773 = vmatprep.mubr.msk.f32.mxu0 %vm42_vm0, %v5153_v25  ;;  %v3478_v47 = vsel %vm579_vm8, %v6742_v61, %v6743_v3 }
 0x99d   :  { %6122 = vmatprep.subr.bf16.mxu0 %v6121_v27  ;;  %v3477_v30 = vsel %vm579_vm8, %v6737_v8, %v6738_v4 }
 0x99e   :  { %v6746_v9 = vpop.permute.xlu0 %6745  ;;  %v6129_v52 = vpack.c.bf16 %v3478_v47, %v3477_v30 }
 0x99f   :  { %v6748_v45 = vunpack.i.h.bf16 %v6746_v9  ;;  %v6747_v22 = vunpack.i.l.bf16 %v6746_v9 }
 0x9a0   :  { %6124 = vmatpush3.bf16.msra.mxu0 %v6121_v27 }
 0x9a1   :  { %v3583_v34 = vsel %vm180_vm1, 0.0, %v6748_v45  ;;  %v3587_v62 = vsel %vm180_vm1, %v6748_v45, 0.0  ;;  %v3582_v35 = vsel %vm180_vm1, 0.0, %v6747_v22  ;;  %v3586_v24 = vsel %vm180_vm1, %v6747_v22, 0.0  ;;  %6126 = vmatprep.subr.bf16.mxu0 %v6125_v17 }
 0x9a2   :  { %v7732_v23 = vpack.c.bf16 %v6748_v45, %v6747_v22  ;;  %v6754_v28 = vpack.i.bf16 %v3586_v24, %v3582_v35  ;;  %v6779_v11 = vpack.i.bf16 %v3587_v62, %v3583_v34 }
 0x9a3   :  { %5774 = vmatmul.mubr.msk.f32.vlgmr.msra.gmra.mrb[4].mxu0 %vm42_vm0, %v5154_v31 }
 0x9a4   :  { %6755 = vrot.lane.b32.xlu0 %v6754_v28, %s6975_s1  ;;  %6128 = vmatpush3.bf16.msra.mxu0 %v6125_v17 }
 0x9a5   :  { %6130 = vmatprep.subr.bf16.mxu0 %v6129_v52  ;;  %5784 = vmatprep.mubr.msk.f32.mxu0 %vm42_vm0, %v5157_v7 }
 0x9a8   :  { %6132 = vmatpush3.bf16.msra.mxu0 %v6129_v52 }
 0x9ab   :  { %5785 = vmatmul.mubr.msk.f32.vlgmr.msra.gmra.mrb[4].mxu0 %vm42_vm0, %v5158_v12 }
 0x9ac   :  { %5850 = vmatprep.mubr.msk.f32.mxu0 %vm42_vm0, %v7518_v59 }
 0xa0e   :  { %v7746_v36 = vpop.f32.mrb[2].mxu0 }
 0xa0f   :  { %2333 = vst [vmem:[#allocation2 + $0x38] sm:$0xff] %v7746_v36  ;;  %v7749_v13 = vpop.f32.mrb[3].mxu0 }
 0xa10   :  { %2332 = vst [vmem:[#allocation2 + $0x30] sm:$0xff] %v7749_v13 }
 0xa16   :  { %v6756_v59 = vpop.permute.xlu0 %6755 }
 0xa17   :  { %v6758_v29 = vunpack.i.h.bf16 %v6756_v59  ;;  %v6757_v33 = vunpack.i.l.bf16 %v6756_v59 }
 0xa19   :  { %v3618_v15 = vsel %vm202_vm3, %v6757_v33, %v6758_v29 }
 0xa7e   :  { %v7752_v48 = vpop.f32.mrb[4].mxu0 }
 0xa7f   :  { %4668 = vst [vmem:[#allocation2 + $0x58] sm:$0xff] %v7752_v48  ;;  %v7755_v14 = vpop.f32.mrb[5].mxu0 }
 0xa80   :  { %4667 = vst [vmem:[#allocation2 + $0x50] sm:$0xff] %v7755_v14  ;;  %v6749_v58 = vpack.i.bf16 %v7752_v48, %v7755_v14 }
 0xa82   :  { %6750 = vrot.lane.b32.xlu1 %v6749_v58, %s6974_s17 }
 0xa86   :  { %6760 = vrot.lane.b32.xlu1 %v6779_v11, %s6975_s1 }
 0xaf4   :  { %v6751_v37 = vpop.permute.xlu1 %6750 }
 0xaf5   :  { %v6753_v39 = vunpack.i.h.bf16 %v6751_v37  ;;  %v6752_v19 = vunpack.i.l.bf16 %v6751_v37 }
 0xaf7   :  { %v3585_v43 = vsel %vm180_vm1, 0.0, %v6753_v39  ;;  %v3589_v32 = vsel %vm180_vm1, %v6753_v39, 0.0  ;;  %v3584_v21 = vsel %vm180_vm1, 0.0, %v6752_v19  ;;  %v3588_v44 = vsel %vm180_vm1, %v6752_v19, 0.0 }
 0xaf8   :  { %v7770_v49 = vpack.c.bf16 %v6753_v39, %v6752_v19  ;;  %v6761_v50 = vpop.permute.xlu1 %6760  ;;  %v6769_v53 = vpack.i.bf16 %v3589_v32, %v3585_v43  ;;  %v6764_v54 = vpack.i.bf16 %v3588_v44, %v3584_v21 }
 0xaf9   :  { %v6763_v55 = vunpack.i.h.bf16 %v6761_v50  ;;  %v6762_v56 = vunpack.i.l.bf16 %v6761_v50 }
 0xafa   :  { %6770 = vrot.lane.b32.xlu1 %v6769_v53, %s6975_s1  ;;  %6765 = vrot.lane.b32.xlu0 %v6764_v54, %s6975_s1 }
 0xafb   :  { %v3619_v60 = vsel %vm202_vm3, %v6762_v56, %v6763_v55 }
 0xafc   :  { %v6133_v0 = vpack.c.bf16 %v3619_v60, %v3618_v15 }
 0xafe   :  { %6134 = vmatprep.subr.bf16.mxu1 %v6133_v0  ;;  %6780 = vrot.lane.b32.xlu1 %v6779_v11, %s6976_s10 }
 0xaff   :  { %6775 = vrot.lane.b32.xlu0 %v6754_v28, %s6976_s10  ;;  %6136 = vmatpush3.bf16.msra.mxu1 %v6133_v0 }
 0xb02   :  { %6785 = vrot.lane.b32.xlu1 %v6769_v53, %s6976_s10 }
 0xb03   :  { %6790 = vrot.lane.b32.xlu0 %v6764_v54, %s6976_s10 }
 0xb06   :  { %6800 = vrot.lane.b32.xlu1 %v6779_v11, %s6977_s11 }
 0xb07   :  { %6795 = vrot.lane.b32.xlu0 %v6754_v28, %s6977_s11 }
 0xb0a   :  { %6805 = vrot.lane.b32.xlu1 %v6769_v53, %s6977_s11 }
 0xb0b   :  { %6810 = vrot.lane.b32.xlu0 %v6764_v54, %s6977_s11 }
 0xb0e   :  { %6820 = vrot.lane.b32.xlu1 %v6779_v11, %s6978_s12 }
 0xb0f   :  { %6815 = vrot.lane.b32.xlu0 %v6754_v28, %s6978_s12 }
 0xb12   :  { %6830 = vrot.lane.b32.xlu1 %v6769_v53, %s6978_s12 }
 0xb13   :  { %6825 = vrot.lane.b32.xlu0 %v6764_v54, %s6978_s12 }
 0xb17   :  { %6835 = vrot.lane.b32.xlu0 %v6834_v18, %s6974_s17  ;;  %v3590_v18 = vld [vmem:[%s8063_s4] sm:$0xff] }
 0xb6c   :  { %v6771_v25 = vpop.permute.xlu1 %6770  ;;  %v6766_v26 = vpop.permute.xlu0 %6765 }
 0xb6d   :  { %v6773_v27 = vunpack.i.h.bf16 %v6771_v25  ;;  %v6772_v1 = vunpack.i.l.bf16 %v6771_v25  ;;  %v6768_v16 = vunpack.i.h.bf16 %v6766_v26  ;;  %v6767_v3 = vunpack.i.l.bf16 %v6766_v26 }
 0xb6f   :  { %v3620_v61 = vsel %vm202_vm3, %v6767_v3, %v6768_v16  ;;  %v3621_v4 = vsel %vm202_vm3, %v6772_v1, %v6773_v27  ;;  %v5176_v16 = vld [vmem:[%s8063_s4 + $0x28] sm:$0xff] }
 0xb70   :  { %v6781_v8 = vpop.permute.xlu1 %6780  ;;  %v6137_v9 = vpack.c.bf16 %v3621_v4, %v3620_v61  ;;  %v5179_v61 = vld [vmem:[%s8063_s4 + $0x30] sm:$0xff] }
 0xb71   :  { %v6783_v17 = vunpack.i.h.bf16 %v6781_v8  ;;  %v6782_v45 = vunpack.i.l.bf16 %v6781_v8  ;;  %v6776_v22 = vpop.permute.xlu0 %6775 }
 0xb72   :  { %v6778_v30 = vunpack.i.h.bf16 %v6776_v22  ;;  %v6777_v47 = vunpack.i.l.bf16 %v6776_v22  ;;  %6138 = vmatprep.subr.bf16.mxu1 %v6137_v9 }
 0xb73   :  { %6140 = vmatpush3.bf16.msra.mxu1 %v6137_v9  ;;  %v3807_v62 = vsel %vm381_vm5, %v6782_v45, %v6783_v17 }
 0xb74   :  { %v6786_v40 = vpop.permute.xlu1 %6785  ;;  %6143 = vmatprep.subr.msk.bf16.mxu1 %vm7120_vm6, %v7732_v23  ;;  %v3806_v34 = vsel %vm381_vm5, %v6777_v47, %v6778_v30 }
 0xb75   :  { %v6791_v31 = vpop.permute.xlu0 %6790  ;;  %v6788_v35 = vunpack.i.h.bf16 %v6786_v40  ;;  %v6787_v24 = vunpack.i.l.bf16 %v6786_v40  ;;  %v6153_v59 = vpack.c.bf16 %v3807_v62, %v3806_v34 }
 0xb76   :  { %v6793_v28 = vunpack.i.h.bf16 %v6791_v31  ;;  %v6792_v52 = vunpack.i.l.bf16 %v6791_v31  ;;  %5796 = vmatmul.mubr.msk.f32.vlgmr.msra.gmra.mrb[22].mxu1 %vm42_vm0, %v5162_v20 }
 0xb77   :  { %6146 = vmatpush3.bf16.msk.msra.mxu1 %vm7120_vm6, %v7732_v23  ;;  %5806 = vmatprep.mubr.msk.f32.mxu1 %vm42_vm0, %v3590_v18  ;;  %v3809_v29 = vsel %vm381_vm5, %v6787_v24, %v6788_v35  ;;  %v3591_v23 = vld [vmem:[%s8063_s4 + $0x8] sm:$0xff]  ;;  %v5180_v35 = vld [vmem:[%s8063_s4 + $0x38] sm:$0xff] }
 0xb78   :  { %v6801_v7 = vpop.permute.xlu1 %6800  ;;  %6149 = vmatprep.subr.msk.bf16.mxu1 %vm7120_vm6, %v7770_v49  ;;  %v3808_v19 = vsel %vm381_vm5, %v6792_v52, %v6793_v28 }
 0xb79   :  { %v6803_v11 = vunpack.i.h.bf16 %v6801_v7  ;;  %v6802_v12 = vunpack.i.l.bf16 %v6801_v7  ;;  %v6796_v58 = vpop.permute.xlu0 %6795  ;;  %v6157_v32 = vpack.c.bf16 %v3809_v29, %v3808_v19 }
 0xb7a   :  { %v6798_v37 = vunpack.i.h.bf16 %v6796_v58  ;;  %v6797_v39 = vunpack.i.l.bf16 %v6796_v58 }
 0xb7b   :  { %6152 = vmatpush3.bf16.msk.msra.mxu1 %vm7120_vm6, %v7770_v49  ;;  %v3916_v44 = vsel %vm480_vm7, %v6802_v12, %v6803_v11 }
 0xb7c   :  { %v6806_v33 = vpop.permute.xlu1 %6805  ;;  %6154 = vmatprep.subr.bf16.mxu1 %v6153_v59  ;;  %v3915_v21 = vsel %vm480_vm7, %v6797_v39, %v6798_v37  ;;  %v5184_v39 = vld [vmem:[%s8063_s4 + $0x48] sm:$0xff] }
 0xb7d   :  { %v6811_v43 = vpop.permute.xlu0 %6810  ;;  %v6808_v50 = vunpack.i.h.bf16 %v6806_v33  ;;  %v6807_v53 = vunpack.i.l.bf16 %v6806_v33  ;;  %v6161_v0 = vpack.c.bf16 %v3916_v44, %v3915_v21 }
 0xb7e   :  { %v6813_v54 = vunpack.i.h.bf16 %v6811_v43  ;;  %v6812_v49 = vunpack.i.l.bf16 %v6811_v43  ;;  %5807 = vmatmul.mubr.msk.f32.vlgmr.msra.gmra.mrb[22].mxu1 %vm42_vm0, %v3591_v23 }
 0xb7f   :  { %6156 = vmatpush3.bf16.msra.mxu1 %v6153_v59  ;;  %5817 = vmatprep.mubr.msk.f32.mxu1 %vm42_vm0, %v5175_v38  ;;  %v3918_v1 = vsel %vm480_vm7, %v6807_v53, %v6808_v50  ;;  %v5183_v59 = vld [vmem:[%s8063_s4 + $0x40] sm:$0xff] }
 0xb80   :  { %v6821_v55 = vpop.permute.xlu1 %6820  ;;  %6158 = vmatprep.subr.bf16.mxu1 %v6157_v32  ;;  %v3917_v27 = vsel %vm480_vm7, %v6812_v49, %v6813_v54 }
 0xb81   :  { %v6823_v56 = vunpack.i.h.bf16 %v6821_v55  ;;  %v6822_v15 = vunpack.i.l.bf16 %v6821_v55  ;;  %v6816_v60 = vpop.permute.xlu0 %6815  ;;  %v6165_v8 = vpack.c.bf16 %v3918_v1, %v3917_v27 }
 0xb82   :  { %v6818_v25 = vunpack.i.h.bf16 %v6816_v60  ;;  %v6817_v26 = vunpack.i.l.bf16 %v6816_v60 }
 0xb83   :  { %6160 = vmatpush3.bf16.msra.mxu1 %v6157_v32  ;;  %v4025_v17 = vsel %vm579_vm8, %v6822_v15, %v6823_v56 }
 0xb84   :  { %v6831_v3 = vpop.permute.xlu1 %6830  ;;  %6162 = vmatprep.subr.bf16.mxu1 %v6161_v0  ;;  %v4024_v9 = vsel %vm579_vm8, %v6817_v26, %v6818_v25 }
 0xb85   :  { %v6826_v4 = vpop.permute.xlu0 %6825  ;;  %v6833_v45 = vunpack.i.h.bf16 %v6831_v3  ;;  %v6832_v22 = vunpack.i.l.bf16 %v6831_v3  ;;  %v6169_v40 = vpack.c.bf16 %v4025_v17, %v4024_v9  ;;  %v6943_v3 = vld [vmem:[#allocation2 + $0x10] sm:$0xff]  ;;  %v6947_v9 = vld [vmem:[#allocation2 + $0x28] sm:$0xff]  ;;  %v6948_v17 = vld [vmem:[#allocation2 + $0x40] sm:$0xff] }
 0xb86   :  { %v6828_v30 = vunpack.i.h.bf16 %v6826_v4  ;;  %v6827_v47 = vunpack.i.l.bf16 %v6826_v4  ;;  %5818 = vmatmul.mubr.msk.f32.vlgmr.msra.gmra.mrb[22].mxu1 %vm42_vm0, %v5176_v16  ;;  %v6942_v16 = vld [vmem:[#allocation2] sm:$0xff]  ;;  %v6945_v4 = vld [vmem:[#allocation2 + $0x18] sm:$0xff] }
 0xb87   :  { %6164 = vmatpush3.bf16.msra.mxu1 %v6161_v0  ;;  %5828 = vmatprep.mubr.msk.f32.mxu1 %vm42_vm0, %v5179_v61  ;;  %v4027_v62 = vsel %vm579_vm8, %v6832_v22, %v6833_v45  ;;  %v6944_v61 = vld [vmem:[#allocation2 + $0x8] sm:$0xff]  ;;  %v2358_v22 = vmul.f32 %v6942_v16, %v6942_v16 }
 0xb88   :  { %6166 = vmatprep.subr.bf16.mxu1 %v6165_v8  ;;  %v4026_v34 = vsel %vm579_vm8, %v6827_v47, %v6828_v30  ;;  %v6949_v45 = vld [vmem:[#allocation2 + $0x48] sm:$0xff]  ;;  %v2359_v30 = vmul.f32 %v6944_v61, %v6944_v61  ;;  %v2360_v47 = vmul.f32 %v6943_v3, %v6943_v3 }
 0xb89   :  { %v6836_v20 = vpop.permute.xlu0 %6835  ;;  %v6173_v58 = vpack.c.bf16 %v4027_v62, %v4026_v34  ;;  %v2365_v34 = vmul.f32 %v7746_v36, %v7746_v36  ;;  %v4697_v62 = vmul.f32 %v6948_v17, %v6948_v17 }
 0xb8a   :  { %v6838_v18 = vunpack.i.h.bf16 %v6836_v20  ;;  %v6837_v31 = vunpack.i.l.bf16 %v6836_v20  ;;  %v2361_v20 = vmul.f32 %v6945_v4, %v6945_v4 }
 0xb8b   :  { %6168 = vmatpush3.bf16.msra.mxu1 %v6165_v8  ;;  %v6946_v8 = vld [vmem:[#allocation2 + $0x20] sm:$0xff] }
 0xb8c   :  { %v4132_v24 = vsel %vm180_vm1, 0.0, %v6838_v18  ;;  %v4136_v28 = vsel %vm180_vm1, %v6838_v18, 0.0  ;;  %v4131_v52 = vsel %vm180_vm1, 0.0, %v6837_v31  ;;  %v4135_v7 = vsel %vm180_vm1, %v6837_v31, 0.0  ;;  %6170 = vmatprep.subr.bf16.mxu1 %v6169_v40 }
 0xb8d   :  { %v7849_v11 = vpack.c.bf16 %v6838_v18, %v6837_v31  ;;  %v6844_v12 = vpack.i.bf16 %v4135_v7, %v4131_v52  ;;  %v6869_v37 = vpack.i.bf16 %v4136_v28, %v4132_v24  ;;  %v2364_v18 = vmul.f32 %v7749_v13, %v7749_v13 }
 0xb8e   :  { %5829 = vmatmul.mubr.msk.f32.vlgmr.msra.gmra.mrb[22].mxu1 %vm42_vm0, %v5180_v35  ;;  %v2363_v31 = vmul.f32 %v6947_v9, %v6947_v9  ;;  %v4698_v35 = vmul.f32 %v6949_v45, %v6949_v45  ;;  %v4699_v24 = vmul.f32 %v7755_v14, %v7755_v14 }
 0xb8f   :  { %6845 = vrot.lane.b32.xlu0 %v6844_v12, %s6975_s1  ;;  %6172 = vmatpush3.bf16.msra.mxu1 %v6169_v40  ;;  %v2362_v40 = vmul.f32 %v6946_v8, %v6946_v8 }
 0xb90   :  { %6174 = vmatprep.subr.bf16.mxu1 %v6173_v58  ;;  %5839 = vmatprep.mubr.msk.f32.mxu1 %vm42_vm0, %v5183_v59 }
 0xb93   :  { %6176 = vmatpush3.bf16.msra.mxu1 %v6173_v58 }
 0xb96   :  { %5840 = vmatmul.mubr.msk.f32.vlgmr.msra.gmra.mrb[22].mxu1 %vm42_vm0, %v5184_v39 }
 0xc01   :  { %v6846_v33 = vpop.permute.xlu0 %6845 }
 0xc02   :  { %v6848_v21 = vunpack.i.h.bf16 %v6846_v33  ;;  %v6847_v44 = vunpack.i.l.bf16 %v6846_v33 }
 0xc04   :  { %v4167_v26 = vsel %vm202_vm3, %v6847_v44, %v6848_v21 }
 0xc69   :  { %v7861_v19 = vpop.f32.mrb[22].mxu1 }
 0xc6a   :  { %v7863_v29 = vpop.f32.mrb[23].mxu1 }
 0xc6b   :  { %v6839_v23 = vpack.i.bf16 %v7861_v19, %v7863_v29  ;;  %v4701_v28 = vmul.f32 %v7863_v29, %v7863_v29 }
 0xc6d   :  { %6840 = vrot.lane.b32.xlu1 %v6839_v23, %s6974_s17 }
 0xc71   :  { %6850 = vrot.lane.b32.xlu1 %v6869_v37, %s6975_s1 }
 0xcdf   :  { %v6841_v38 = vpop.permute.xlu1 %6840 }
 0xce0   :  { %v6843_v43 = vunpack.i.h.bf16 %v6841_v38  ;;  %v6842_v32 = vunpack.i.l.bf16 %v6841_v38 }
 0xce2   :  { %v4134_v50 = vsel %vm180_vm1, 0.0, %v6843_v43  ;;  %v4138_v53 = vsel %vm180_vm1, %v6843_v43, 0.0  ;;  %v4133_v54 = vsel %vm180_vm1, 0.0, %v6842_v32  ;;  %v4137_v49 = vsel %vm180_vm1, %v6842_v32, 0.0 }
 0xce3   :  { %v7873_v55 = vpack.c.bf16 %v6843_v43, %v6842_v32  ;;  %v6851_v56 = vpop.permute.xlu1 %6850  ;;  %v6859_v15 = vpack.i.bf16 %v4138_v53, %v4134_v50  ;;  %v6854_v60 = vpack.i.bf16 %v4137_v49, %v4133_v54 }
 0xce4   :  { %v6853_v0 = vunpack.i.h.bf16 %v6851_v56  ;;  %v6852_v25 = vunpack.i.l.bf16 %v6851_v56 }
 0xce5   :  { %6860 = vrot.lane.b32.xlu1 %v6859_v15, %s6975_s1  ;;  %6855 = vrot.lane.b32.xlu0 %v6854_v60, %s6975_s1 }
 0xce6   :  { %v4168_v27 = vsel %vm202_vm3, %v6852_v25, %v6853_v0 }
 0xce7   :  { %v6177_v1 = vpack.c.bf16 %v4168_v27, %v4167_v26 }
 0xce9   :  { %6178 = vmatprep.subr.bf16.mxu0 %v6177_v1  ;;  %6870 = vrot.lane.b32.xlu1 %v6869_v37, %s6976_s10 }
 0xcea   :  { %6865 = vrot.lane.b32.xlu0 %v6844_v12, %s6976_s10  ;;  %6180 = vmatpush3.bf16.msra.mxu0 %v6177_v1 }
 0xced   :  { %6875 = vrot.lane.b32.xlu1 %v6859_v15, %s6976_s10 }
 0xcee   :  { %6880 = vrot.lane.b32.xlu0 %v6854_v60, %s6976_s10 }
 0xcf1   :  { %6890 = vrot.lane.b32.xlu1 %v6869_v37, %s6977_s11 }
 0xcf2   :  { %6885 = vrot.lane.b32.xlu0 %v6844_v12, %s6977_s11 }
 0xcf5   :  { %6895 = vrot.lane.b32.xlu1 %v6859_v15, %s6977_s11 }
 0xcf6   :  { %6900 = vrot.lane.b32.xlu0 %v6854_v60, %s6977_s11 }
 0xcf9   :  { %6910 = vrot.lane.b32.xlu1 %v6869_v37, %s6978_s12 }
 0xcfa   :  { %6905 = vrot.lane.b32.xlu0 %v6844_v12, %s6978_s12 }
 0xcfd   :  { %6920 = vrot.lane.b32.xlu1 %v6859_v15, %s6978_s12 }
 0xcfe   :  { %6915 = vrot.lane.b32.xlu0 %v6854_v60, %s6978_s12 }
 0xd1d   :  { %2334 = vadd.xlane.f32.xlu0 %v6942_v16 }
 0xd21   :  { %2338 = vadd.xlane.f32.xlu0 %v6943_v3  ;;  %2336 = vadd.xlane.f32.xlu1 %v6944_v61 }
 0xd25   :  { %2340 = vadd.xlane.f32.xlu0 %v6945_v4  ;;  %2342 = vadd.xlane.f32.xlu1 %v6946_v8 }
 0xd29   :  { %2344 = vadd.xlane.f32.xlu0 %v6947_v9  ;;  %2346 = vadd.xlane.f32.xlu1 %v7749_v13  ;;  %v4700_v13 = vmul.f32 %v7752_v48, %v7752_v48 }
 0xd2d   :  { %2348 = vadd.xlane.f32.xlu0 %v7746_v36  ;;  %4673 = vadd.xlane.f32.xlu1 %v6948_v17  ;;  %v4702_v36 = vmul.f32 %v7861_v19, %v7861_v19 }
 0xd31   :  { %4675 = vadd.xlane.f32.xlu0 %v6949_v45  ;;  %4677 = vadd.xlane.f32.xlu1 %v7755_v14 }
 0xd35   :  { %4679 = vadd.xlane.f32.xlu0 %v7752_v48  ;;  %4681 = vadd.xlane.f32.xlu1 %v7863_v29 }
 0xd39   :  { %4683 = vadd.xlane.f32.xlu0 %v7861_v19  ;;  %2366 = vadd.xlane.f32.xlu1 %v2358_v22 }
 0xd3d   :  { %2368 = vadd.xlane.f32.xlu0 %v2359_v30  ;;  %2370 = vadd.xlane.f32.xlu1 %v2360_v47 }
 0xd41   :  { %2372 = vadd.xlane.f32.xlu0 %v2361_v20  ;;  %2374 = vadd.xlane.f32.xlu1 %v2362_v40 }
 0xd45   :  { %2376 = vadd.xlane.f32.xlu0 %v2363_v31  ;;  %2378 = vadd.xlane.f32.xlu1 %v2364_v18 }
 0xd49   :  { %2380 = vadd.xlane.f32.xlu0 %v2365_v34  ;;  %4705 = vadd.xlane.f32.xlu1 %v4697_v62 }
 0xd4d   :  { %4707 = vadd.xlane.f32.xlu0 %v4698_v35  ;;  %4709 = vadd.xlane.f32.xlu1 %v4699_v24 }
 0xd51   :  { %4711 = vadd.xlane.f32.xlu0 %v4700_v13  ;;  %4713 = vadd.xlane.f32.xlu1 %v4701_v28 }
 0xd55   :  { %4715 = vadd.xlane.f32.xlu0 %v4702_v36 }
 0xd57   :  { %v6861_v52 = vpop.permute.xlu1 %6860  ;;  %v6856_v7 = vpop.permute.xlu0 %6855 }
 0xd58   :  { %v6863_v12 = vunpack.i.h.bf16 %v6861_v52  ;;  %v6862_v58 = vunpack.i.l.bf16 %v6861_v52  ;;  %v6858_v59 = vunpack.i.h.bf16 %v6856_v7  ;;  %v6857_v14 = vunpack.i.l.bf16 %v6856_v7 }
 0xd5a   :  { %v4169_v37 = vsel %vm202_vm3, %v6857_v14, %v6858_v59  ;;  %v4170_v39 = vsel %vm202_vm3, %v6862_v58, %v6863_v12 }
 0xd5b   :  { %v6871_v23 = vpop.permute.xlu1 %6870  ;;  %v6181_v33 = vpack.c.bf16 %v4170_v39, %v4169_v37 }
 0xd5c   :  { %v6866_v38 = vpop.permute.xlu0 %6865  ;;  %v6873_v48 = vunpack.i.h.bf16 %v6871_v23  ;;  %v6872_v43 = vunpack.i.l.bf16 %v6871_v23 }
 0xd5d   :  { %v6868_v32 = vunpack.i.h.bf16 %v6866_v38  ;;  %v6867_v21 = vunpack.i.l.bf16 %v6866_v38  ;;  %6182 = vmatprep.subr.bf16.mxu0 %v6181_v33 }
 0xd5e   :  { %6184 = vmatpush3.bf16.msra.mxu0 %v6181_v33  ;;  %v4356_v54 = vsel %vm381_vm5, %v6872_v43, %v6873_v48 }
 0xd5f   :  { %v6876_v44 = vpop.permute.xlu1 %6875  ;;  %6187 = vmatprep.subr.msk.bf16.mxu0 %vm7120_vm6, %v7849_v11  ;;  %v4355_v53 = vsel %vm381_vm5, %v6867_v21, %v6868_v32 }
 0xd60   :  { %v6881_v50 = vpop.permute.xlu0 %6880  ;;  %v6878_v49 = vunpack.i.h.bf16 %v6876_v44  ;;  %v6877_v56 = vunpack.i.l.bf16 %v6876_v44  ;;  %v6197_v25 = vpack.c.bf16 %v4356_v54, %v4355_v53 }
 0xd61   :  { %5851 = vmatmul.mubr.msk.f32.vlgmr.msra.gmra.mrb[6].mxu0 %vm42_vm0, %v7563_v63  ;;  %v6883_v15 = vunpack.i.h.bf16 %v6881_v50  ;;  %v6882_v60 = vunpack.i.l.bf16 %v6881_v50 }
 0xd62   :  { %6190 = vmatpush3.bf16.msk.msra.mxu0 %vm7120_vm6, %v7849_v11  ;;  %5861 = vmatprep.mubr.msk.f32.mxu0 %vm42_vm0, %v7573_v41  ;;  %v4358_v3 = vsel %vm381_vm5, %v6877_v56, %v6878_v49 }
 0xd63   :  { %v6891_v0 = vpop.permute.xlu1 %6890  ;;  %6193 = vmatprep.subr.msk.bf16.mxu0 %vm7120_vm6, %v7873_v55  ;;  %v4357_v11 = vsel %vm381_vm5, %v6882_v60, %v6883_v15 }
 0xd64   :  { %v6886_v63 = vpop.permute.xlu0 %6885  ;;  %v6893_v26 = vunpack.i.h.bf16 %v6891_v0  ;;  %v6892_v27 = vunpack.i.l.bf16 %v6891_v0  ;;  %v6201_v4 = vpack.c.bf16 %v4358_v3, %v4357_v11 }
 0xd65   :  { %v6888_v1 = vunpack.i.h.bf16 %v6886_v63  ;;  %v6887_v16 = vunpack.i.l.bf16 %v6886_v63 }
 0xd66   :  { %6196 = vmatpush3.bf16.msk.msra.mxu0 %vm7120_vm6, %v7873_v55  ;;  %v4465_v9 = vsel %vm480_vm7, %v6892_v27, %v6893_v26 }
 0xd67   :  { %v6896_v41 = vpop.permute.xlu1 %6895  ;;  %6198 = vmatprep.subr.bf16.mxu0 %v6197_v25  ;;  %v4464_v8 = vsel %vm480_vm7, %v6887_v16, %v6888_v1 }
 0xd68   :  { %v6901_v61 = vpop.permute.xlu0 %6900  ;;  %v6898_v17 = vunpack.i.h.bf16 %v6896_v41  ;;  %v6897_v45 = vunpack.i.l.bf16 %v6896_v41  ;;  %v6205_v47 = vpack.c.bf16 %v4465_v9, %v4464_v8 }
 0xd69   :  { %5862 = vmatmul.mubr.msk.f32.vlgmr.msra.gmra.mrb[6].mxu0 %vm42_vm0, %v7601_v57  ;;  %v6903_v22 = vunpack.i.h.bf16 %v6901_v61  ;;  %v6902_v46 = vunpack.i.l.bf16 %v6901_v61 }
 0xd6a   :  { %6200 = vmatpush3.bf16.msra.mxu0 %v6197_v25  ;;  %5872 = vmatprep.mubr.msk.f32.mxu0 %vm42_vm0, %v7608_v2  ;;  %v4467_v34 = vsel %vm480_vm7, %v6897_v45, %v6898_v17 }
 0xd6b   :  { %v6911_v55 = vpop.permute.xlu1 %6910  ;;  %6202 = vmatprep.subr.bf16.mxu0 %v6201_v4  ;;  %v4466_v31 = vsel %vm480_vm7, %v6902_v46, %v6903_v22 }
 0xd6c   :  { %v6906_v30 = vpop.permute.xlu0 %6905  ;;  %v6913_v20 = vunpack.i.h.bf16 %v6911_v55  ;;  %v6912_v40 = vunpack.i.l.bf16 %v6911_v55  ;;  %v6209_v2 = vpack.c.bf16 %v4467_v34, %v4466_v31 }
 0xd6d   :  { %v6908_v57 = vunpack.i.h.bf16 %v6906_v30  ;;  %v6907_v18 = vunpack.i.l.bf16 %v6906_v30 }
 0xd6e   :  { %6204 = vmatpush3.bf16.msra.mxu0 %v6201_v4  ;;  %v4574_v28 = vsel %vm579_vm8, %v6912_v40, %v6913_v20 }
 0xd6f   :  { %v6921_v62 = vpop.permute.xlu1 %6920  ;;  %6206 = vmatprep.subr.bf16.mxu0 %v6205_v47  ;;  %v4573_v24 = vsel %vm579_vm8, %v6907_v18, %v6908_v57 }
 0xd70   :  { %v6916_v35 = vpop.permute.xlu0 %6915  ;;  %v6923_v13 = vunpack.i.h.bf16 %v6921_v62  ;;  %v6922_v36 = vunpack.i.l.bf16 %v6921_v62  ;;  %v6213_v12 = vpack.c.bf16 %v4574_v28, %v4573_v24 }
 0xd71   :  { %5873 = vmatmul.mubr.msk.f32.vlgmr.msra.gmra.mrb[6].mxu0 %vm42_vm0, %v7627_v42  ;;  %v6918_v52 = vunpack.i.h.bf16 %v6916_v35  ;;  %v6917_v7 = vunpack.i.l.bf16 %v6916_v35 }
 0xd72   :  { %6208 = vmatpush3.bf16.msra.mxu0 %v6205_v47  ;;  %5883 = vmatprep.mubr.msk.f32.mxu0 %vm42_vm0, %v7634_v5  ;;  %v4576_v42 = vsel %vm579_vm8, %v6922_v36, %v6923_v13  ;;  %v6979_v5 = vmov 0  }
 0xd73   :  { %6210 = vmatprep.subr.bf16.mxu0 %v6209_v2  ;;  %v4575_v58 = vsel %vm579_vm8, %v6917_v7, %v6918_v52  ;;  %6924 = vset.pattern.permute.xlu1 %v6979_v5 }
 0xd74   :  { %v6217_v59 = vpack.c.bf16 %v4576_v42, %v4575_v58  ;;  %6925 = vset.pattern.permute.xlu0 %v6979_v5 }
 0xd76   :  { %6212 = vmatpush3.bf16.msra.mxu0 %v6209_v2 }
 0xd77   :  { %6214 = vmatprep.subr.bf16.mxu0 %v6213_v12 }
 0xd79   :  { %5884 = vmatmul.mubr.msk.f32.vlgmr.msra.gmra.mrb[6].mxu0 %vm42_vm0, %v7649_v6 }
 0xd7a   :  { %6216 = vmatpush3.bf16.msra.mxu0 %v6213_v12  ;;  %5894 = vmatprep.mubr.msk.f32.mxu0 %vm42_vm0, %v7655_v10 }
 0xd7b   :  { %6218 = vmatprep.subr.bf16.mxu0 %v6217_v59 }
 0xd7e   :  { %6220 = vmatpush3.bf16.msra.mxu0 %v6217_v59 }
 0xd81   :  { %5895 = vmatmul.mubr.msk.f32.vlgmr.msra.gmra.mrb[6].mxu0 %vm42_vm0, %v7667_v51 }
 0xdaa   :  { %v2335_v14 = vpop.xlane.xlu0 %2334 }
 0xdae   :  { %v2337_v37 = vpop.xlane.xlu1 %2336  ;;  %v2339_v39 = vpop.xlane.xlu0 %2338 }
 0xdb2   :  { %v2343_v23 = vpop.xlane.xlu1 %2342  ;;  %v2341_v33 = vpop.xlane.xlu0 %2340 }
 0xdb6   :  { %v7953_v38 = vpop.xlane.xlu1 %2346  ;;  %v2345_v6 = vpop.xlane.xlu0 %2344 }
 0xdba   :  { %v4674_v48 = vpop.xlane.xlu1 %4673  ;;  %v7955_v43 = vpop.xlane.xlu0 %2348 }
 0xdbb   :  { %v4689_v26 = vadd.f32 %v4674_v48, %v2335_v14 }
 0xdbd   :  { %v7961_v3 = vmul.f32 0.00390625, %v4689_v26  ;;  %v4762_v26 = vld [vmem:[%s8065_s6 + $0x8] sm:$0xff] }
 0xdbe   :  { %v4678_v10 = vpop.xlane.xlu1 %4677  ;;  %v4676_v32 = vpop.xlane.xlu0 %4675 }
 0xdbf   :  { %v4691_v27 = vadd.f32 %v4678_v10, %v2339_v39  ;;  %v4690_v41 = vadd.f32 %v4676_v32, %v2337_v37  ;;  %v4745_v46 = vmul.f32 %v7961_v3, %v7961_v3 }
 0xdc1   :  { %v7963_v4 = vmul.f32 0.00390625, %v4691_v27  ;;  %v7967_v55 = vmul.f32 0.00390625, %v4690_v41  ;;  %v4765_v27 = vld [vmem:[%s8065_s6 + $0x20] sm:$0xff] }
 0xdc2   :  { %v4682_v21 = vpop.xlane.xlu1 %4681  ;;  %v4680_v44 = vpop.xlane.xlu0 %4679 }
 0xdc3   :  { %v4693_v8 = vadd.f32 %v4682_v21, %v2343_v23  ;;  %v4747_v47 = vmul.f32 %v7963_v4, %v7963_v4  ;;  %v4692_v20 = vadd.f32 %v4680_v44, %v2341_v33  ;;  %v4746_v2 = vmul.f32 %v7967_v55, %v7967_v55 }
 0xdc5   :  { %v4733_v40 = vmul.f32 0.00390625, %v4693_v8  ;;  %v7978_v28 = vmul.f32 0.00390625, %v4692_v20  ;;  %v4795_v8 = vld [vmem:[%s8066_s7 + $0x10] sm:$0xff] }
 0xdc6   :  { %v2367_v50 = vpop.xlane.xlu1 %2366  ;;  %v4684_v51 = vpop.xlane.xlu0 %4683 }
 0xdc7   :  { %v4749_v13 = vmul.f32 %v4733_v40, %v4733_v40  ;;  %v4748_v14 = vmul.f32 %v7978_v28, %v7978_v28  ;;  %v4694_v37 = vadd.f32 %v4684_v51, %v2345_v6  ;;  %v4761_v6 = vld [vmem:[%s8065_s6] sm:$0xff]  ;;  %v4763_v51 = vld [vmem:[%s8065_s6 + $0x10] sm:$0xff] }
 0xdc9   :  { %v4734_v10 = vmul.f32 0.00390625, %v4694_v37 }
 0xdca   :  { %v2371_v53 = vpop.xlane.xlu1 %2370  ;;  %v2369_v54 = vpop.xlane.xlu0 %2368 }
 0xdcb   :  { %v4750_v44 = vmul.f32 %v4734_v10, %v4734_v10 }
 0xdce   :  { %v2375_v49 = vpop.xlane.xlu1 %2374  ;;  %v2373_v56 = vpop.xlane.xlu0 %2372 }
 0xdd2   :  { %v7957_v15 = vpop.xlane.xlu1 %2378  ;;  %v2377_v60 = vpop.xlane.xlu0 %2376 }
 0xdd6   :  { %v4706_v0 = vpop.xlane.xlu1 %4705  ;;  %v7959_v63 = vpop.xlane.xlu0 %2380 }
 0xdd7   :  { %v4721_v1 = vadd.f32 %v4706_v0, %v2367_v50 }
 0xdd9   :  { %v4737_v9 = vmul.f32 0.00390625, %v4721_v1 }
 0xdda   :  { %v4710_v25 = vpop.xlane.xlu1 %4709  ;;  %v4708_v16 = vpop.xlane.xlu0 %4707 }
 0xddb   :  { %v4723_v11 = vadd.f32 %v4710_v25, %v2371_v53  ;;  %v4722_v17 = vadd.f32 %v4708_v16, %v2369_v54  ;;  %v4753_v57 = vsub.f32 %v4737_v9, %v4745_v46 }
 0xddd   :  { %v4739_v45 = vmul.f32 0.00390625, %v4723_v11  ;;  %v4738_v18 = vmul.f32 0.00390625, %v4722_v17  ;;  %v4769_v36 = vadd.f32 1e-05, %v4753_v57 }
 0xdde   :  { %v4714_v61 = vpop.xlane.xlu1 %4713  ;;  %v4712_v30 = vpop.xlane.xlu0 %4711 }
 0xddf   :  { %v4725_v22 = vadd.f32 %v4714_v61, %v2375_v49  ;;  %v4755_v31 = vsub.f32 %v4739_v45, %v4747_v47  ;;  %v4724_v34 = vadd.f32 %v4712_v30, %v2373_v56  ;;  %v4754_v52 = vsub.f32 %v4738_v18, %v4746_v2  ;;  %v4764_v61 = vld [vmem:[%s8065_s6 + $0x18] sm:$0xff]  ;;  %v4766_v30 = vld [vmem:[%s8065_s6 + $0x28] sm:$0xff] }
 0xde0   :  { %6926 = vrsqrt.f32 %v4769_v36  ;;  %v4798_v36 = vld [vmem:[%s8066_s7 + $0x28] sm:$0xff] }
 0xde1   :  { %v4741_v62 = vmul.f32 0.00390625, %v4725_v22  ;;  %v4771_v12 = vadd.f32 1e-05, %v4755_v31  ;;  %v4740_v58 = vmul.f32 0.00390625, %v4724_v34  ;;  %v4770_v39 = vadd.f32 1e-05, %v4754_v52 }
 0xde2   :  { %v4716_v5 = vpop.xlane.xlu0 %4715  ;;  %v4797_v22 = vld [vmem:[%s8066_s7 + $0x20] sm:$0xff]  ;;  %v4794_v31 = vld [vmem:[%s8066_s7 + $0x8] sm:$0xff] }
 0xde3   :  { %v4757_v42 = vsub.f32 %v4741_v62, %v4749_v13  ;;  %6928 = vrsqrt.f32 %v4771_v12  ;;  %v4756_v23 = vsub.f32 %v4740_v58, %v4748_v14  ;;  %v4726_v48 = vadd.f32 %v4716_v5, %v2377_v60 }
 0xde4   :  { %6930 = vrsqrt.f32 %v4770_v39 }
 0xde5   :  { %v4773_v33 = vadd.f32 1e-05, %v4757_v42  ;;  %v4772_v32 = vadd.f32 1e-05, %v4756_v23  ;;  %v4742_v21 = vmul.f32 0.00390625, %v4726_v48 }
 0xde7   :  { %6932 = vrsqrt.f32 %v4773_v33  ;;  %v4758_v50 = vsub.f32 %v4742_v21, %v4750_v44 }
 0xde8   :  { %6934 = vrsqrt.f32 %v4772_v32 }
 0xde9   :  { %v4774_v49 = vadd.f32 1e-05, %v4758_v50 }
 0xdea   :  { %v6927_v53 = vpop.eup %6926 }
 0xdeb   :  { %v4785_v60 = vmul.f32 %v6927_v53, %v4761_v6  ;;  %6936 = vrsqrt.f32 %v4774_v49  ;;  %v4939_v53 = vld [vmem:[#allocation2 + $0x50] sm:$0xff] }
 0xded   :  { %v6929_v54 = vpop.eup %6928  ;;  %v4801_v20 = vmul.f32 %v4785_v60, %v7961_v3  ;;  %v4796_v3 = vld [vmem:[%s8066_s7 + $0x18] sm:$0xff] }
 0xdee   :  { %v6931_v56 = vpop.eup %6930  ;;  %v4787_v0 = vmul.f32 %v6929_v54, %v4763_v51 }
 0xdef   :  { %v4786_v1 = vmul.f32 %v6931_v56, %v4762_v26 }
 0xdf0   :  { %v4803_v16 = vmul.f32 %v4787_v0, %v7963_v4 }
 0xdf1   :  { %v6933_v25 = vpop.eup %6932  ;;  %v4802_v18 = vmul.f32 %v4786_v1, %v7967_v55 }
 0xdf2   :  { %v4789_v11 = vmul.f32 %v6933_v25, %v4765_v27  ;;  %v6935_v41 = vpop.eup %6934  ;;  %v4811_v17 = vsub.f32 %v4795_v8, %v4803_v16  ;;  %v4821_v25 = vld [vmem:[#allocation2 + $0x20] sm:$0xff]  ;;  %v4768_v27 = vld [vmem:[%s8065_s6 + $0x38] sm:$0xff] }
 0xdf3   :  { %v4788_v9 = vmul.f32 %v6935_v41, %v4764_v61  ;;  %v4810_v34 = vsub.f32 %v4794_v31, %v4802_v18 }
 0xdf4   :  { %v4805_v45 = vmul.f32 %v4789_v11, %v4733_v40  ;;  %v4793_v40 = vld [vmem:[%s8066_s7] sm:$0xff] }
 0xdf5   :  { %v6937_v46 = vpop.eup %6936  ;;  %v4809_v57 = vsub.f32 %v4793_v40, %v4801_v20  ;;  %v4804_v62 = vmul.f32 %v4788_v9, %v7978_v28  ;;  %v4817_v20 = vld [vmem:[#allocation2] sm:$0xff] }
 0xdf6   :  { %v4813_v4 = vsub.f32 %v4797_v22, %v4805_v45  ;;  %v4790_v47 = vmul.f32 %v6937_v46, %v4766_v30 }
 0xdf7   :  { %v4812_v2 = vsub.f32 %v4796_v3, %v4804_v62  ;;  %v4800_v3 = vld [vmem:[%s8066_s7 + $0x38] sm:$0xff] }
 0xdf8   :  { %v4806_v13 = vmul.f32 %v4790_v47, %v4734_v10 }
 0xdfa   :  { %v4814_v55 = vsub.f32 %v4798_v36, %v4806_v13 }
 0xe54   :  { %v7971_v35 = vpop.f32.mrb[6].mxu0 }
 0xe55   :  { %4687 = vadd.xlane.f32.xlu0 %v7971_v35  ;;  %v7976_v24 = vpop.f32.mrb[7].mxu0  ;;  %v4704_v7 = vmul.f32 %v7971_v35, %v7971_v35 }
 0xe56   :  { %4685 = vadd.xlane.f32.xlu1 %v7976_v24  ;;  %v4703_v59 = vmul.f32 %v7976_v24, %v7976_v24 }
 0xe59   :  { %4719 = vadd.xlane.f32.xlu0 %v4704_v7 }
 0xe5a   :  { %4717 = vadd.xlane.f32.xlu1 %v4703_v59 }
 0xe6b   :  { %4827 = vperm.xlu1 %6924, %v4785_v60  }
 0xe6f   :  { %4832 = vperm.xlu0 %6925, %v4786_v1   ;;  %4837 = vperm.xlu1 %6924, %v4787_v0  }
 0xe73   :  { %4842 = vperm.xlu1 %6924, %v4788_v9   ;;  %4885 = vperm.xlu0 %6925, %v4811_v17  }
 0xe77   :  { %4847 = vperm.xlu1 %6924, %v4789_v11   ;;  %4895 = vperm.xlu0 %6925, %v4813_v4   ;;  %v4767_v11 = vld [vmem:[%s8065_s6 + $0x30] sm:$0xff] }
 0xe7b   :  { %4852 = vperm.xlu1 %6924, %v4790_v47   ;;  %v4799_v47 = vld [vmem:[%s8066_s7 + $0x30] sm:$0xff]  ;;  %s6980_s7 = smov [#allocation2]  }
 0xe7c   :  { %s4982_s10 = sshll.u32 %s6980_s7, 4  ;;  %s4983_s10 = int_to_ptr.vmem [resolvable:$true] %s4982_s10 }
 0xe7d   :  { %s6950_s11 = scalar_lea.vmem %s4983_s10, 2048  ;;  %p6955_p1 = scmp.lt.s32.totalorder %s4983_s10, %s4983_s10 }
 0xe7e   :  { %p6951_p0 = scmp.ne.s32.totalorder %s4983_s10, %s6950_s11  ;;  %p6956_p2 = scmp.lt.s32.totalorder %s6950_s11, %s6950_s11 }
 0xe7f   :  { %4875 = vperm.xlu1 %6924, %v4809_v57  }
 0xe80   :  { %p6957_p3 = por %p6956_p2, %p6955_p1 }
 0xe82   :  { %p6958_p4 = pnand %p6957_p3, %p6951_p0 }
 0xe83   :  { %4880 = vperm.xlu1 %6924, %v4810_v34  }
 0xe87   :  { %4890 = vperm.xlu1 %6924, %v4812_v2   ;;  %v4818_v2 = vld [vmem:[#allocation2 + $0x8] sm:$0xff] }
 0xe8b   :  { %4900 = vperm.xlu1 %6924, %v4814_v55   ;;  %v4938_v55 = vld [vmem:[#allocation2 + $0x48] sm:$0xff] }
 0xee2   :  { %v4688_v52 = vpop.xlane.xlu0 %4687 }
 0xee3   :  { %v4696_v7 = vadd.f32 %v4688_v52, %v7955_v43  ;;  %v4686_v12 = vpop.xlane.xlu1 %4685 }
 0xee4   :  { %v4695_v28 = vadd.f32 %v4686_v12, %v7953_v38  ;;  %v4819_v38 = vld [vmem:[#allocation2 + $0x10] sm:$0xff] }
 0xee5   :  { %v4736_v58 = vmul.f32 0.00390625, %v4696_v7 }
 0xee6   :  { %v4735_v42 = vmul.f32 0.00390625, %v4695_v28  ;;  %v4720_v59 = vpop.xlane.xlu0 %4719 }
 0xee7   :  { %v4728_v5 = vadd.f32 %v4720_v59, %v7959_v63  ;;  %v4718_v14 = vpop.xlane.xlu1 %4717  ;;  %v4752_v39 = vmul.f32 %v4736_v58, %v4736_v58 }
 0xee8   :  { %v4727_v37 = vadd.f32 %v4718_v14, %v7957_v15  ;;  %v4751_v33 = vmul.f32 %v4735_v42, %v4735_v42  ;;  %v4820_v14 = vld [vmem:[#allocation2 + $0x18] sm:$0xff] }
 0xee9   :  { %v4744_v23 = vmul.f32 0.00390625, %v4728_v5 }
 0xeea   :  { %v4743_v48 = vmul.f32 0.00390625, %v4727_v37  ;;  %v4940_v37 = vld [vmem:[#allocation2 + $0x58] sm:$0xff] }
 0xeeb   :  { %v4760_v10 = vsub.f32 %v4744_v23, %v4752_v39  ;;  %v4828_v32 = vpop.permute.xlu1 %4827 }
 0xeec   :  { %v4759_v21 = vsub.f32 %v4743_v48, %v4751_v33  ;;  %v4865_v57 = vmul.f32 %v4828_v32, %v4817_v20 }
 0xeed   :  { %v4776_v44 = vadd.f32 1e-05, %v4760_v10 }
 0xeee   :  { %v4775_v43 = vadd.f32 1e-05, %v4759_v21  ;;  %v4833_v50 = vpop.permute.xlu0 %4832 }
 0xeef   :  { %6938 = vrsqrt.f32 %v4776_v44  ;;  %v4838_v54 = vpop.permute.xlu1 %4837  ;;  %v4866_v52 = vmul.f32 %v4833_v50, %v4818_v2  ;;  %v4946_v7 = vmul.f32 %v4938_v55, %v4833_v50  ;;  %v4822_v44 = vld [vmem:[#allocation2 + $0x28] sm:$0xff] }
 0xef0   :  { %6940 = vrsqrt.f32 %v4775_v43  ;;  %v4867_v6 = vmul.f32 %v4838_v54, %v4819_v38  ;;  %v4947_v63 = vmul.f32 %v4939_v53, %v4838_v54 }
 0xef2   :  { %v4886_v51 = vpop.permute.xlu0 %4885 }
 0xef3   :  { %v4915_v49 = vadd.f32 %v4886_v51, %v4867_v6  ;;  %v4955_v15 = vadd.f32 %v4947_v63, %v4886_v51  ;;  %v4843_v56 = vpop.permute.xlu1 %4842 }
 0xef4   :  { %v4868_v39 = vmul.f32 %v4843_v56, %v4820_v14  ;;  %v4948_v23 = vmul.f32 %v4940_v37, %v4843_v56  ;;  %v4823_v56 = vld [vmem:[#allocation2 + $0x30] sm:$0xff] }
 0xef5   :  { %v4923_v60 = vmax.f32 %v4915_v49, 0.0  ;;  %v4963_v0 = vmax.f32 %v4955_v15, 0.0 }
 0xef6   :  { %v4896_v61 = vpop.permute.xlu0 %4895 }
 0xef7   :  { %4931 = vst [vmem:[#allocation2 + $0x10] sm:$0xff] %v4923_v60  ;;  %4971 = vst [vmem:[#allocation2 + $0x50] sm:$0xff] %v4963_v0  ;;  %v4848_v26 = vpop.permute.xlu1 %4847 }
 0xef8   :  { %v4869_v1 = vmul.f32 %v4848_v26, %v4821_v25  ;;  %v4949_v16 = vmul.f32 %v4848_v26, %v7863_v29  ;;  %v4937_v29 = vld [vmem:[#allocation2 + $0x40] sm:$0xff] }
 0xef9   :  { %v6939_v41 = vpop.eup %6938  ;;  %v4945_v18 = vmul.f32 %v4937_v29, %v4828_v32 }
 0xefa   :  { %v6941_v8 = vpop.eup %6940  ;;  %v4917_v9 = vadd.f32 %v4896_v61, %v4869_v1  ;;  %v4957_v17 = vadd.f32 %v4949_v16, %v4896_v61  ;;  %v4792_v45 = vmul.f32 %v6939_v41, %v4768_v27  ;;  %v4824_v27 = vld [vmem:[#allocation2 + $0x38] sm:$0xff] }
 0xefb   :  { %v4853_v22 = vpop.permute.xlu1 %4852  ;;  %v4791_v4 = vmul.f32 %v6941_v8, %v4767_v11 }
 0xefc   :  { %v4925_v46 = vmax.f32 %v4917_v9, 0.0  ;;  %v4965_v30 = vmax.f32 %v4957_v17, 0.0  ;;  %4862 = vperm.xlu1 %6924, %v4792_v45   ;;  %v4808_v31 = vmul.f32 %v4792_v45, %v4736_v58  ;;  %v4870_v43 = vmul.f32 %v4853_v22, %v4822_v44 }
 0xefd   :  { %v4807_v40 = vmul.f32 %v4791_v4, %v4735_v42  ;;  %v4950_v50 = vmul.f32 %v7861_v19, %v4853_v22 }
 0xefe   :  { %4933 = vst [vmem:[#allocation2 + $0x20] sm:$0xff] %v4925_v46  ;;  %4973 = vst [vmem:[#allocation2 + $0x60] sm:$0xff] %v4965_v30  ;;  %v4816_v42 = vsub.f32 %v4800_v3, %v4808_v31 }
 0xeff   :  { %v4876_v34 = vpop.permute.xlu1 %4875  ;;  %v4815_v62 = vsub.f32 %v4799_v47, %v4807_v40 }
 0xf00   :  { %v4913_v13 = vadd.f32 %v4876_v34, %v4865_v57  ;;  %v4953_v36 = vadd.f32 %v4945_v18, %v4876_v34  ;;  %4857 = vperm.xlu1 %6924, %v4791_v4  }
 0xf01   :  { %4905 = vperm.xlu0 %6925, %v4815_v62  }
 0xf02   :  { %v4921_v12 = vmax.f32 %v4913_v13, 0.0  ;;  %v4961_v28 = vmax.f32 %v4953_v36, 0.0 }
 0xf03   :  { %v4881_v59 = vpop.permute.xlu1 %4880 }
 0xf04   :  { %4929 = vst [vmem:[#allocation2] sm:$0xff] %v4921_v12  ;;  %4969 = vst [vmem:[#allocation2 + $0x40] sm:$0xff] %v4961_v28  ;;  %v4914_v58 = vadd.f32 %v4881_v59, %v4866_v52  ;;  %v4954_v5 = vadd.f32 %v4946_v7, %v4881_v59  ;;  %4910 = vperm.xlu1 %6924, %v4816_v42  }
 0xf06   :  { %v4922_v33 = vmax.f32 %v4914_v58, 0.0  ;;  %v4962_v48 = vmax.f32 %v4954_v5, 0.0 }
 0xf07   :  { %v4891_v10 = vpop.permute.xlu1 %4890 }
 0xf08   :  { %4930 = vst [vmem:[#allocation2 + $0x8] sm:$0xff] %v4922_v33  ;;  %4970 = vst [vmem:[#allocation2 + $0x48] sm:$0xff] %v4962_v48  ;;  %v4916_v32 = vadd.f32 %v4891_v10, %v4868_v39  ;;  %v4956_v21 = vadd.f32 %v4948_v23, %v4891_v10 }
 0xf0a   :  { %v4924_v38 = vmax.f32 %v4916_v32, 0.0  ;;  %v4964_v53 = vmax.f32 %v4956_v21, 0.0 }
 0xf0b   :  { %v4901_v54 = vpop.permute.xlu1 %4900 }
 0xf0c   :  { %4932 = vst [vmem:[#allocation2 + $0x18] sm:$0xff] %v4924_v38  ;;  %4972 = vst [vmem:[#allocation2 + $0x58] sm:$0xff] %v4964_v53  ;;  %v4918_v6 = vadd.f32 %v4901_v54, %v4870_v43  ;;  %v4958_v63 = vadd.f32 %v4950_v50, %v4901_v54 }
 0xf0e   :  { %v4926_v51 = vmax.f32 %v4918_v6, 0.0  ;;  %v4966_v49 = vmax.f32 %v4958_v63, 0.0 }
 0xf10   :  { %4934 = vst [vmem:[#allocation2 + $0x28] sm:$0xff] %v4926_v51  ;;  %4974 = vst [vmem:[#allocation2 + $0x68] sm:$0xff] %v4966_v49 }
 0xf7b   :  { %v4863_v15 = vpop.permute.xlu1 %4862 }
 0xf7c   :  { %v4872_v19 = vmul.f32 %v4863_v15, %v4824_v27  ;;  %v4952_v1 = vmul.f32 %v7971_v35, %v4863_v15 }
 0xf7f   :  { %v4858_v60 = vpop.permute.xlu1 %4857 }
 0xf80   :  { %v4871_v0 = vmul.f32 %v4858_v60, %v4823_v56  ;;  %v4951_v25 = vmul.f32 %v4858_v60, %v7976_v24  ;;  %v4906_v26 = vpop.permute.xlu0 %4905 }
 0xf82   :  { %v4919_v16 = vadd.f32 %v4906_v26, %v4871_v0  ;;  %v4959_v11 = vadd.f32 %v4951_v25, %v4906_v26 }
 0xf83   :  { %v4911_v41 = vpop.permute.xlu1 %4910 }
 0xf84   :  { %v4927_v61 = vmax.f32 %v4919_v16, 0.0  ;;  %v4967_v8 = vmax.f32 %v4959_v11, 0.0  ;;  %v4920_v9 = vadd.f32 %v4911_v41, %v4872_v19  ;;  %v4960_v17 = vadd.f32 %v4952_v1, %v4911_v41 }
 0xf86   :  { %4935 = vst [vmem:[#allocation2 + $0x30] sm:$0xff] %v4927_v61  ;;  %4975 = vst [vmem:[#allocation2 + $0x70] sm:$0xff] %v4967_v8  ;;  %v4928_v45 = vmax.f32 %v4920_v9, 0.0  ;;  %v4968_v22 = vmax.f32 %v4960_v17, 0.0 }
 0xf88   :  { %4936 = vst [vmem:[#allocation2 + $0x38] sm:$0xff] %v4928_v45  ;;  %4976 = vst [vmem:[#allocation2 + $0x78] sm:$0xff] %v4968_v22 }
 0xf89   :  { %6961 = shalt.err (!%p6958_p4)
}
 0xf8a   :  { %s6962_s21 = scalar_lea.hbm %s8067_s8, 2048 }
 0xf8b   :  { %p6963_p5 = scmp.ne.s32.totalorder %s8067_s8, %s6962_s21  ;;  %p6966_p6 = scmp.lt.u32.totalorder %s6962_s21, %s8067_s8 }
 0xf8d   :  { %p6968_p7 = pnand %p6966_p6, %p6963_p5 }
 0xf8f   :  { %6971 = shalt.err (!%p6968_p7)
}
 0xf90   :  { %s6981_s5 = smov 128   ;;  %s6982_s24 = smov 8  }
 0xf91   :  { %4988 = dma.vmem_to_hbm [thread:$0]  %s4983_s10, 2048, %s8067_s8, [#allocation3], %s6981_s5, %s6981_s5, %s6982_s24  }
 0xf92   :  { %6972 = dma.done.wait [#allocation3], 2048  }
 0xf93   :  { %6973 = vsyncadd [#allocation3], 4294965248 }
 0xf94   :  { %4992 = vsyncpa [#allocation3], 1 }

</bundles_post_ra>
